<compile_context>
chip_gen: v7x
topology: tpu7x:2x2x1
jax: 0.10.0
libtpu: 0.0.40
codegen_flags: <defaults>
</compile_context>

<pallas_src>
import jax
import jax.numpy as jnp
import numpy as np
from jax.experimental import pallas as pl
from jax.experimental.pallas import tpu as pltpu

LANE = 128


def _round_up(x, m):
    return (x + m - 1) // m * m


def make_block_kernel(H, has_skip):
    """Returns the Pallas kernel body. H = full image height (boundary masks)."""

    def kernel(*refs):
        if has_skip:
            (xb_ref, w1_ref, b1_ref, w2_ref, b2_ref, w3_ref, b3_ref,
             wskip_ref, out_ref, buf1, buf2) = refs
        else:
            (xb_ref, w1_ref, b1_ref, w2_ref, b2_ref, w3_ref, b3_ref,
             out_ref, buf1, buf2) = refs

        TH = out_ref.shape[1]          # output rows per band
        W = out_ref.shape[2]           # image width
        Cout_p = out_ref.shape[3]      # lane-padded output channels
        row0 = pl.program_id(1) * TH   # absolute image row of band's first output row

        def im2col(a):
            # a: (R, W+1, C) bf16, valid data in cols [0, W), col W == 0.
            # Returns (R*W, 3*C): per (row, x) the kx taps
            # [img[.., x-1], img[.., x], img[.., x+1]] concatenated on lanes.
            R, C = a.shape[0], a.shape[2]
            zero_col = jnp.zeros((R, 1, C), a.dtype)
            left = jnp.concatenate([zero_col, a[:, :W - 1, :]], axis=1)
            mid = a[:, :W, :]
            right = a[:, 1:W + 1, :]
            p = jnp.concatenate([left, mid, right], axis=-1)        # (R, W, 3C)
            return p.reshape(R * W, 3 * C)

        def conv3x3(p2d, rows_out, w_ref, b_ref):
            # p2d: ((rows_out+2)*W, 3*Ci) bf16 ; w_ref: (3, 3*Ci, Cout_p) bf16
            # b_ref: (1, Cout_p) f32.  Accumulator initialized with the bias.
            acc = jnp.broadcast_to(b_ref[...], (rows_out * W, Cout_p))
            for ky in range(3):
                lhs = p2d[ky * W:(ky + rows_out) * W, :]
                acc = acc + jnp.dot(lhs, w_ref[ky],
                                    preferred_element_type=jnp.float32)
            return acc                                              # f32

        def mask_rows(h, rows, off):
            # Zero rows whose absolute image row (row0 + i - off) is outside
            # [0, H): they are the zero padding seen by the next conv.
            hr = h.reshape(rows, W, Cout_p)
            r = row0 + jax.lax.broadcasted_iota(jnp.int32, (rows, 1, 1), 0) - off
            keep = ((r >= 0) & (r < H)).astype(hr.dtype)
            return hr * keep

        # xb rows correspond to absolute image rows [row0-3, row0+TH+3)
        xb = xb_ref[0]                                  # (TH+6, W+1, Cin_p) bf16

        # conv1 + ReLU on extended rows [row0-2, row0+TH+2)
        h1 = conv3x3(im2col(xb), TH + 4, w1_ref, b1_ref)
        h1 = mask_rows(jnp.maximum(h1, 0.0), TH + 4, 2)
        buf1[:, W:, :] = jnp.zeros((TH + 4, 1, Cout_p), buf1.dtype)
        buf1[:, :W, :] = h1.astype(buf1.dtype)          # column-0 aligned store

        # conv2 + ReLU on extended rows [row0-1, row0+TH+1)
        h2 = conv3x3(im2col(buf1[...]), TH + 2, w2_ref, b2_ref)
        h2 = mask_rows(jnp.maximum(h2, 0.0), TH + 2, 1)
        buf2[:, W:, :] = jnp.zeros((TH + 2, 1, Cout_p), buf2.dtype)
        buf2[:, :W, :] = h2.astype(buf2.dtype)

        # conv3 on the band's output rows [row0, row0+TH)
        h3 = conv3x3(im2col(buf2[...]), TH, w3_ref, b3_ref)   # (TH*W, Cout_p) f32

        # skip path on the band's output rows
        xc = xb[3:TH + 3, :W, :]                              # (TH, W, Cin_p)
        if has_skip:
            skip = jnp.dot(xc.reshape(TH * W, xc.shape[-1]), wskip_ref[...],
                           preferred_element_type=jnp.float32)
        else:
            skip = xc.reshape(TH * W, Cout_p).astype(jnp.float32)

        out = jnp.maximum(h3 + skip, 0.0)
        out_ref[...] = out.reshape(1, TH, W, Cout_p).astype(out_ref.dtype)

    return kernel


def block_forward(x_nchw, params, *, band_rows=None):
    """Forward of taesd.Block. x_nchw: (N, Cin, H, W). Returns (N, Cout, H, W) f32."""
    w1, b1, w2, b2, w3, b3 = (params[k] for k in ("w1", "b1", "w2", "b2", "w3", "b3"))
    has_skip = "wskip" in params
    N, Cin, H, W = x_nchw.shape
    Cout = w1.shape[-1]
    Cin_p = _round_up(Cin, LANE)
    Cout_p = _round_up(Cout, LANE)

    # Row-band height: largest of (64, 32, 16, 8) that divides H (else whole image).
    # TODO(synk): derive band_rows from a VMEM budget (pltpu.get_tpu_info) instead.
    if band_rows is None:
        band_rows = H
        for cand in (64, 32, 16, 8):
            if cand < H and H % cand == 0:
                band_rows = cand
                break
    TH = band_rows if (H % band_rows == 0) else H
    B = H // TH

    # Input packing: NCHW -> NHWC bf16, channels padded to Cin_p, one zero column
    # on the right (x = W halo), 3 zero rows top/bottom, then overlapping row
    # bands of TH+6 rows (3-row halo for the 3 stacked convs).
    # TODO(synk): for very large B, replace the band-stack (duplicates 6 rows/band
    # in HBM) with an in-kernel halo DMA from a pl.ANY-space input.
    x = jnp.transpose(x_nchw, (0, 2, 3, 1)).astype(jnp.bfloat16)
    x = jnp.pad(x, ((0, 0), (3, 3), (0, 1), (0, Cin_p - Cin)))
    xb = jnp.stack([x[:, b * TH:b * TH + TH + 6] for b in range(B)], axis=1)
    xb = xb.reshape(N * B, TH + 6, W + 1, Cin_p)

    # Weight packing: HWIO (3,3,ci,co) -> (3, 3*ci_p, co_p) bf16 (im2col layout).
    def pack_w(w, ci_p, co_p):
        ci, co = w.shape[2], w.shape[3]
        wp = jnp.pad(w, ((0, 0), (0, 0), (0, ci_p - ci), (0, co_p - co)))
        return wp.reshape(3, 3 * ci_p, co_p).astype(jnp.bfloat16)

    def pack_b(b, co_p):
        return jnp.pad(b.reshape(1, -1).astype(jnp.float32),
                       ((0, 0), (0, co_p - b.shape[-1])))

    w1r = pack_w(w1, Cin_p, Cout_p)
    w2r = pack_w(w2, Cout_p, Cout_p)
    w3r = pack_w(w3, Cout_p, Cout_p)
    b1r, b2r, b3r = pack_b(b1, Cout_p), pack_b(b2, Cout_p), pack_b(b3, Cout_p)

    args = [xb, w1r, b1r, w2r, b2r, w3r, b3r]
    in_specs = [
        pl.BlockSpec((1, TH + 6, W + 1, Cin_p), lambda n, b: (n * B + b, 0, 0, 0)),
        pl.BlockSpec((3, 3 * Cin_p, Cout_p), lambda n, b: (0, 0, 0)),
        pl.BlockSpec((1, Cout_p), lambda n, b: (0, 0)),
        pl.BlockSpec((3, 3 * Cout_p, Cout_p), lambda n, b: (0, 0, 0)),
        pl.BlockSpec((1, Cout_p), lambda n, b: (0, 0)),
        pl.BlockSpec((3, 3 * Cout_p, Cout_p), lambda n, b: (0, 0, 0)),
        pl.BlockSpec((1, Cout_p), lambda n, b: (0, 0)),
    ]
    if has_skip:
        wskip = jnp.pad(params["wskip"],
                        ((0, Cin_p - Cin), (0, Cout_p - Cout))).astype(jnp.bfloat16)
        args.append(wskip)
        in_specs.append(pl.BlockSpec((Cin_p, Cout_p), lambda n, b: (0, 0)))

    out = pl.pallas_call(
        make_block_kernel(H, has_skip),
        out_shape=jax.ShapeDtypeStruct((N * B, TH, W, Cout_p), jnp.float32),
        grid_spec=pltpu.PrefetchScalarGridSpec(
            num_scalar_prefetch=0,
            grid=(N, B),
            in_specs=in_specs,
            out_specs=pl.BlockSpec((1, TH, W, Cout_p),
                                   lambda n, b: (n * B + b, 0, 0, 0)),
            scratch_shapes=[
                pltpu.VMEM((TH + 4, W + 1, Cout_p), jnp.bfloat16),
                pltpu.VMEM((TH + 2, W + 1, Cout_p), jnp.bfloat16),
            ],
        ),
        compiler_params=pltpu.CompilerParams(
            dimension_semantics=("parallel", "parallel"),
            vmem_limit_bytes=32 * 1024 * 1024),
    )(*args)

    out = out.reshape(N, H, W, Cout_p)[..., :Cout]
    return jnp.transpose(out, (0, 3, 1, 2))


def make_params(key, n_in, n_out):
    """Deterministic synthetic parameters. Conv weights stored HWIO, bias (co,).
    For n_in == n_out the skip is nn.Identity, so no 'wskip' entry."""
    ks = jax.random.split(key, 7)
    s = 0.1
    p = {
        "w1": s * jax.random.normal(ks[0], (3, 3, n_in, n_out), jnp.float32),
        "b1": s * jax.random.normal(ks[1], (n_out,), jnp.float32),
        "w2": s * jax.random.normal(ks[2], (3, 3, n_out, n_out), jnp.float32),
        "b2": s * jax.random.normal(ks[3], (n_out,), jnp.float32),
        "w3": s * jax.random.normal(ks[4], (3, 3, n_out, n_out), jnp.float32),
        "b3": s * jax.random.normal(ks[5], (n_out,), jnp.float32),
    }
    if n_in != n_out:
        p["wskip"] = s * jax.random.normal(ks[6], (n_in, n_out), jnp.float32)
    return p


def ref_block(x_nchw, params):
    """Pure-JAX reference mirroring Block.forward (matmul inputs cast to bf16
    with f32 accumulation, matching the kernel's MXU precision)."""
    dn = ("NHWC", "HWIO", "NHWC")
    xf = jnp.transpose(x_nchw, (0, 2, 3, 1)).astype(jnp.float32)

    def c3(h, w, b):
        y = jax.lax.conv_general_dilated(
            h.astype(jnp.bfloat16), w.astype(jnp.bfloat16), (1, 1), "SAME",
            dimension_numbers=dn, preferred_element_type=jnp.float32)
        return y + b.reshape(1, 1, 1, -1)

    h = jax.nn.relu(c3(xf, params["w1"], params["b1"]))
    h = jax.nn.relu(c3(h, params["w2"], params["b2"]))
    h = c3(h, params["w3"], params["b3"])
    if "wskip" in params:
        skip = jax.lax.conv_general_dilated(
            xf.astype(jnp.bfloat16),
            params["wskip"][None, None].astype(jnp.bfloat16),
            (1, 1), "SAME", dimension_numbers=dn,
            preferred_element_type=jnp.float32)
    else:
        skip = xf.astype(jnp.bfloat16).astype(jnp.float32)
    out = jax.nn.relu(h + skip)
    return jnp.transpose(out, (0, 3, 1, 2))


if __name__ == "__main__":
    key = jax.random.PRNGKey(0)
    cases = [
        dict(N=2, n_in=4, n_out=8, H=16, W=16),   # projection (1x1-conv) skip
        dict(N=1, n_in=8, n_out=8, H=16, W=16),   # identity skip (specialized kernel)
    ]
    for cfg in cases:
        key, kx, kp = jax.random.split(key, 3)
        x = jax.random.normal(kx, (cfg["N"], cfg["n_in"], cfg["H"], cfg["W"]),
                              jnp.float32)
        params = make_params(kp, cfg["n_in"], cfg["n_out"])

        out = jax.block_until_ready(block_forward(x, params))
        ref = jax.block_until_ready(ref_block(x, params))

        assert out.shape == (cfg["N"], cfg["n_out"], cfg["H"], cfg["W"])
        np.testing.assert_allclose(np.asarray(out), np.asarray(ref),
                                   rtol=1e-2, atol=1e-2)
    print("KERNEL_OK")
</pallas_src>

<mosaic_0001>
module attributes {stable_mosaic.version = 11 : i64} {
  func.func @kernel(%arg0: i32, %arg1: i32, %arg2: memref<1x14x17x128xbf16, #tpu.memory_space<vmem>>, %arg3: memref<3x384x128xbf16, #tpu.memory_space<vmem>>, %arg4: memref<1x128xf32, #tpu.memory_space<vmem>>, %arg5: memref<3x384x128xbf16, #tpu.memory_space<vmem>>, %arg6: memref<1x128xf32, #tpu.memory_space<vmem>>, %arg7: memref<3x384x128xbf16, #tpu.memory_space<vmem>>, %arg8: memref<1x128xf32, #tpu.memory_space<vmem>>, %arg9: memref<128x128xbf16, #tpu.memory_space<vmem>>, %arg10: memref<1x8x16x128xf32, #tpu.memory_space<vmem>>, %arg11: memref<12x17x128xbf16, #tpu.memory_space<vmem>>, %arg12: memref<10x17x128xbf16, #tpu.memory_space<vmem>>) attributes {dimension_semantics = [#tpu.dimension_semantics<parallel>, #tpu.dimension_semantics<parallel>], iteration_bounds = array<i64: 2, 2>, scalar_prefetch = 0 : i64, scratch_operands = 2 : i64, tpu.core_type = #tpu.core_type<tc>, window_params = [{transform_indices = @transform_0, window_bounds = array<i64: 1, 14, 17, 128>}, {pipeline_mode = #tpu.pipeline_mode<synchronous>, transform_indices = @transform_1, window_bounds = array<i64: 3, 384, 128>}, {pipeline_mode = #tpu.pipeline_mode<synchronous>, transform_indices = @transform_2, window_bounds = array<i64: 1, 128>}, {pipeline_mode = #tpu.pipeline_mode<synchronous>, transform_indices = @transform_3, window_bounds = array<i64: 3, 384, 128>}, {pipeline_mode = #tpu.pipeline_mode<synchronous>, transform_indices = @transform_4, window_bounds = array<i64: 1, 128>}, {pipeline_mode = #tpu.pipeline_mode<synchronous>, transform_indices = @transform_5, window_bounds = array<i64: 3, 384, 128>}, {pipeline_mode = #tpu.pipeline_mode<synchronous>, transform_indices = @transform_6, window_bounds = array<i64: 1, 128>}, {pipeline_mode = #tpu.pipeline_mode<synchronous>, transform_indices = @transform_7, window_bounds = array<i64: 128, 128>}, {transform_indices = @transform_8, window_bounds = array<i64: 1, 8, 16, 128>}]} {
    %c8_i32 = arith.constant 8 : i32
    %0 = arith.muli %arg1, %c8_i32 : i32
    %c0 = arith.constant 0 : index
    %c0_0 = arith.constant 0 : index
    %c0_1 = arith.constant 0 : index
    %c0_2 = arith.constant 0 : index
    %1 = vector.load %arg2[%c0, %c0_0, %c0_1, %c0_2] : memref<1x14x17x128xbf16, #tpu.memory_space<vmem>>, vector<1x14x17x128xbf16>
    %2 = vector.shape_cast %1 : vector<1x14x17x128xbf16> to vector<14x17x128xbf16>
    %cst = arith.constant 0.000000e+00 : bf16
    %3 = vector.broadcast %cst : bf16 to vector<14x1x128xbf16>
    %4 = vector.extract_strided_slice %2 {offsets = [0, 0, 0], sizes = [14, 15, 128], strides = [1, 1, 1]} : vector<14x17x128xbf16> to vector<14x15x128xbf16>
    %5 = tpu.concatenate %3, %4 in 1 : vector<14x1x128xbf16>, vector<14x15x128xbf16> -> vector<14x16x128xbf16>
    %6 = vector.extract_strided_slice %2 {offsets = [0, 0, 0], sizes = [14, 16, 128], strides = [1, 1, 1]} : vector<14x17x128xbf16> to vector<14x16x128xbf16>
    %7 = vector.extract_strided_slice %2 {offsets = [0, 1, 0], sizes = [14, 16, 128], strides = [1, 1, 1]} : vector<14x17x128xbf16> to vector<14x16x128xbf16>
    %8 = tpu.concatenate %5, %6, %7 in 2 : vector<14x16x128xbf16>, vector<14x16x128xbf16>, vector<14x16x128xbf16> -> vector<14x16x384xbf16>
    %9 = vector.shape_cast %8 : vector<14x16x384xbf16> to vector<224x384xbf16>
    %c0_3 = arith.constant 0 : index
    %c0_4 = arith.constant 0 : index
    %10 = vector.load %arg4[%c0_3, %c0_4] : memref<1x128xf32, #tpu.memory_space<vmem>>, vector<1x128xf32>
    %11 = vector.shape_cast %10 : vector<1x128xf32> to vector<1x128xf32>
    %12 = vector.broadcast %11 : vector<1x128xf32> to vector<192x128xf32>
    %13 = vector.extract_strided_slice %9 {offsets = [0, 0], sizes = [192, 384], strides = [1, 1]} : vector<224x384xbf16> to vector<192x384xbf16>
    %c0_5 = arith.constant 0 : index
    %c0_6 = arith.constant 0 : index
    %c0_7 = arith.constant 0 : index
    %14 = vector.load %arg3[%c0_5, %c0_6, %c0_7] : memref<3x384x128xbf16, #tpu.memory_space<vmem>>, vector<1x384x128xbf16>
    %15 = vector.shape_cast %14 : vector<1x384x128xbf16> to vector<384x128xbf16>
    %cst_8 = arith.constant dense<0.000000e+00> : vector<192x128xf32>
    %16 = tpu.matmul %13, %15, %cst_8 {dimension_numbers = #tpu.dot_dimension_numbers<[1], [0], [0], [1], [0, 0, 1, 1], [], []>} : vector<192x384xbf16>, vector<384x128xbf16>, vector<192x128xf32> -> vector<192x128xf32>
    %17 = arith.addf %12, %16 : vector<192x128xf32>
    %18 = vector.extract_strided_slice %9 {offsets = [16, 0], sizes = [192, 384], strides = [1, 1]} : vector<224x384xbf16> to vector<192x384xbf16>
    %c1 = arith.constant 1 : index
    %c0_9 = arith.constant 0 : index
    %c0_10 = arith.constant 0 : index
    %19 = vector.load %arg3[%c1, %c0_9, %c0_10] : memref<3x384x128xbf16, #tpu.memory_space<vmem>>, vector<1x384x128xbf16>
    %20 = vector.shape_cast %19 : vector<1x384x128xbf16> to vector<384x128xbf16>
    %cst_11 = arith.constant dense<0.000000e+00> : vector<192x128xf32>
    %21 = tpu.matmul %18, %20, %cst_11 {dimension_numbers = #tpu.dot_dimension_numbers<[1], [0], [0], [1], [0, 0, 1, 1], [], []>} : vector<192x384xbf16>, vector<384x128xbf16>, vector<192x128xf32> -> vector<192x128xf32>
    %22 = arith.addf %17, %21 : vector<192x128xf32>
    %23 = vector.extract_strided_slice %9 {offsets = [32, 0], sizes = [192, 384], strides = [1, 1]} : vector<224x384xbf16> to vector<192x384xbf16>
    %c2 = arith.constant 2 : index
    %c0_12 = arith.constant 0 : index
    %c0_13 = arith.constant 0 : index
    %24 = vector.load %arg3[%c2, %c0_12, %c0_13] : memref<3x384x128xbf16, #tpu.memory_space<vmem>>, vector<1x384x128xbf16>
    %25 = vector.shape_cast %24 : vector<1x384x128xbf16> to vector<384x128xbf16>
    %cst_14 = arith.constant dense<0.000000e+00> : vector<192x128xf32>
    %26 = tpu.matmul %23, %25, %cst_14 {dimension_numbers = #tpu.dot_dimension_numbers<[1], [0], [0], [1], [0, 0, 1, 1], [], []>} : vector<192x384xbf16>, vector<384x128xbf16>, vector<192x128xf32> -> vector<192x128xf32>
    %27 = arith.addf %22, %26 : vector<192x128xf32>
    %cst_15 = arith.constant 0.000000e+00 : f32
    %28 = vector.broadcast %cst_15 : f32 to vector<192x128xf32>
    %29 = arith.maximumf %27, %28 : vector<192x128xf32>
    %30 = vector.shape_cast %29 : vector<192x128xf32> to vector<12x16x128xf32>
    %31 = tpu.iota {dimensions = array<i32: 0>} : vector<12x1x1xi32>
    %32 = vector.broadcast %0 : i32 to vector<12x1x1xi32>
    %33 = arith.addi %32, %31 : vector<12x1x1xi32>
    %c2_i32 = arith.constant 2 : i32
    %34 = vector.broadcast %c2_i32 : i32 to vector<12x1x1xi32>
    %35 = arith.subi %33, %34 : vector<12x1x1xi32>
    %c0_i32 = arith.constant 0 : i32
    %36 = vector.broadcast %c0_i32 : i32 to vector<12x1x1xi32>
    %37 = arith.cmpi sge, %35, %36 : vector<12x1x1xi32>
    %c16_i32 = arith.constant 16 : i32
    %38 = vector.broadcast %c16_i32 : i32 to vector<12x1x1xi32>
    %39 = arith.cmpi slt, %35, %38 : vector<12x1x1xi32>
    %40 = arith.andi %37, %39 : vector<12x1x1xi1>
    %41 = arith.extui %40 : vector<12x1x1xi1> to vector<12x1x1xi32>
    %42 = arith.sitofp %41 : vector<12x1x1xi32> to vector<12x1x1xf32>
    %43 = vector.broadcast %42 : vector<12x1x1xf32> to vector<12x16x128xf32>
    %44 = arith.mulf %30, %43 : vector<12x16x128xf32>
    %cst_16 = arith.constant 0.000000e+00 : bf16
    %45 = vector.broadcast %cst_16 : bf16 to vector<12x1x128xbf16>
    %c0_17 = arith.constant 0 : index
    %c16 = arith.constant 16 : index
    %c0_18 = arith.constant 0 : index
    %46 = vector.load %arg11[%c0_17, %c16, %c0_18] : memref<12x17x128xbf16, #tpu.memory_space<vmem>>, vector<12x1x128xbf16>
    tpu.vector_store %arg11[%c0_17, %c16, %c0_18], %45 {strides = array<i32>} : memref<12x17x128xbf16, #tpu.memory_space<vmem>>, vector<12x1x128xbf16>,
    %47 = arith.truncf %44 : vector<12x16x128xf32> to vector<12x16x128xbf16>
    %c0_19 = arith.constant 0 : index
    %c0_20 = arith.constant 0 : index
    %c0_21 = arith.constant 0 : index
    %48 = vector.load %arg11[%c0_19, %c0_20, %c0_21] : memref<12x17x128xbf16, #tpu.memory_space<vmem>>, vector<12x16x128xbf16>
    tpu.vector_store %arg11[%c0_19, %c0_20, %c0_21], %47 {strides = array<i32>} : memref<12x17x128xbf16, #tpu.memory_space<vmem>>, vector<12x16x128xbf16>,
    %c0_22 = arith.constant 0 : index
    %c0_23 = arith.constant 0 : index
    %c0_24 = arith.constant 0 : index
    %49 = vector.load %arg11[%c0_22, %c0_23, %c0_24] : memref<12x17x128xbf16, #tpu.memory_space<vmem>>, vector<12x17x128xbf16>
    %cst_25 = arith.constant 0.000000e+00 : bf16
    %50 = vector.broadcast %cst_25 : bf16 to vector<12x1x128xbf16>
    %51 = vector.extract_strided_slice %49 {offsets = [0, 0, 0], sizes = [12, 15, 128], strides = [1, 1, 1]} : vector<12x17x128xbf16> to vector<12x15x128xbf16>
    %52 = tpu.concatenate %50, %51 in 1 : vector<12x1x128xbf16>, vector<12x15x128xbf16> -> vector<12x16x128xbf16>
    %53 = vector.extract_strided_slice %49 {offsets = [0, 0, 0], sizes = [12, 16, 128], strides = [1, 1, 1]} : vector<12x17x128xbf16> to vector<12x16x128xbf16>
    %54 = vector.extract_strided_slice %49 {offsets = [0, 1, 0], sizes = [12, 16, 128], strides = [1, 1, 1]} : vector<12x17x128xbf16> to vector<12x16x128xbf16>
    %55 = tpu.concatenate %52, %53, %54 in 2 : vector<12x16x128xbf16>, vector<12x16x128xbf16>, vector<12x16x128xbf16> -> vector<12x16x384xbf16>
    %56 = vector.shape_cast %55 : vector<12x16x384xbf16> to vector<192x384xbf16>
    %c0_26 = arith.constant 0 : index
    %c0_27 = arith.constant 0 : index
    %57 = vector.load %arg6[%c0_26, %c0_27] : memref<1x128xf32, #tpu.memory_space<vmem>>, vector<1x128xf32>
    %58 = vector.shape_cast %57 : vector<1x128xf32> to vector<1x128xf32>
    %59 = vector.broadcast %58 : vector<1x128xf32> to vector<160x128xf32>
    %60 = vector.extract_strided_slice %56 {offsets = [0, 0], sizes = [160, 384], strides = [1, 1]} : vector<192x384xbf16> to vector<160x384xbf16>
    %c0_28 = arith.constant 0 : index
    %c0_29 = arith.constant 0 : index
    %c0_30 = arith.constant 0 : index
    %61 = vector.load %arg5[%c0_28, %c0_29, %c0_30] : memref<3x384x128xbf16, #tpu.memory_space<vmem>>, vector<1x384x128xbf16>
    %62 = vector.shape_cast %61 : vector<1x384x128xbf16> to vector<384x128xbf16>
    %cst_31 = arith.constant dense<0.000000e+00> : vector<160x128xf32>
    %63 = tpu.matmul %60, %62, %cst_31 {dimension_numbers = #tpu.dot_dimension_numbers<[1], [0], [0], [1], [0, 0, 1, 1], [], []>} : vector<160x384xbf16>, vector<384x128xbf16>, vector<160x128xf32> -> vector<160x128xf32>
    %64 = arith.addf %59, %63 : vector<160x128xf32>
    %65 = vector.extract_strided_slice %56 {offsets = [16, 0], sizes = [160, 384], strides = [1, 1]} : vector<192x384xbf16> to vector<160x384xbf16>
    %c1_32 = arith.constant 1 : index
    %c0_33 = arith.constant 0 : index
    %c0_34 = arith.constant 0 : index
    %66 = vector.load %arg5[%c1_32, %c0_33, %c0_34] : memref<3x384x128xbf16, #tpu.memory_space<vmem>>, vector<1x384x128xbf16>
    %67 = vector.shape_cast %66 : vector<1x384x128xbf16> to vector<384x128xbf16>
    %cst_35 = arith.constant dense<0.000000e+00> : vector<160x128xf32>
    %68 = tpu.matmul %65, %67, %cst_35 {dimension_numbers = #tpu.dot_dimension_numbers<[1], [0], [0], [1], [0, 0, 1, 1], [], []>} : vector<160x384xbf16>, vector<384x128xbf16>, vector<160x128xf32> -> vector<160x128xf32>
    %69 = arith.addf %64, %68 : vector<160x128xf32>
    %70 = vector.extract_strided_slice %56 {offsets = [32, 0], sizes = [160, 384], strides = [1, 1]} : vector<192x384xbf16> to vector<160x384xbf16>
    %c2_36 = arith.constant 2 : index
    %c0_37 = arith.constant 0 : index
    %c0_38 = arith.constant 0 : index
    %71 = vector.load %arg5[%c2_36, %c0_37, %c0_38] : memref<3x384x128xbf16, #tpu.memory_space<vmem>>, vector<1x384x128xbf16>
    %72 = vector.shape_cast %71 : vector<1x384x128xbf16> to vector<384x128xbf16>
    %cst_39 = arith.constant dense<0.000000e+00> : vector<160x128xf32>
    %73 = tpu.matmul %70, %72, %cst_39 {dimension_numbers = #tpu.dot_dimension_numbers<[1], [0], [0], [1], [0, 0, 1, 1], [], []>} : vector<160x384xbf16>, vector<384x128xbf16>, vector<160x128xf32> -> vector<160x128xf32>
    %74 = arith.addf %69, %73 : vector<160x128xf32>
    %cst_40 = arith.constant 0.000000e+00 : f32
    %75 = vector.broadcast %cst_40 : f32 to vector<160x128xf32>
    %76 = arith.maximumf %74, %75 : vector<160x128xf32>
    %77 = vector.shape_cast %76 : vector<160x128xf32> to vector<10x16x128xf32>
    %78 = tpu.iota {dimensions = array<i32: 0>} : vector<10x1x1xi32>
    %79 = vector.broadcast %0 : i32 to vector<10x1x1xi32>
    %80 = arith.addi %79, %78 : vector<10x1x1xi32>
    %c1_i32 = arith.constant 1 : i32
    %81 = vector.broadcast %c1_i32 : i32 to vector<10x1x1xi32>
    %82 = arith.subi %80, %81 : vector<10x1x1xi32>
    %c0_i32_41 = arith.constant 0 : i32
    %83 = vector.broadcast %c0_i32_41 : i32 to vector<10x1x1xi32>
    %84 = arith.cmpi sge, %82, %83 : vector<10x1x1xi32>
    %c16_i32_42 = arith.constant 16 : i32
    %85 = vector.broadcast %c16_i32_42 : i32 to vector<10x1x1xi32>
    %86 = arith.cmpi slt, %82, %85 : vector<10x1x1xi32>
    %87 = arith.andi %84, %86 : vector<10x1x1xi1>
    %88 = arith.extui %87 : vector<10x1x1xi1> to vector<10x1x1xi32>
    %89 = arith.sitofp %88 : vector<10x1x1xi32> to vector<10x1x1xf32>
    %90 = vector.broadcast %89 : vector<10x1x1xf32> to vector<10x16x128xf32>
    %91 = arith.mulf %77, %90 : vector<10x16x128xf32>
    %cst_43 = arith.constant 0.000000e+00 : bf16
    %92 = vector.broadcast %cst_43 : bf16 to vector<10x1x128xbf16>
    %c0_44 = arith.constant 0 : index
    %c16_45 = arith.constant 16 : index
    %c0_46 = arith.constant 0 : index
    %93 = vector.load %arg12[%c0_44, %c16_45, %c0_46] : memref<10x17x128xbf16, #tpu.memory_space<vmem>>, vector<10x1x128xbf16>
    tpu.vector_store %arg12[%c0_44, %c16_45, %c0_46], %92 {strides = array<i32>} : memref<10x17x128xbf16, #tpu.memory_space<vmem>>, vector<10x1x128xbf16>,
    %94 = arith.truncf %91 : vector<10x16x128xf32> to vector<10x16x128xbf16>
    %c0_47 = arith.constant 0 : index
    %c0_48 = arith.constant 0 : index
    %c0_49 = arith.constant 0 : index
    %95 = vector.load %arg12[%c0_47, %c0_48, %c0_49] : memref<10x17x128xbf16, #tpu.memory_space<vmem>>, vector<10x16x128xbf16>
    tpu.vector_store %arg12[%c0_47, %c0_48, %c0_49], %94 {strides = array<i32>} : memref<10x17x128xbf16, #tpu.memory_space<vmem>>, vector<10x16x128xbf16>,
    %c0_50 = arith.constant 0 : index
    %c0_51 = arith.constant 0 : index
    %c0_52 = arith.constant 0 : index
    %96 = vector.load %arg12[%c0_50, %c0_51, %c0_52] : memref<10x17x128xbf16, #tpu.memory_space<vmem>>, vector<10x17x128xbf16>
    %cst_53 = arith.constant 0.000000e+00 : bf16
    %97 = vector.broadcast %cst_53 : bf16 to vector<10x1x128xbf16>
    %98 = vector.extract_strided_slice %96 {offsets = [0, 0, 0], sizes = [10, 15, 128], strides = [1, 1, 1]} : vector<10x17x128xbf16> to vector<10x15x128xbf16>
    %99 = tpu.concatenate %97, %98 in 1 : vector<10x1x128xbf16>, vector<10x15x128xbf16> -> vector<10x16x128xbf16>
    %100 = vector.extract_strided_slice %96 {offsets = [0, 0, 0], sizes = [10, 16, 128], strides = [1, 1, 1]} : vector<10x17x128xbf16> to vector<10x16x128xbf16>
    %101 = vector.extract_strided_slice %96 {offsets = [0, 1, 0], sizes = [10, 16, 128], strides = [1, 1, 1]} : vector<10x17x128xbf16> to vector<10x16x128xbf16>
    %102 = tpu.concatenate %99, %100, %101 in 2 : vector<10x16x128xbf16>, vector<10x16x128xbf16>, vector<10x16x128xbf16> -> vector<10x16x384xbf16>
    %103 = vector.shape_cast %102 : vector<10x16x384xbf16> to vector<160x384xbf16>
    %c0_54 = arith.constant 0 : index
    %c0_55 = arith.constant 0 : index
    %104 = vector.load %arg8[%c0_54, %c0_55] : memref<1x128xf32, #tpu.memory_space<vmem>>, vector<1x128xf32>
    %105 = vector.shape_cast %104 : vector<1x128xf32> to vector<1x128xf32>
    %106 = vector.broadcast %105 : vector<1x128xf32> to vector<128x128xf32>
    %107 = vector.extract_strided_slice %103 {offsets = [0, 0], sizes = [128, 384], strides = [1, 1]} : vector<160x384xbf16> to vector<128x384xbf16>
    %c0_56 = arith.constant 0 : index
    %c0_57 = arith.constant 0 : index
    %c0_58 = arith.constant 0 : index
    %108 = vector.load %arg7[%c0_56, %c0_57, %c0_58] : memref<3x384x128xbf16, #tpu.memory_space<vmem>>, vector<1x384x128xbf16>
    %109 = vector.shape_cast %108 : vector<1x384x128xbf16> to vector<384x128xbf16>
    %cst_59 = arith.constant dense<0.000000e+00> : vector<128x128xf32>
    %110 = tpu.matmul %107, %109, %cst_59 {dimension_numbers = #tpu.dot_dimension_numbers<[1], [0], [0], [1], [0, 0, 1, 1], [], []>} : vector<128x384xbf16>, vector<384x128xbf16>, vector<128x128xf32> -> vector<128x128xf32>
    %111 = arith.addf %106, %110 : vector<128x128xf32>
    %112 = vector.extract_strided_slice %103 {offsets = [16, 0], sizes = [128, 384], strides = [1, 1]} : vector<160x384xbf16> to vector<128x384xbf16>
    %c1_60 = arith.constant 1 : index
    %c0_61 = arith.constant 0 : index
    %c0_62 = arith.constant 0 : index
    %113 = vector.load %arg7[%c1_60, %c0_61, %c0_62] : memref<3x384x128xbf16, #tpu.memory_space<vmem>>, vector<1x384x128xbf16>
    %114 = vector.shape_cast %113 : vector<1x384x128xbf16> to vector<384x128xbf16>
    %cst_63 = arith.constant dense<0.000000e+00> : vector<128x128xf32>
    %115 = tpu.matmul %112, %114, %cst_63 {dimension_numbers = #tpu.dot_dimension_numbers<[1], [0], [0], [1], [0, 0, 1, 1], [], []>} : vector<128x384xbf16>, vector<384x128xbf16>, vector<128x128xf32> -> vector<128x128xf32>
    %116 = arith.addf %111, %115 : vector<128x128xf32>
    %117 = vector.extract_strided_slice %103 {offsets = [32, 0], sizes = [128, 384], strides = [1, 1]} : vector<160x384xbf16> to vector<128x384xbf16>
    %c2_64 = arith.constant 2 : index
    %c0_65 = arith.constant 0 : index
    %c0_66 = arith.constant 0 : index
    %118 = vector.load %arg7[%c2_64, %c0_65, %c0_66] : memref<3x384x128xbf16, #tpu.memory_space<vmem>>, vector<1x384x128xbf16>
    %119 = vector.shape_cast %118 : vector<1x384x128xbf16> to vector<384x128xbf16>
    %cst_67 = arith.constant dense<0.000000e+00> : vector<128x128xf32>
    %120 = tpu.matmul %117, %119, %cst_67 {dimension_numbers = #tpu.dot_dimension_numbers<[1], [0], [0], [1], [0, 0, 1, 1], [], []>} : vector<128x384xbf16>, vector<384x128xbf16>, vector<128x128xf32> -> vector<128x128xf32>
    %121 = arith.addf %116, %120 : vector<128x128xf32>
    %122 = vector.extract_strided_slice %2 {offsets = [3, 0, 0], sizes = [8, 16, 128], strides = [1, 1, 1]} : vector<14x17x128xbf16> to vector<8x16x128xbf16>
    %123 = vector.shape_cast %122 : vector<8x16x128xbf16> to vector<128x128xbf16>
    %c0_68 = arith.constant 0 : index
    %c0_69 = arith.constant 0 : index
    %124 = vector.load %arg9[%c0_68, %c0_69] : memref<128x128xbf16, #tpu.memory_space<vmem>>, vector<128x128xbf16>
    %cst_70 = arith.constant dense<0.000000e+00> : vector<128x128xf32>
    %125 = tpu.matmul %123, %124, %cst_70 {dimension_numbers = #tpu.dot_dimension_numbers<[1], [0], [0], [1], [0, 0, 1, 1], [], []>} : vector<128x128xbf16>, vector<128x128xbf16>, vector<128x128xf32> -> vector<128x128xf32>
    %126 = arith.addf %121, %125 : vector<128x128xf32>
    %cst_71 = arith.constant 0.000000e+00 : f32
    %127 = vector.broadcast %cst_71 : f32 to vector<128x128xf32>
    %128 = arith.maximumf %126, %127 : vector<128x128xf32>
    %129 = vector.shape_cast %128 : vector<128x128xf32> to vector<1x8x16x128xf32>
    %c0_72 = arith.constant 0 : index
    %c0_73 = arith.constant 0 : index
    %c0_74 = arith.constant 0 : index
    %c0_75 = arith.constant 0 : index
    %130 = vector.load %arg10[%c0_72, %c0_73, %c0_74, %c0_75] : memref<1x8x16x128xf32, #tpu.memory_space<vmem>>, vector<1x8x16x128xf32>
    tpu.vector_store %arg10[%c0_72, %c0_73, %c0_74, %c0_75], %129 {strides = array<i32>} : memref<1x8x16x128xf32, #tpu.memory_space<vmem>>, vector<1x8x16x128xf32>,
    return
  }
  func.func @transform_0(%arg0: i32, %arg1: i32) -> (i32, i32, i32, i32) {
    %c2_i32 = arith.constant 2 : i32
    %0 = arith.muli %arg0, %c2_i32 : i32
    %1 = arith.addi %0, %arg1 : i32
    %c0_i32 = arith.constant 0 : i32
    %c0_i32_0 = arith.constant 0 : i32
    %c0_i32_1 = arith.constant 0 : i32
    %c0_i32_2 = arith.constant 0 : i32
    return %1, %c0_i32, %c0_i32_0, %c0_i32_1 : i32, i32, i32, i32
  }
  func.func @transform_1(%arg0: i32, %arg1: i32) -> (i32, i32, i32) {
    %c0_i32 = arith.constant 0 : i32
    %c0_i32_0 = arith.constant 0 : i32
    %c0_i32_1 = arith.constant 0 : i32
    %c0_i32_2 = arith.constant 0 : i32
    return %c0_i32, %c0_i32_0, %c0_i32_1 : i32, i32, i32
  }
  func.func @transform_2(%arg0: i32, %arg1: i32) -> (i32, i32) {
    %c0_i32 = arith.constant 0 : i32
    %c0_i32_0 = arith.constant 0 : i32
    %c0_i32_1 = arith.constant 0 : i32
    return %c0_i32, %c0_i32_0 : i32, i32
  }
  func.func @transform_3(%arg0: i32, %arg1: i32) -> (i32, i32, i32) {
    %c0_i32 = arith.constant 0 : i32
    %c0_i32_0 = arith.constant 0 : i32
    %c0_i32_1 = arith.constant 0 : i32
    %c0_i32_2 = arith.constant 0 : i32
    return %c0_i32, %c0_i32_0, %c0_i32_1 : i32, i32, i32
  }
  func.func @transform_4(%arg0: i32, %arg1: i32) -> (i32, i32) {
    %c0_i32 = arith.constant 0 : i32
    %c0_i32_0 = arith.constant 0 : i32
    %c0_i32_1 = arith.constant 0 : i32
    return %c0_i32, %c0_i32_0 : i32, i32
  }
  func.func @transform_5(%arg0: i32, %arg1: i32) -> (i32, i32, i32) {
    %c0_i32 = arith.constant 0 : i32
    %c0_i32_0 = arith.constant 0 : i32
    %c0_i32_1 = arith.constant 0 : i32
    %c0_i32_2 = arith.constant 0 : i32
    return %c0_i32, %c0_i32_0, %c0_i32_1 : i32, i32, i32
  }
  func.func @transform_6(%arg0: i32, %arg1: i32) -> (i32, i32) {
    %c0_i32 = arith.constant 0 : i32
    %c0_i32_0 = arith.constant 0 : i32
    %c0_i32_1 = arith.constant 0 : i32
    return %c0_i32, %c0_i32_0 : i32, i32
  }
  func.func @transform_7(%arg0: i32, %arg1: i32) -> (i32, i32) {
    %c0_i32 = arith.constant 0 : i32
    %c0_i32_0 = arith.constant 0 : i32
    %c0_i32_1 = arith.constant 0 : i32
    return %c0_i32, %c0_i32_0 : i32, i32
  }
  func.func @transform_8(%arg0: i32, %arg1: i32) -> (i32, i32, i32, i32) {
    %c2_i32 = arith.constant 2 : i32
    %0 = arith.muli %arg0, %c2_i32 : i32
    %1 = arith.addi %0, %arg1 : i32
    %c0_i32 = arith.constant 0 : i32
    %c0_i32_0 = arith.constant 0 : i32
    %c0_i32_1 = arith.constant 0 : i32
    %c0_i32_2 = arith.constant 0 : i32
    return %1, %c0_i32, %c0_i32_0, %c0_i32_1 : i32, i32, i32, i32
  }
}

</mosaic_0001>

<bundles_post_ra>
// kernel: tpu_custom_call.1
= control target key start
LH: loop header
LB: loop body
LE: loop exit
PB: predicated region body
PF: predicated region fallthrough
CT: control target
= control target key end

     0   :  { %13 = vsyncpa [#allocation5], 0  ;;  %s11428_s0 = inlined_call_operand.vmem [shape: bf16[4,14,17,128], index: 0, kind: input, shape index: {}]   ;;  %s11429_s1 = inlined_call_operand.vmem [shape: bf16[3,384,128], index: 1, kind: input, shape index: {}]   ;;  %s11430_s2 = inlined_call_operand.vmem [shape: f32[1,128], index: 2, kind: input, shape index: {}]   ;;  %s11431_s3 = inlined_call_operand.vmem [shape: bf16[3,384,128], index: 3, kind: input, shape index: {}]   ;;  %s11432_s4 = inlined_call_operand.vmem [shape: f32[1,128], index: 4, kind: input, shape index: {}]   ;;  %s11433_s5 = inlined_call_operand.hbm [shape: bf16[3,384,128], index: 5, kind: input, shape index: {}]   ;;  %s11434_s6 = inlined_call_operand.vmem [shape: f32[1,128], index: 6, kind: input, shape index: {}]   ;;  %s11435_s7 = inlined_call_operand.hbm [shape: bf16[128,128], index: 7, kind: input, shape index: {}]   ;;  %s11436_s8 = inlined_call_operand.hbm [shape: f32[4,8,16,128], index: 8, kind: output, shape index: {}]  }
   0x1   :  { %14 = vsyncpa [#allocation8], 0 }
   0x2   :  { %15 = vsyncpa [#allocation6], 0 }
   0x3   :  { %17 = vsyncpa [#allocation6 + $0x1], 0  ;;  %s9157_s27 = smov 0   ;;  %s9159_s28 = smov 0  }
   0x4   :  { %s9161_s29 = smov 0   ;;  %s9163_s30 = smov 0  }
   0x5   :  { %s9165_s9 = smov 0   ;;  %s9167_s10 = smov 0  }
   0x6   :  { %s9169_s11 = smov 0   ;;  %s9171_s12 = smov 0  }
   0x7 LB: > { %11449 = sst [smem:[#allocation13_spill]] %s9074_s27  ;;  %s6218_s13 = sadd.s32 4294967295, %s9102_s12   ;;  %s9102_s12 = sphi %s9171_s12, %s23_s12   ;;  %s9098_s11 = sphi %s9169_s11, %s11513_s11   ;;  %s9094_s10 = sphi %s9167_s10, %s11512_s10   ;;  %s9090_s9 = sphi %s9165_s9, %s11511_s9   ;;  %s9086_s30 = sphi %s9163_s30, %s11510_s30   ;;  %s9082_s29 = sphi %s9161_s29, %s11509_s29   ;;  %s9078_s28 = sphi %s9159_s28, %s11515_s28   ;;  %s9074_s27 = sphi %s9157_s27, %s11514_s27  }
   0x8   : > { %11450 = sst [smem:[#allocation14_spill]] %s9082_s29  ;;  %s6219_s14 = sadd.s32 4294967294, %s9102_s12  }
   0x9   : > { %11451 = sst [smem:[#allocation15_spill]] %s9094_s10  ;;  %s32_s15 = sadd.s32 1, %s9094_s10 }
   0xa   : > { %11452 = sst [smem:[#allocation16_spill]] %s9098_s11  ;;  %s35_s16 = sadd.s32 1, %s9098_s11 }
   0xb   : > { %p33_p0 = scmp.ge.s32.totalorder %s32_s15, 2  ;;  %s6222_s17 = sshll.u32 %s9098_s11, 1 }
   0xc   : > { %s217_s18 = sadd.s32 %s9094_s10, %s6222_s17  ;;  %s223_s19 = sadd.s32 1, %s9082_s29 }
   0xd   : > { %s11517_s15 = smov (%p33_p0, %s32_s15), 0  ;;  %s11519_s16 = smov (!%p33_p0, %s35_s16), %s9098_s11 }
   0xe   : > { %11453 = sst [smem:[#allocation17_spill]] %s11517_s15  ;;  %p233_p1 = scmp.ne.s32.totalorder %s9082_s29, %s9078_s28 }
   0xf   : > { %p234_p2 = scmp.eq.s32.totalorder %s6218_s13, 3  ;;  %p37_p3 = scmp.ge.s32.totalorder %s11519_s16, 2 }
  0x10   : > { %p239_p4 = scmp.ne.s32.totalorder %s9078_s28, %s9074_s27  ;;  %p240_p6 = scmp.eq.s32.totalorder %s6219_s14, 3 }
  0x11   : > { %p9211_p5 = por %p234_p2, %p233_p1  ;;  %s11521_s16 = smov (%p37_p3, %s11519_s16), 0 }
  0x12   : > { %11455 = sst [smem:[#allocation18_spill]] %s11521_s16  ;;  %p9217_p7 = por %p240_p6, %p239_p4 }
  0x13   : > { %s11454_s20 = scalar_select %p9211_p5, 1, 0 }
  0x14   : > { %s11456_s21 = scalar_select %p9217_p7, 1, 0 }
  0x15   : > { %p6224_p8 = scmp.ge.s32.totalorder %s9102_s12, 1  ;;  %s6223_s22 = sshll.u32 %s11521_s16, 1 }
  0x16   : > { %11457 = sst [smem:[#allocation19_spill]] %s11456_s21  ;;  %p247_p9 = scmp.lt.s32.totalorder %s9102_s12, 5 }
  0x17   : > { %s219_s23 = sadd.s32 %s6223_s22, %s11517_s15  ;;  %p9229_p12 = scmp.eq.s32.totalorder %s6218_s13, 0 }
  0x18   : > { %s220_s24 = ssub.s32 %s217_s18, %s219_s23  ;;  %p9225_p10 = pnand %p6224_p8, %p247_p9 }
  0x19   : > { %p221_p11 = scmp.eq.s32.totalorder %s220_s24, 0  ;;  %s9104_s17 = smov [#allocation4]  }
  0x1a   : > { %s11458_s25 = scalar_select %p9225_p10, 1, 0 }
  0x1b   : > { %s11459_s26 = scalar_select %p9229_p12, 1, 0 }
  0x1c   : > { %p8547_p13 = pneg %p9225_p10  ;;  %s271_s16 = sshll.u32 %s9104_s17, 4  ;;  %s272_s16 = int_to_ptr.vmem [resolvable:$true] %s271_s16 }
  0x1d   : > { %s9236_s14 = scalar_select %p221_p11, %s9082_s29, %s223_s19  }
  0x1e   : > { %p9240_p0 = pnand %p9229_p12, %p8547_p13  ;;  %s8944_s23 = scalar_lea.hbm %s11433_s5, 9216 }
  0x1f   : > { %11460 = sst [smem:[#allocation20_spill]] %s9236_s14  ;;  %p8945_p1 = scmp.ne.s32.totalorder %s11433_s5, %s8944_s23 }
  0x20   : > { %p8946_p2 = pneg %p9240_p0  ;;  %p8951_p6 = scmp.lt.u32.totalorder %s8944_s23, %s11433_s5 }
  0x22   : > { %p8947_p3 = pnand %p8946_p2, %p8945_p1 }
  0x24   : > { %p8948_p4 = pneg %p8947_p3 }
  0x26   : > { %p8953_p8 = pnand %p8951_p6, %p8948_p4 }
  0x28   : > { %8956 = shalt.err (!%p8953_p8)
}
  0x29   : > { %s8957_s11 = scalar_lea.vmem %s272_s16, 9216  ;;  %p8965_p7 = scmp.lt.s32.totalorder %s272_s16, %s272_s16 }
  0x2a   : > { %p8958_p9 = scmp.ne.s32.totalorder %s272_s16, %s8957_s11  ;;  %p8966_p5 = scmp.lt.s32.totalorder %s8957_s11, %s8957_s11 }
  0x2c   : > { %p8960_p11 = pnand %p8958_p9, %p8946_p2  ;;  %p8967_p12 = por %p8966_p5, %p8965_p7 }
  0x2e   : > { %p8961_p13 = pneg %p8960_p11 }
  0x30   : > { %p8968_p10 = pnand %p8967_p12, %p8961_p13 }
  0x32   : > { %8971 = shalt.err (!%p8968_p10)
}
  0x33   : > { %s9105_s15 = smov 64   ;;  %s9106_s22 = smov 4  }
  0x34   : > { %8550 = dma.hbm_to_vmem [thread:$0]  (!%p9240_p0), %s11433_s5, 9216, %s272_s16, [#allocation5], %s9105_s15, %s9105_s15, %s9106_s22  }
  0x35   : > { %s9107_s24 = smov [#allocation7]   ;;  %s8972_s14 = scalar_lea.hbm %s11435_s7, 1024 }
  0x36   : > { %s287_s19 = sshll.u32 %s9107_s24, 4  ;;  %p8973_p5 = scmp.ne.s32.totalorder %s11435_s7, %s8972_s14  ;;  %s288_s19 = int_to_ptr.vmem [resolvable:$true] %s287_s19 }
  0x37   : > { %p8979_p12 = scmp.lt.u32.totalorder %s8972_s14, %s11435_s7 }
  0x38   : > { %p8975_p7 = pnand %p8973_p5, %p8946_p2 }
  0x3a   : > { %p8976_p10 = pneg %p8975_p7 }
  0x3c   : > { %p8981_p1 = pnand %p8979_p12, %p8976_p10 }
  0x3e   : > { %8984 = shalt.err (!%p8981_p1)
}
  0x3f   : > { %s8985_s16 = scalar_lea.vmem %s288_s19, 1024  ;;  %p8993_p8 = scmp.lt.s32.totalorder %s288_s19, %s288_s19 }
  0x40   : > { %p8986_p3 = scmp.ne.s32.totalorder %s288_s19, %s8985_s16  ;;  %p8994_p9 = scmp.lt.s32.totalorder %s8985_s16, %s8985_s16 }
  0x42   : > { %p8988_p4 = pnand %p8986_p3, %p8946_p2  ;;  %p8995_p11 = por %p8994_p9, %p8993_p8 }
  0x44   : > { %p8989_p6 = pneg %p8988_p4 }
  0x46   : > { %p8996_p13 = pnand %p8995_p11, %p8989_p6 }
  0x48   : > { %8999 = shalt.err (!%p8996_p13)
}
  0x49   : > { %8553 = dma.hbm_to_vmem [thread:$0]  (!%p9240_p0), %s11435_s7, 1024, %s288_s19, [#allocation8], %s9105_s15, %s9105_s15, %s9106_s22  }
  0x4a   : > { %p11462_p5 = scmp.ne.s32.totalorder %s11458_s25, 0 }
  0x4b   : > { %p11463_p7 = scmp.ne.s32.totalorder (!%p11462_p5), %s11459_s26, 0 }
  0x4c   : > { %315 = sbr.rel (%p11462_p5) target bundleno = 1480 (0x5c8), region = 52 }
  0x53   : > { %9061 = dma.done.wait (%p11463_p7), [#allocation5], 9216  }
  0x54   : > { %9063 = vsyncadd (%p11463_p7), [#allocation5], 4294958080 }
  0x55   : > { %9065 = dma.done.wait (%p11463_p7), [#allocation8], 1024  }
  0x56   : > { %9067 = vsyncadd (%p11463_p7), [#allocation8], 4294966272  ;;  %s6232_s27 = sshll.u32 %s9090_s9, 1  ;;  %v8634_v0 = vld [vmem:[%s11429_s1 + $0x40] sm:$0xff]   ;;  %v8636_v2 = vld [vmem:[%s11429_s1 + $0x48] sm:$0xff]   ;;  %vm592_vm0 = vcmask 1040384  }
  0x57   : > { %s9298_s21 = sadd.s32 %s9086_s30, %s6232_s27  ;;  %v8635_v1 = vld [vmem:[%s11429_s1] sm:$0xff]   ;;  %8144 = vmatprep.subr.bf16.mxu1 %v8634_v0  ;;  %6926 = vmatprep.subr.bf16.mxu0 %v8634_v0  ;;  %v8637_v3 = vld [vmem:[%s11429_s1 + $0x8] sm:$0xff]   ;;  %v8638_v4 = vld [vmem:[%s11429_s1 + $0x50] sm:$0xff]   ;;  %vm593_vm1 = vsmask.f32 256  ;;  %p11504_p10 = scmp.ne.s32.totalorder %s11454_s20, 0 }
  0x58   : > { %p357_p0 = scmp.lt.s32.totalorder %s9298_s21, 3  ;;  %8152 = vmatpush3.bf16.msra.mxu1 %v8635_v1  ;;  %6927 = vmatpush3.bf16.msra.mxu0 %v8635_v1  ;;  %v8639_v5 = vld [vmem:[%s11429_s1 + $0x10] sm:$0xff]   ;;  %v8640_v6 = vld [vmem:[%s11429_s1 + $0x58] sm:$0xff]   ;;  %v8642_v8 = vld [vmem:[%s11429_s1 + $0x60] sm:$0xff]   ;;  %vm11448_vm3 = vsmask.f32 7424 }
  0x59   : > { %8145 = vmatprep.subr.bf16.mxu1 %v8636_v2  ;;  %6928 = vmatprep.subr.bf16.mxu0 %v8636_v2  ;;  %v8641_v7 = vld [vmem:[%s11429_s1 + $0x18] sm:$0xff]   ;;  %v8643_v9 = vld [vmem:[%s11429_s1 + $0x20] sm:$0xff]   ;;  %v8644_v10 = vld [vmem:[%s11429_s1 + $0x68] sm:$0xff]   ;;  %s6861_s13 = sshll.u32 %s9298_s21, 11  ;;  %s9109_s11 = smov [#allocation9]  }
  0x5a   : > { %s358_s19 = scalar_select %p357_p0, %s9298_s21, 3  ;;  %v8645_v14 = vld [vmem:[%s11429_s1 + $0x28] sm:$0xff]   ;;  %v8646_v15 = vld [vmem:[%s11429_s1 + $0x70] sm:$0xff]   ;;  %v8648_v21 = vld [vmem:[%s11429_s1 + $0x78] sm:$0xff]  }
  0x5b   : > { %v8647_v17 = vld [vmem:[%s11429_s1 + $0x30] sm:$0xff]   ;;  %v8649_v22 = vld [vmem:[%s11429_s1 + $0x38] sm:$0xff]   ;;  %vm9367_vm2 = vmand %vm592_vm0, %vm593_vm1  ;;  %s9004_s16 = sshll.u32 %s9109_s11, 4  ;;  %s9005_s16 = int_to_ptr.vmem [resolvable:$false] %s9004_s16 }
  0x5c   : > { %8153 = vmatpush3.bf16.msra.mxu1 %v8637_v3  ;;  %6929 = vmatpush3.bf16.msra.mxu0 %v8637_v3  ;;  %s8536_s10 = smul.u32 168, %s358_s19  ;;  %v8651_v26 = vld [vmem:[%s11429_s1 + $0x80] sm:$0xff]   ;;  %v8652_v31 = vld [vmem:[%s11429_s1 + $0x88] sm:$0xff]   ;;  %v8654_v36 = vld [vmem:[%s11429_s1 + $0x90] sm:$0xff]   ;;  %s6234_s19 = sshll.u32 %s9086_s30, 3 }
  0x5d   : > { %8146 = vmatprep.subr.bf16.mxu1 %v8638_v4  ;;  %6930 = vmatprep.subr.bf16.mxu0 %v8638_v4  ;;  %v8656_v40 = vld [vmem:[%s11429_s1 + $0x98] sm:$0xff]   ;;  %v8658_v49 = vld [vmem:[%s11429_s1 + $0xa0] sm:$0xff]   ;;  %v8659_v60 = vld [vmem:[%s11429_s1 + $0xa8] sm:$0xff]   ;;  %s11367_s30 = scalar_lea.hbm %s11436_s8, %s6861_s13  ;;  %s9006_s29 = scalar_lea.vmem %s9005_s16, 4096 }
  0x5e   : > { %s9332_s26 = scalar_lea.vmem %s11428_s0, %s8536_s10  ;;  %v8661_v3 = vld [vmem:[%s11429_s1 + $0xb0] sm:$0xff]   ;;  %v8925_v25 = vld [vmem:[#allocation7 + $0x20] sm:$0xff]  }
  0x5f   : > { %v9341_v11 = vld [vmem:[%s9332_s26 + $0x48] sm:$0xff]   ;;  %v9356_v19 = vld [vmem:[%s9332_s26 + $0x54] sm:$0xff]   ;;  %v9375_v27 = vld [vmem:[%s9332_s26 + $0x60] sm:$0xff]  }
  0x60   : > { %8154 = vmatpush3.bf16.msra.mxu1 %v8639_v5  ;;  %6931 = vmatpush3.bf16.msra.mxu0 %v8639_v5  ;;  %v523_v12 = vshrl.u32 %v9341_v11, 16  ;;  %v526_v13 = vshll.u32 %v9341_v11, 16  ;;  %v530_v24 = vshrl.u32 %v9356_v19, 16  ;;  %v533_v30 = vshll.u32 %v9356_v19, 16  ;;  %v9388_v32 = vld [vmem:[%s9332_s26] sm:$0xff]   ;;  %v9401_v37 = vld [vmem:[%s9332_s26 + $0x6c] sm:$0xff]  }
  0x61   : > { %8147 = vmatprep.subr.bf16.mxu1 %v8640_v6  ;;  %6932 = vmatprep.subr.bf16.mxu0 %v8640_v6  ;;  %v537_v33 = vshrl.u32 %v9375_v27, 16  ;;  %v481_v35 = vshrl.u32 %v9388_v32, 16  ;;  %v540_v39 = vshll.u32 %v9375_v27, 16  ;;  %v484_v42 = vshll.u32 %v9388_v32, 16  ;;  %v9415_v43 = vld [vmem:[%s9332_s26 + $0xc] sm:$0xff]   ;;  %v9436_v53 = vld [vmem:[%s9332_s26 + $0x18] sm:$0xff]  }
  0x62   : > { %1057 = vmatprep.mubr.bf16.mxu1 %v9341_v11  ;;  %v708_v16 = vrot.slane %v526_v13, 1  ;;  %v525_v18 = vrot.slane %v523_v12, 7  ;;  %v532_v29 = vrot.slane %v530_v24, 7  ;;  %1009 = vmatprep.mubr.bf16.mxu0 %v9388_v32  ;;  %v544_v46 = vshrl.u32 %v9401_v37, 16  ;;  %v9443_v56 = vld [vmem:[%s9332_s26 + $0x78] sm:$0xff]   ;;  %v9464_v0 = vld [vmem:[%s9332_s26 + $0x84] sm:$0xff]  }
  0x63   : > { %v539_v38 = vrot.slane %v537_v33, 7  ;;  %v483_v44 = vrot.slane %v481_v35, 7  ;;  %v488_v47 = vshrl.u32 %v9415_v43, 16  ;;  %v491_v51 = vshll.u32 %v9415_v43, 16  ;;  %v9474_v4 = vld [vmem:[%s9332_s26 + $0x24] sm:$0xff]  }
  0x64   : > { %8155 = vmatpush3.bf16.msra.mxu1 %v8641_v7  ;;  %6933 = vmatpush3.bf16.msra.mxu0 %v8641_v7  ;;  %v9358_v20 = vor.u32 %v708_v16, %v523_v12  ;;  %v528_v23 = vor.u32 %v526_v13, %v525_v18  ;;  %v535_v34 = vor.u32 %v533_v30, %v532_v29  ;;  %v546_v54 = vrot.slane %v544_v46, 7  ;;  %v8683_v12 = vld [vmem:[%s11429_s1 + $0x1c0] sm:$0xff]   ;;  %v8663_v13 = vld [vmem:[%s11429_s1 + $0xb8] sm:$0xff]  }
  0x65   : > { %8148 = vmatprep.subr.bf16.mxu1 %v8642_v8  ;;  %6934 = vmatprep.subr.bf16.mxu0 %v8642_v8  ;;  %v486_v45 = vor.u32 %v484_v42, %v483_v44  ;;  %v542_v48 = vor.u32 %v540_v39, %v539_v38  ;;  %v490_v52 = vrot.slane %v488_v47, 7  ;;  %v547_v55 = vshll.u32 %v9401_v37, 16 }
  0x66   : > { %v9379_v28 = vsel %vm9367_vm2, 0, %v528_v23  ;;  %v9411_v41 = vsel %vm9367_vm2, 0, %v535_v34  ;;  %v495_v59 = vshrl.u32 %v9436_v53, 16  ;;  %v551_v63 = vshrl.u32 %v9443_v56, 16  ;;  %v8686_v23 = vld [vmem:[%s11429_s1 + $0x1c8] sm:$0xff]  }
  0x67   : > { %v595_v50 = vsel %vm9367_vm2, 0, %v486_v45  ;;  %v493_v57 = vor.u32 %v491_v51, %v490_v52  ;;  %v9449_v58 = vsel %vm9367_vm2, 0, %v542_v48  ;;  %v498_v1 = vshll.u32 %v9436_v53, 16  ;;  %v8688_v34 = vld [vmem:[%s11429_s1 + $0x188] sm:$0xff]  }
  0x68   : > { %8156 = vmatpush3.bf16.msra.mxu1 %v8643_v9  ;;  %6935 = vmatpush3.bf16.msra.mxu0 %v8643_v9  ;;  %v497_v62 = vrot.slane %v495_v59, 7  ;;  %v549_v2 = vor.u32 %v547_v55, %v546_v54  ;;  %v553_v6 = vrot.slane %v551_v63, 7  ;;  %v554_v7 = vshll.u32 %v9443_v56, 16  ;;  %v8667_v52 = vld [vmem:[%s9332_s26 + $0x14] ss:$0 sps:$4 sm:$0x11]  }
  0x69   : > { %8149 = vmatprep.subr.bf16.mxu1 %v8644_v10  ;;  %6936 = vmatprep.subr.bf16.mxu0 %v8644_v10  ;;  %v9457_v61 = vsel %vm9367_vm2, 0, %v493_v57  ;;  %v558_v8 = vshrl.u32 %v9464_v0, 16  ;;  %v502_v9 = vshrl.u32 %v9474_v4, 16  ;;  %v505_v29 = vshll.u32 %v9474_v4, 16 }
  0x6a   : > { %v500_v5 = vor.u32 %v498_v1, %v497_v62  ;;  %v9487_v10 = vsel %vm9367_vm2, 0, %v549_v2  ;;  %v556_v18 = vor.u32 %v554_v7, %v553_v6  ;;  %v666_v45 = vrot.slane %v484_v42, 1  ;;  %v8672_v54 = vld [vmem:[%s9332_s26 + $0x20] ss:$0 sps:$4 sm:$0x11]   ;;  %v8693_v42 = vld [vmem:[%s11429_s1 + $0x190] sm:$0xff]  }
  0x6b   : > { %v504_v16 = vrot.slane %v502_v9, 7  ;;  %v8695_v2 = vld [vmem:[%s11429_s1 + $0x1d8] sm:$0xff]   ;;  %v683_v32 = vshll.u32 %v8672_v54, 16 }
  0x6c   : > { %8157 = vmatpush3.bf16.msra.mxu1 %v8645_v14  ;;  %6937 = vmatpush3.bf16.msra.mxu0 %v8645_v14  ;;  %v9497_v14 = vsel %vm9367_vm2, 0, %v500_v5  ;;  %v9565_v6 = vld [vmem:[%s9332_s26 + $0x3c] sm:$0xff]  }
  0x6d   : > { %8150 = vmatprep.subr.bf16.mxu1 %v8646_v15  ;;  %6938 = vmatprep.subr.bf16.mxu0 %v8646_v15  ;;  %v8685_v15 = vld [vmem:[%s11429_s1 + $0x180] sm:$0xff]   ;;  %v507_v38 = vor.u32 %v505_v29, %v504_v16  ;;  %v676_v16 = vshll.u32 %v8667_v52, 16  ;;  %v8706_v52 = vld [vmem:[%s11429_s1 + $0x1a8] sm:$0xff]  }
  0x6f   : > { %v9547_v57 = vsel %vm9367_vm2, 0, %v507_v38  ;;  %v519_v38 = vshll.u32 %v9565_v6, 16 }
  0x70   : > { %8158 = vmatpush3.bf16.msra.mxu1 %v8647_v17  ;;  %6939 = vmatpush3.bf16.msra.mxu0 %v8647_v17  ;;  %v8665_v17 = vld [vmem:[%s9332_s26 + $0x8] ss:$0 sps:$4 sm:$0x11]  }
  0x71   : > { %8151 = vmatprep.subr.bf16.mxu1 %v8648_v21  ;;  %6940 = vmatprep.subr.bf16.mxu0 %v8648_v21  ;;  %v561_v21 = vshll.u32 %v9464_v0, 16  ;;  %v669_v48 = vshll.u32 %v8665_v17, 16  ;;  %v8700_v17 = vld [vmem:[%s11429_s1 + $0x1e0] sm:$0xff]  }
  0x73   : > { %v671_v5 = vrot.slane %v669_v48, 1  ;;  %v8704_v48 = vld [vmem:[%s11429_s1 + $0x1e8] sm:$0xff]  }
  0x74   : > { %8159 = vmatpush3.bf16.msra.mxu1 %v8649_v22  ;;  %6941 = vmatpush3.bf16.msra.mxu0 %v8649_v22  ;;  %v8668_v22 = vld [vmem:[%s11429_s1 + $0x100] sm:$0xff]  }
  0x75   : > { %7788 = vmatprep.subr.bf16.mxu1 %v8651_v26  ;;  %7142 = vmatprep.subr.bf16.mxu0 %v8683_v12 }
  0x77   : > { %1058 = vmatmul.mubr.bf16.vlgmr.msra.gmra.mrb[0].mxu1 %v9379_v28  ;;  %1010 = vmatmul.mubr.bf16.vlgmr.msra.gmra.mrb[0].mxu0 %v595_v50 }
  0x78   : > { %7789 = vmatpush3.bf16.msra.mxu1 %v8651_v26  ;;  %1065 = vmatprep.mubr.bf16.mxu1 %v9356_v19  ;;  %v560_v26 = vrot.slane %v558_v8, 7 }
  0x79   : > { %7790 = vmatprep.subr.bf16.mxu1 %v8652_v31  ;;  %1017 = vmatprep.mubr.bf16.mxu0 %v9415_v43 }
  0x7a   : > { %7143 = vmatpush3.bf16.msra.mxu0 %v8685_v15  ;;  %v563_v44 = vor.u32 %v561_v21, %v560_v26  ;;  %v8698_v15 = vld [vmem:[%s11429_s1 + $0x198] sm:$0xff]  }
  0x7b   : > { %7144 = vmatprep.subr.bf16.mxu0 %v8686_v23 }
  0x7c   : > { %7791 = vmatpush3.bf16.msra.mxu1 %v8652_v31  ;;  %v9520_v31 = vld [vmem:[%s9332_s26 + $0x30] sm:$0xff]   ;;  %v9557_v62 = vsel %vm9367_vm2, 0, %v563_v44 }
  0x7d   : > { %7792 = vmatprep.subr.bf16.mxu1 %v8654_v36 }
  0x7e   : > { %7145 = vmatpush3.bf16.msra.mxu0 %v8688_v34  ;;  %v8675_v34 = vld [vmem:[%s9332_s26 + $0x2c] ss:$0 sps:$4 sm:$0x11]  }
  0x7f   : > { %1066 = vmatmul.mubr.bf16.gmra.mrb[4].mxu1 %v9411_v41  ;;  %1018 = vmatmul.mubr.bf16.gmra.mrb[4].mxu0 %v9457_v61 }
  0x80   : > { %7793 = vmatpush3.bf16.msra.mxu1 %v8654_v36  ;;  %1073 = vmatprep.mubr.bf16.mxu1 %v9375_v27  ;;  %v509_v36 = vshrl.u32 %v9520_v31, 16 }
  0x81   : > { %7794 = vmatprep.subr.bf16.mxu1 %v8656_v40  ;;  %1025 = vmatprep.mubr.bf16.mxu0 %v9436_v53 }
  0x82   : > { %v511_v50 = vrot.slane %v509_v36, 7 }
  0x84   : > { %7795 = vmatpush3.bf16.msra.mxu1 %v8656_v40  ;;  %v9532_v40 = vsel %vm9367_vm2, 0, %v556_v18  ;;  %v680_v18 = vrot.slane %v498_v1, 1  ;;  %v678_v1 = vrot.slane %v676_v16, 1  ;;  %v8709_v16 = vld [vmem:[%s11429_s1 + $0x1f0] sm:$0xff]  }
  0x85   : > { %7796 = vmatprep.subr.bf16.mxu1 %v8658_v49 }
  0x87   : > { %1074 = vmatmul.mubr.bf16.gmra.mrb[8].mxu1 %v9449_v58  ;;  %1026 = vmatmul.mubr.bf16.gmra.mrb[8].mxu0 %v9497_v14 }
  0x88   : > { %1081 = vmatprep.mubr.bf16.mxu1 %v9401_v37  ;;  %7797 = vmatpush3.bf16.msra.mxu1 %v8658_v49  ;;  %v8692_v49 = vld [vmem:[%s11429_s1 + $0x1d0] sm:$0xff]  }
  0x89   : > { %7798 = vmatprep.subr.bf16.mxu1 %v8659_v60  ;;  %1033 = vmatprep.mubr.bf16.mxu0 %v9474_v4 }
  0x8a   : > { %7146 = vmatprep.subr.bf16.mxu0 %v8692_v49  ;;  %v681_v49 = vor.u32 %v680_v18, %v495_v59  ;;  %v8670_v59 = vld [vmem:[%s11429_s1 + $0x108] sm:$0xff]  }
  0x8b   : > { %7147 = vmatpush3.bf16.msra.mxu0 %v8693_v42 }
  0x8c   : > { %7799 = vmatpush3.bf16.msra.mxu1 %v8659_v60  ;;  %v512_v60 = vshll.u32 %v9520_v31, 16  ;;  %7148 = vmatprep.subr.bf16.mxu0 %v8695_v2  ;;  %v687_v2 = vrot.slane %v505_v29, 1  ;;  %v8681_v29 = vld [vmem:[%s9332_s26 + $0x44] ss:$0 sps:$4 sm:$0x11]  }
  0x8d   : > { %7800 = vmatprep.subr.bf16.mxu1 %v8661_v3 }
  0x8e   : > { %v514_v12 = vor.u32 %v512_v60, %v511_v50  ;;  %v8679_v50 = vld [vmem:[%s9332_s26 + $0x38] ss:$0 sps:$4 sm:$0x11]   ;;  %v688_v18 = vor.u32 %v687_v2, %v502_v9 }
  0x8f   : > { %1082 = vmatmul.mubr.bf16.gmra.mrb[12].mxu1 %v9487_v10  ;;  %1034 = vmatmul.mubr.bf16.gmra.mrb[12].mxu0 %v9547_v57  ;;  %v8713_v9 = vld [vmem:[%s11429_s1 + $0x1b8] sm:$0xff]  }
  0x90   : > { %1089 = vmatprep.mubr.bf16.mxu1 %v9443_v56  ;;  %7801 = vmatpush3.bf16.msra.mxu1 %v8661_v3  ;;  %v667_v3 = vor.u32 %v666_v45, %v481_v35  ;;  %v516_v35 = vshrl.u32 %v9565_v6, 16  ;;  %v9586_v23 = vsel %vm9367_vm2, 0, %v514_v12  ;;  %v685_v45 = vrot.slane %v683_v32, 1  ;;  %v8673_v32 = vld [vmem:[%s11429_s1 + $0xc8] sm:$0xff]  }
  0x91   : > { %7802 = vmatprep.subr.bf16.mxu1 %v8663_v13  ;;  %1041 = vmatprep.mubr.bf16.mxu0 %v9520_v31  ;;  %v694_v12 = vrot.slane %v512_v60, 1  ;;  %v8711_v60 = vld [vmem:[%s11429_s1 + $0x1b0] sm:$0xff]  }
  0x92   : > { %7149 = vmatpush3.bf16.msra.mxu0 %v8698_v15  ;;  %v518_v26 = vrot.slane %v516_v35, 7 }
  0x93   : > { %7150 = vmatprep.subr.bf16.mxu0 %v8700_v17  ;;  %v8687_v17 = vld [vmem:[%s9332_s26 + $0x50] ss:$0 sps:$4 sm:$0x11]  }
  0x94   : > { %7803 = vmatpush3.bf16.msra.mxu1 %v8663_v13  ;;  %v673_v13 = vrot.slane %v491_v51, 1  ;;  %v8701_v51 = vld [vmem:[%s11429_s1 + $0x1a0] sm:$0xff]   ;;  %v521_v54 = vor.u32 %v519_v38, %v518_v26  ;;  %v8676_v26 = vld [vmem:[%s11429_s1 + $0x110] sm:$0xff]  }
  0x95   : > { %7034 = vmatprep.subr.bf16.mxu1 %v8668_v22  ;;  %v672_v22 = vsel %vm11448_vm3, %v667_v3, %v671_v5  ;;  %v690_v3 = vshll.u32 %v8675_v34, 16  ;;  %v9618_v5 = vsel %vm11448_vm3, %v681_v49, %v685_v45  ;;  %v695_v34 = vor.u32 %v694_v12, %v509_v36  ;;  %v8689_v49 = vld [vmem:[%s9332_s26 + $0x5c] ss:$0 sps:$4 sm:$0x11]  }
  0x96   : > { %v674_v44 = vor.u32 %v673_v13, %v488_v47  ;;  %7151 = vmatpush3.bf16.msra.mxu0 %v8701_v51  ;;  %v8669_v47 = vld [vmem:[%s11429_s1 + $0xc0] sm:$0xff]   ;;  %v697_v13 = vshll.u32 %v8679_v50, 16  ;;  %v9622_v15 = vsel %vm9367_vm2, 0, %v521_v54  ;;  %v701_v45 = vrot.slane %v519_v38, 1  ;;  %v8684_v12 = vld [vmem:[%s11429_s1 + $0xd8] sm:$0xff]  }
  0x97   : > { %1090 = vmatmul.mubr.bf16.gmra.mrb[16].mxu1 %v9532_v40  ;;  %1042 = vmatmul.mubr.bf16.gmra.mrb[16].mxu0 %v9586_v23  ;;  %v692_v51 = vrot.slane %v690_v3, 1  ;;  %v711_v54 = vshll.u32 %v8687_v17, 16  ;;  %v8699_v38 = vld [vmem:[%s9332_s26 + $0x74] ss:$0 sps:$4 sm:$0x11]  }
  0x98   : > { %1097 = vmatprep.mubr.bf16.mxu1 %v9464_v0  ;;  %7152 = vmatprep.subr.bf16.mxu0 %v8704_v48  ;;  %v9613_v42 = vsel %vm11448_vm3, %v674_v44, %v678_v1  ;;  %v699_v1 = vrot.slane %v697_v13, 1  ;;  %v8677_v44 = vld [vmem:[%s11429_s1 + $0xd0] sm:$0xff]   ;;  %v704_v48 = vshll.u32 %v8681_v29, 16  ;;  %v702_v2 = vor.u32 %v701_v45, %v516_v35  ;;  %v8705_v29 = vld [vmem:[%s9332_s26 + $0x80] ss:$0 sps:$4 sm:$0x11]  }
  0x99   : > { %1049 = vmatprep.mubr.bf16.mxu0 %v9565_v6  ;;  %v9656_v36 = vsel %vm11448_vm3, %v688_v18, %v692_v51  ;;  %v713_v13 = vrot.slane %v711_v54, 1  ;;  %v729_v18 = vrot.slane %v547_v55, 1  ;;  %v8702_v45 = vld [vmem:[%s11429_s1 + $0x130] sm:$0xff]  }
  0x9a   : > { %7153 = vmatpush3.bf16.msra.mxu0 %v8706_v52  ;;  %v9660_v50 = vsel %vm11448_vm3, %v695_v34, %v699_v1  ;;  %v8682_v52 = vld [vmem:[%s11429_s1 + $0x118] sm:$0xff]   ;;  %v706_v3 = vrot.slane %v704_v48, 1  ;;  %v736_v34 = vrot.slane %v554_v7, 1  ;;  %v739_v1 = vshll.u32 %v8705_v29, 16 }
  0x9b   : > { %7154 = vmatprep.subr.bf16.mxu0 %v8709_v16  ;;  %v718_v16 = vshll.u32 %v8689_v49, 16  ;;  %v9694_v51 = vsel %vm11448_vm3, %v9358_v20, %v713_v13  ;;  %v8707_v48 = vld [vmem:[%s9332_s26 + $0x8c] ss:$0 sps:$4 sm:$0x11]   ;;  %v9748_v13 = vld [vmem:[%s9332_s26 + $0x90] sm:$0xff]  }
  0x9c   : > { %v9686_v17 = vsel %vm11448_vm3, %v702_v2, %v706_v3  ;;  %v741_v49 = vrot.slane %v739_v1, 1  ;;  %v730_v2 = vor.u32 %v729_v18, %v544_v46  ;;  %v737_v3 = vor.u32 %v736_v34, %v551_v63  ;;  %v8718_v34 = vld [vmem:[%s11429_s1 + $0x160] sm:$0xff]  }
  0x9d   : > { %v720_v55 = vrot.slane %v718_v16, 1  ;;  %v565_v16 = vshrl.u32 %v9748_v13, 16  ;;  %v568_v29 = vshll.u32 %v9748_v13, 16 }
  0x9e   : > { %7155 = vmatpush3.bf16.msra.mxu0 %v8711_v60  ;;  %v722_v60 = vrot.slane %v540_v39, 1  ;;  %v743_v39 = vrot.slane %v561_v21, 1 }
  0x9f   : > { %1098 = vmatmul.mubr.bf16.gmra.mrb[20].mxu1 %v9557_v62  ;;  %1050 = vmatmul.mubr.bf16.gmra.mrb[20].mxu0 %v9622_v15 }
  0xa0   : > { %7804 = vmatprep.mubr.bf16.mxu1 %v672_v22  ;;  %v8712_v22 = vld [vmem:[%s11429_s1 + $0x1f8] sm:$0xff]   ;;  %1959 = vmatprep.mubr.bf16.mxu0 %v9436_v53  ;;  %v723_v7 = vor.u32 %v722_v60, %v537_v33  ;;  %v744_v63 = vor.u32 %v743_v39, %v558_v8  ;;  %v8716_v8 = vld [vmem:[%s11429_s1 + $0x150] sm:$0xff]   ;;  %v750_v60 = vrot.slane %v568_v29, 1 }
  0xa1   : > { %7156 = vmatprep.subr.bf16.mxu0 %v8712_v22  ;;  %v8694_v22 = vld [vmem:[%s11429_s1 + $0x128] sm:$0xff]  }
  0xa2   : > { %7157 = vmatpush3.bf16.msra.mxu0 %v8713_v9 }
  0xa7   : > { %7805 = vmatmul.mubr.bf16.vlgmr.msra.gmra.mrb[24].mxu1 %v9613_v42  ;;  %1960 = vmatmul.mubr.bf16.vlgmr.msra.gmra.mrb[24].mxu0 %v9497_v14 }
  0xa8   : > { %7035 = vmatpush3.bf16.msra.mxu1 %v8669_v47  ;;  %7808 = vmatprep.mubr.bf16.mxu1 %v9618_v5  ;;  %v8696_v47 = vld [vmem:[%s9332_s26 + $0x68] ss:$0 sps:$4 sm:$0x11]  }
  0xa9   : > { %7036 = vmatprep.subr.bf16.mxu1 %v8670_v59  ;;  %v715_v59 = vrot.slane %v533_v30, 1  ;;  %v8690_v30 = vld [vmem:[%s11429_s1 + $0x120] sm:$0xff]   ;;  %1967 = vmatprep.mubr.bf16.mxu0 %v9474_v4  ;;  %v725_v35 = vshll.u32 %v8696_v47, 16  ;;  %v8710_v47 = vld [vmem:[%s11429_s1 + $0xf8] sm:$0xff]  }
  0xab   : > { %v716_v20 = vor.u32 %v715_v59, %v530_v24  ;;  %v727_v9 = vrot.slane %v725_v35, 1  ;;  %v8703_v24 = vld [vmem:[%s11429_s1 + $0xf0] sm:$0xff]   ;;  %v746_v59 = vshll.u32 %v8707_v48, 16 }
  0xac   : > { %7037 = vmatpush3.bf16.msra.mxu1 %v8673_v32  ;;  %v8691_v32 = vld [vmem:[%s11429_s1 + $0xe0] sm:$0xff]  }
  0xad   : > { %7038 = vmatprep.subr.bf16.mxu1 %v8676_v26  ;;  %v732_v26 = vshll.u32 %v8699_v38, 16  ;;  %v9725_v33 = vsel %vm11448_vm3, %v716_v20, %v720_v55  ;;  %v9728_v54 = vsel %vm11448_vm3, %v723_v7, %v727_v9  ;;  %v8714_v38 = vld [vmem:[%s11429_s1 + $0x140] sm:$0xff]   ;;  %v748_v46 = vrot.slane %v746_v59, 1  ;;  %v8935_v55 = vld [vmem:[%s9332_s26 + $0x78] sm:$0xff]  }
  0xae   : > { %v8732_v7 = vld [vmem:[%s11429_s1 + $0x238] sm:$0xff]  }
  0xaf   : > { %7809 = vmatmul.mubr.bf16.gmra.mrb[28].mxu1 %v9656_v36  ;;  %v734_v21 = vrot.slane %v732_v26, 1  ;;  %1968 = vmatmul.mubr.bf16.gmra.mrb[28].mxu0 %v9547_v57  ;;  %v9764_v35 = vsel %vm11448_vm3, %v744_v63, %v748_v46  ;;  %v9787_v26 = vor.u32 %v750_v60, %v565_v16 }
  0xb0   : > { %7039 = vmatpush3.bf16.msra.mxu1 %v8677_v44  ;;  %7812 = vmatprep.mubr.bf16.mxu1 %v9660_v50  ;;  %v8697_v44 = vld [vmem:[%s11429_s1 + $0xe8] sm:$0xff]  }
  0xb1   : > { %7040 = vmatprep.subr.bf16.mxu1 %v8682_v52  ;;  %1975 = vmatprep.mubr.bf16.mxu0 %v9520_v31  ;;  %v8708_v52 = vld [vmem:[%s11429_s1 + $0x138] sm:$0xff]  }
  0xb4   : > { %7041 = vmatpush3.bf16.msra.mxu1 %v8684_v12  ;;  %v9745_v12 = vsel %vm11448_vm3, %v730_v2, %v734_v21 }
  0xb5   : > { %7042 = vmatprep.subr.bf16.mxu1 %v8690_v30  ;;  %v9751_v30 = vsel %vm11448_vm3, %v737_v3, %v741_v49 }
  0xb7   : > { %7813 = vmatmul.mubr.bf16.gmra.mrb[32].mxu1 %v9686_v17  ;;  %1976 = vmatmul.mubr.bf16.gmra.mrb[32].mxu0 %v9586_v23 }
  0xb8   : > { %7816 = vmatprep.mubr.bf16.mxu1 %v9694_v51  ;;  %7043 = vmatpush3.bf16.msra.mxu1 %v8691_v32  ;;  %v9761_v32 = vld [vmem:[%s9332_s26 + $0x9c] sm:$0xff]  }
  0xb9   : > { %7044 = vmatprep.subr.bf16.mxu1 %v8694_v22  ;;  %1983 = vmatprep.mubr.bf16.mxu0 %v9565_v6  ;;  %v572_v0 = vshrl.u32 %v9761_v32, 16 }
  0xbb   : > { %v574_v18 = vrot.slane %v572_v0, 7 }
  0xbc   : > { %7045 = vmatpush3.bf16.msra.mxu1 %v8697_v44 }
  0xbd   : > { %7046 = vmatprep.subr.bf16.mxu1 %v8702_v45  ;;  %v8731_v45 = vld [vmem:[%s9332_s26 + $0x98] ss:$0 sps:$4 sm:$0x11]  }
  0xbf   : > { %7817 = vmatmul.mubr.bf16.gmra.mrb[36].mxu1 %v9725_v33  ;;  %1984 = vmatmul.mubr.bf16.gmra.mrb[36].mxu0 %v9622_v15 }
  0xc0   : > { %7820 = vmatprep.mubr.bf16.mxu1 %v9728_v54  ;;  %7047 = vmatpush3.bf16.msra.mxu1 %v8703_v24 }
  0xc1   : > { %7048 = vmatprep.subr.bf16.mxu1 %v8708_v52  ;;  %1991 = vmatprep.mubr.bf16.mxu0 %v9341_v11  ;;  %v8715_v11 = vld [vmem:[%s11429_s1 + $0x148] sm:$0xff]  }
  0xc4   : > { %7049 = vmatpush3.bf16.msra.mxu1 %v8710_v47  ;;  %v753_v47 = vshll.u32 %v8731_v45, 16 }
  0xc5   : > { %7828 = vmatprep.subr.bf16.mxu1 %v8714_v38 }
  0xc7   : > { %7821 = vmatmul.mubr.bf16.gmra.mrb[40].mxu1 %v9745_v12  ;;  %1992 = vmatmul.mubr.bf16.gmra.mrb[40].mxu0 %v9379_v28 }
  0xc8   : > { %7824 = vmatprep.mubr.bf16.mxu1 %v9751_v30  ;;  %1999 = vmatprep.mubr.bf16.mxu0 %v9356_v19  ;;  %v575_v19 = vshll.u32 %v9761_v32, 16 }
  0xca   : > { %v577_v22 = vor.u32 %v575_v19, %v574_v18 }
  0xcc   : > { %v608_v39 = vsel %vm9367_vm2, 0, %v577_v22 }
  0xcf   : > { %7825 = vmatmul.mubr.bf16.gmra.mrb[44].mxu1 %v9764_v35  ;;  %2000 = vmatmul.mubr.bf16.gmra.mrb[44].mxu0 %v9411_v41 }
  0xd0   : > { %1484 = vmatprep.mubr.bf16.mxu1 %v9415_v43  ;;  %v567_v43 = vrot.slane %v565_v16, 7  ;;  %2007 = vmatprep.mubr.bf16.mxu0 %v9375_v27  ;;  %v755_v16 = vrot.slane %v753_v47, 1 }
  0xd2   : > { %v9888_v18 = vsel %vm11448_vm3, %v9787_v26, %v755_v16 }
  0xd7   : > { %1485 = vmatmul.mubr.bf16.vlgmr.msra.gmra.mrb[48].mxu1 %v9457_v61  ;;  %v570_v61 = vor.u32 %v568_v29, %v567_v43  ;;  %2008 = vmatmul.mubr.bf16.gmra.mrb[48].mxu0 %v9449_v58 }
  0xd8   : > { %7829 = vmatpush3.bf16.msra.mxu1 %v8714_v38  ;;  %1492 = vmatprep.mubr.bf16.mxu1 %v9436_v53  ;;  %v8717_v53 = vld [vmem:[%s11429_s1 + $0x158] sm:$0xff]  }
  0xd9   : > { %7830 = vmatprep.subr.bf16.mxu1 %v8715_v11  ;;  %v607_v27 = vsel %vm9367_vm2, 0, %v570_v61  ;;  %2015 = vmatprep.mubr.bf16.mxu0 %v9401_v37  ;;  %v8722_v37 = vld [vmem:[%s11429_s1 + $0x178] sm:$0xff]  }
  0xdc   : > { %7831 = vmatpush3.bf16.msra.mxu1 %v8715_v11 }
  0xdd   : > { %7832 = vmatprep.subr.bf16.mxu1 %v8716_v8 }
  0xdf   : > { %1493 = vmatmul.mubr.bf16.gmra.mrb[52].mxu1 %v9497_v14  ;;  %v8719_v14 = vld [vmem:[%s11429_s1 + $0x168] sm:$0xff]   ;;  %2016 = vmatmul.mubr.bf16.gmra.mrb[52].mxu0 %v9487_v10 }
  0xe0   : > { %1500 = vmatprep.mubr.bf16.mxu1 %v9474_v4  ;;  %7833 = vmatpush3.bf16.msra.mxu1 %v8716_v8  ;;  %v8720_v4 = vld [vmem:[%s11429_s1 + $0x170] sm:$0xff]  }
  0xe1   : > { %7834 = vmatprep.subr.bf16.mxu1 %v8717_v53  ;;  %2023 = vmatprep.mubr.bf16.mxu0 %v9443_v56  ;;  %v8930_v56 = vld [vmem:[%s9332_s26 + $0x84] sm:$0xff]  }
  0xe4   : > { %7835 = vmatpush3.bf16.msra.mxu1 %v8717_v53 }
  0xe5   : > { %7836 = vmatprep.subr.bf16.mxu1 %v8718_v34 }
  0xe7   : > { %1501 = vmatmul.mubr.bf16.gmra.mrb[56].mxu1 %v9547_v57  ;;  %2024 = vmatmul.mubr.bf16.gmra.mrb[56].mxu0 %v9532_v40  ;;  %v8931_v57 = vld [vmem:[%s9332_s26 + $0x48] sm:$0xff]  }
  0xe8   : > { %1508 = vmatprep.mubr.bf16.mxu1 %v9520_v31  ;;  %7837 = vmatpush3.bf16.msra.mxu1 %v8718_v34  ;;  %v8724_v31 = vld [vmem:[%s11429_s1 + $0x200] sm:$0xff]  }
  0xe9   : > { %7838 = vmatprep.subr.bf16.mxu1 %v8719_v14  ;;  %2031 = vmatprep.mubr.bf16.mxu0 %v8930_v56 }
  0xec   : > { %7839 = vmatpush3.bf16.msra.mxu1 %v8719_v14 }
  0xed   : > { %7840 = vmatprep.subr.bf16.mxu1 %v8720_v4 }
  0xef   : > { %1509 = vmatmul.mubr.bf16.gmra.mrb[60].mxu1 %v9586_v23  ;;  %2032 = vmatmul.mubr.bf16.gmra.mrb[60].mxu0 %v9557_v62  ;;  %v8933_v23 = vld [vmem:[%s9332_s26 + $0x60] sm:$0xff]  }
  0xf0   : > { %1516 = vmatprep.mubr.bf16.mxu1 %v9565_v6  ;;  %7841 = vmatpush3.bf16.msra.mxu1 %v8720_v4  ;;  %v8932_v6 = vld [vmem:[%s9332_s26 + $0x54] sm:$0xff]  }
  0xf1   : > { %7842 = vmatprep.subr.bf16.mxu1 %v8722_v37  ;;  %2039 = vmatprep.mubr.bf16.mxu0 %v9748_v13 }
  0xf4   : > { %7843 = vmatpush3.bf16.msra.mxu1 %v8722_v37 }
  0xf5   : > { %7868 = vmatprep.subr.bf16.mxu1 %v8724_v31 }
  0xf7   : > { %1517 = vmatmul.mubr.bf16.gmra.mrb[64].mxu1 %v9622_v15  ;;  %2040 = vmatmul.mubr.bf16.gmra.mrb[64].mxu0 %v607_v27  ;;  %v8934_v15 = vld [vmem:[%s9332_s26 + $0x6c] sm:$0xff]  }
  0xf8   : > { %1524 = vmatprep.mubr.bf16.mxu1 %v8931_v57  ;;  %2047 = vmatprep.mubr.bf16.mxu0 %v9761_v32 }
  0xff   : > { %1525 = vmatmul.mubr.bf16.gmra.mrb[68].mxu1 %v9379_v28  ;;  %2048 = vmatmul.mubr.bf16.gmra.mrb[68].mxu0 %v608_v39  ;;  %v8725_v28 = vld [vmem:[%s11429_s1 + $0x208] sm:$0xff]  }
 0x100   : > { %1532 = vmatprep.mubr.bf16.mxu1 %v8932_v6 }
 0x107   : > { %1533 = vmatmul.mubr.bf16.gmra.mrb[72].mxu1 %v9411_v41  ;;  %v8726_v41 = vld [vmem:[%s11429_s1 + $0x210] sm:$0xff]  }
 0x108   : > { %1540 = vmatprep.mubr.bf16.mxu1 %v8933_v23 }
 0x10f   : > { %1541 = vmatmul.mubr.bf16.gmra.mrb[76].mxu1 %v9449_v58  ;;  %v8727_v58 = vld [vmem:[%s11429_s1 + $0x218] sm:$0xff]  }
 0x110   : > { %1548 = vmatprep.mubr.bf16.mxu1 %v8934_v15 }
 0x117   : > { %1549 = vmatmul.mubr.bf16.gmra.mrb[80].mxu1 %v9487_v10  ;;  %v8728_v10 = vld [vmem:[%s11429_s1 + $0x220] sm:$0xff]  }
 0x118   : > { %1556 = vmatprep.mubr.bf16.mxu1 %v8935_v55 }
 0x11f   : > { %1557 = vmatmul.mubr.bf16.gmra.mrb[84].mxu1 %v9532_v40  ;;  %v8729_v40 = vld [vmem:[%s11429_s1 + $0x228] sm:$0xff]  }
 0x120   : > { %1564 = vmatprep.mubr.bf16.mxu1 %v8930_v56 }
 0x127   : > { %1565 = vmatmul.mubr.bf16.gmra.mrb[88].mxu1 %v9557_v62  ;;  %v8730_v62 = vld [vmem:[%s11429_s1 + $0x230] sm:$0xff]  }
 0x128   : > { %1572 = vmatprep.mubr.bf16.mxu1 %v9748_v13 }
 0x12f   : > { %1573 = vmatmul.mubr.bf16.gmra.mrb[92].mxu1 %v607_v27 }
 0x130   : > { %7844 = vmatprep.mubr.bf16.mxu1 %v9613_v42 }
 0x137   : > { %7845 = vmatmul.mubr.bf16.vlgmr.msra.gmra.mrb[24].mxu1 %v9618_v5 }
 0x138   : > { %7869 = vmatpush3.bf16.msra.mxu1 %v8724_v31  ;;  %7848 = vmatprep.mubr.bf16.mxu1 %v9656_v36 }
 0x139   : > { %7870 = vmatprep.subr.bf16.mxu1 %v8725_v28 }
 0x13c   : > { %7871 = vmatpush3.bf16.msra.mxu1 %v8725_v28 }
 0x13d   : > { %7872 = vmatprep.subr.bf16.mxu1 %v8726_v41 }
 0x13f   : > { %7849 = vmatmul.mubr.bf16.gmra.mrb[28].mxu1 %v9660_v50 }
 0x140   : > { %7873 = vmatpush3.bf16.msra.mxu1 %v8726_v41  ;;  %7852 = vmatprep.mubr.bf16.mxu1 %v9686_v17 }
 0x141   : > { %7874 = vmatprep.subr.bf16.mxu1 %v8727_v58 }
 0x144   : > { %7875 = vmatpush3.bf16.msra.mxu1 %v8727_v58 }
 0x145   : > { %7876 = vmatprep.subr.bf16.mxu1 %v8728_v10 }
 0x147   : > { %7853 = vmatmul.mubr.bf16.gmra.mrb[32].mxu1 %v9694_v51 }
 0x148   : > { %7856 = vmatprep.mubr.bf16.mxu1 %v9725_v33  ;;  %7877 = vmatpush3.bf16.msra.mxu1 %v8728_v10 }
 0x149   : > { %7878 = vmatprep.subr.bf16.mxu1 %v8729_v40 }
 0x14a   : > { %v6978_v42 = vpop.f32.mrb[0].mxu1  ;;  %v6942_v59 = vpop.f32.mrb[0].mxu0 }
 0x14b   : > { %v6979_v1 = vpop.f32.mrb[1].mxu1  ;;  %v6943_v2 = vpop.f32.mrb[1].mxu0 }
 0x14c   : > { %v9864_v20 = vadd.f32 %v6979_v1, %v6978_v42  ;;  %v6981_v9 = vpop.f32.mrb[2].mxu1  ;;  %7879 = vmatpush3.bf16.msra.mxu1 %v8729_v40  ;;  %v9878_v13 = vadd.f32 %v6943_v2, %v6942_v59  ;;  %v6945_v46 = vpop.f32.mrb[2].mxu0 }
 0x14d   : > { %v6982_v44 = vpop.f32.mrb[3].mxu1  ;;  %7880 = vmatprep.subr.bf16.mxu1 %v8730_v62  ;;  %v6946_v63 = vpop.f32.mrb[3].mxu0 }
 0x14e   : > { %v9869_v21 = vadd.f32 %v6982_v44, %v6981_v9  ;;  %v9882_v29 = vadd.f32 %v6946_v63, %v6945_v46 }
 0x14f   : > { %7857 = vmatmul.mubr.bf16.gmra.mrb[36].mxu1 %v9728_v54 }
 0x150   : > { %7860 = vmatprep.mubr.bf16.mxu1 %v9745_v12  ;;  %7881 = vmatpush3.bf16.msra.mxu1 %v8730_v62 }
 0x151   : > { %7882 = vmatprep.subr.bf16.mxu1 %v8732_v7 }
 0x152   : > { %v6984_v48 = vpop.f32.mrb[4].mxu1  ;;  %v6948_v61 = vpop.f32.mrb[4].mxu0 }
 0x153   : > { %v6985_v24 = vpop.f32.mrb[5].mxu1  ;;  %v6949_v53 = vpop.f32.mrb[5].mxu0 }
 0x154   : > { %v9874_v49 = vadd.f32 %v6985_v24, %v6984_v48  ;;  %v6987_v52 = vpop.f32.mrb[6].mxu1  ;;  %7883 = vmatpush3.bf16.msra.mxu1 %v8732_v7  ;;  %v9892_v27 = vadd.f32 %v6949_v53, %v6948_v61  ;;  %v6951_v39 = vpop.f32.mrb[6].mxu0  ;;  %v8733_v53 = vld [vmem:[%s9332_s26 + $0xa4] ss:$0 sps:$4 sm:$0x11]  }
 0x155   : > { %v6988_v38 = vpop.f32.mrb[7].mxu1  ;;  %v6952_v14 = vpop.f32.mrb[7].mxu0 }
 0x156   : > { %v9876_v3 = vadd.f32 %v6988_v38, %v6987_v52  ;;  %v9896_v4 = vadd.f32 %v6952_v14, %v6951_v39  ;;  %v760_v14 = vshll.u32 %v8733_v53, 16 }
 0x157   : > { %7861 = vmatmul.mubr.bf16.gmra.mrb[40].mxu1 %v9751_v30 }
 0x158   : > { %7864 = vmatprep.mubr.bf16.mxu1 %v9764_v35 }
 0x15a   : > { %v6990_v11 = vpop.f32.mrb[8].mxu1  ;;  %v6954_v57 = vpop.f32.mrb[8].mxu0 }
 0x15b   : > { %v6991_v8 = vpop.f32.mrb[9].mxu1  ;;  %v6955_v23 = vpop.f32.mrb[9].mxu0 }
 0x15c   : > { %v9884_v43 = vadd.f32 %v6991_v8, %v6990_v11  ;;  %v6993_v60 = vpop.f32.mrb[10].mxu1  ;;  %v9902_v55 = vadd.f32 %v6955_v23, %v6954_v57  ;;  %v6957_v28 = vpop.f32.mrb[10].mxu0  ;;  %v8735_v23 = vld [vmem:[%s11431_s3 + $0x88] sm:$0xff]  }
 0x15d   : > { %v6994_v22 = vpop.f32.mrb[11].mxu1  ;;  %v6958_v41 = vpop.f32.mrb[11].mxu0 }
 0x15e   : > { %v9890_v34 = vadd.f32 %v6994_v22, %v6993_v60 }
 0x15f   : > { %7865 = vmatmul.mubr.bf16.gmra.mrb[44].mxu1 %v9888_v18 }
 0x160   : > { %7884 = vmatprep.mubr.bf16.mxu1 %v9618_v5  ;;  %v9906_v5 = vadd.f32 %v6958_v41, %v6957_v28  ;;  %v8736_v41 = vld [vmem:[%s11431_s3 + $0x90] sm:$0xff]  }
 0x162   : > { %v6996_v37 = vpop.f32.mrb[12].mxu1  ;;  %v6960_v42 = vpop.f32.mrb[12].mxu0 }
 0x163   : > { %v6997_v31 = vpop.f32.mrb[13].mxu1  ;;  %v6961_v9 = vpop.f32.mrb[13].mxu0 }
 0x164   : > { %v9898_v56 = vadd.f32 %v6997_v31, %v6996_v37  ;;  %v6999_v26 = vpop.f32.mrb[14].mxu1  ;;  %v9912_v7 = vadd.f32 %v6961_v9, %v6960_v42  ;;  %v6963_v45 = vpop.f32.mrb[14].mxu0 }
 0x165   : > { %v7000_v6 = vpop.f32.mrb[15].mxu1 }
 0x166   : > { %v9900_v15 = vadd.f32 %v7000_v6, %v6999_v26 }
 0x167   : > { %7885 = vmatmul.mubr.bf16.vlgmr.msra.gmra.mrb[24].mxu1 %v9656_v36  ;;  %v6964_v36 = vpop.f32.mrb[15].mxu0 }
 0x168   : > { %7888 = vmatprep.mubr.bf16.mxu1 %v9660_v50  ;;  %v9916_v50 = vadd.f32 %v6964_v36, %v6963_v45 }
 0x16a   : > { %v7002_v58 = vpop.f32.mrb[16].mxu1  ;;  %v6966_v59 = vpop.f32.mrb[16].mxu0 }
 0x16b   : > { %v7003_v10 = vpop.f32.mrb[17].mxu1  ;;  %v6967_v2 = vpop.f32.mrb[17].mxu0 }
 0x16c   : > { %v9908_v40 = vadd.f32 %v7003_v10, %v7002_v58  ;;  %v7005_v62 = vpop.f32.mrb[18].mxu1  ;;  %v9922_v63 = vadd.f32 %v6967_v2, %v6966_v59  ;;  %v6969_v16 = vpop.f32.mrb[18].mxu0 }
 0x16d   : > { %v7006_v1 = vpop.f32.mrb[19].mxu1 }
 0x16e   : > { %v9910_v44 = vadd.f32 %v7006_v1, %v7005_v62 }
 0x16f   : > { %7889 = vmatmul.mubr.bf16.gmra.mrb[28].mxu1 %v9686_v17  ;;  %v6970_v17 = vpop.f32.mrb[19].mxu0 }
 0x170   : > { %7892 = vmatprep.mubr.bf16.mxu1 %v9694_v51  ;;  %v9926_v51 = vadd.f32 %v6970_v17, %v6969_v16 }
 0x172   : > { %v7008_v48 = vpop.f32.mrb[20].mxu1  ;;  %v6972_v11 = vpop.f32.mrb[20].mxu0 }
 0x173   : > { %v7009_v24 = vpop.f32.mrb[21].mxu1  ;;  %v6973_v8 = vpop.f32.mrb[21].mxu0 }
 0x174   : > { %v9918_v52 = vadd.f32 %v7009_v24, %v7008_v48  ;;  %v7011_v47 = vpop.f32.mrb[22].mxu1  ;;  %v9928_v60 = vadd.f32 %v6973_v8, %v6972_v11  ;;  %v6975_v61 = vpop.f32.mrb[22].mxu0 }
 0x175   : > { %v7012_v38 = vpop.f32.mrb[23].mxu1  ;;  %v6976_v22 = vpop.f32.mrb[23].mxu0 }
 0x176   : > { %v9920_v46 = vadd.f32 %v7012_v38, %v7011_v47  ;;  %v9933_v39 = vadd.f32 %v6976_v22, %v6975_v61 }
 0x177   : > { %7893 = vmatmul.mubr.bf16.gmra.mrb[32].mxu1 %v9725_v33  ;;  %v757_v33 = vrot.slane %v575_v19, 1  ;;  %v8734_v19 = vld [vmem:[%s11431_s3 + $0x80] sm:$0xff]  }
 0x178   : > { %7896 = vmatprep.mubr.bf16.mxu1 %v9728_v54  ;;  %7908 = vmatprep.subr.bf16.mxu1 %v8734_v19 }
 0x179   : > { %7909 = vmatpush3.bf16.msra.mxu1 %v8734_v19 }
 0x17a   : > { %v7158_v54 = vpop.f32.mrb[24].mxu0  ;;  %7910 = vmatprep.subr.bf16.mxu1 %v8735_v23 }
 0x17b   : > { %v7159_v37 = vpop.f32.mrb[25].mxu0 }
 0x17c   : > { %v9937_v31 = vadd.f32 %v7159_v37, %v7158_v54  ;;  %v7161_v26 = vpop.f32.mrb[26].mxu0 }
 0x17d   : > { %v7162_v57 = vpop.f32.mrb[27].mxu0  ;;  %7911 = vmatpush3.bf16.msra.mxu1 %v8735_v23 }
 0x17e   : > { %v7163_v6 = vadd.f32 %v7162_v57, %v7161_v26  ;;  %7912 = vmatprep.subr.bf16.mxu1 %v8736_v41 }
 0x17f   : > { %7897 = vmatmul.mubr.bf16.gmra.mrb[36].mxu1 %v9745_v12  ;;  %v758_v12 = vor.u32 %v757_v33, %v572_v0 }
 0x180   : > { %7900 = vmatprep.mubr.bf16.mxu1 %v9751_v30  ;;  %v762_v30 = vrot.slane %v760_v14, 1  ;;  %v9976_v14 = vld [vmem:[%s11430_s2] ss:$0 sm:$0xff] }
 0x181   : > { %7913 = vmatpush3.bf16.msra.mxu1 %v8736_v41  ;;  %v8164_v54 = vadd.f32 %v9878_v13, %v9976_v14  ;;  %v8172_v57 = vadd.f32 %v9882_v29, %v9976_v14  ;;  %v8160_v29 = vadd.f32 %v9892_v27, %v9976_v14 }
 0x182   : > { %v763_v32 = vsel %vm11448_vm3, %v758_v12, %v762_v30  ;;  %v7164_v0 = vpop.f32.mrb[28].mxu0 }
 0x183   : > { %v7165_v28 = vpop.f32.mrb[29].mxu0 }
 0x184   : > { %v7166_v58 = vadd.f32 %v7165_v28, %v7164_v0  ;;  %v7167_v10 = vpop.f32.mrb[30].mxu0 }
 0x185   : > { %v7168_v62 = vpop.f32.mrb[31].mxu0 }
 0x186   : > { %v9959_v42 = vadd.f32 %v7168_v62, %v7167_v10 }
 0x187   : > { %7901 = vmatmul.mubr.bf16.gmra.mrb[40].mxu1 %v9764_v35  ;;  %v8737_v35 = vld [vmem:[%s11431_s3 + $0x40] sm:$0xff]  }
 0x188   : > { %7904 = vmatprep.mubr.bf16.mxu1 %v9888_v18  ;;  %v8738_v18 = vld [vmem:[%s11431_s3] sm:$0xff]   ;;  %7250 = vmatprep.subr.bf16.mxu0 %v8737_v35 }
 0x189   : > { %7251 = vmatpush3.bf16.msra.mxu0 %v8738_v18 }
 0x18a   : > { %v7170_v1 = vpop.f32.mrb[32].mxu0 }
 0x18b   : > { %v7171_v9 = vpop.f32.mrb[33].mxu0 }
 0x18c   : > { %v9961_v45 = vadd.f32 %v7171_v9, %v7170_v1  ;;  %v7173_v36 = vpop.f32.mrb[34].mxu0 }
 0x18d   : > { %v7174_v48 = vpop.f32.mrb[35].mxu0 }
 0x18e   : > { %v9963_v24 = vadd.f32 %v7174_v48, %v7173_v36  ;;  %v8168_v48 = vadd.f32 %v9896_v4, %v9976_v14  ;;  %v8740_v4 = vld [vmem:[%s11431_s3 + $0x48] sm:$0xff]  }
 0x18f   : > { %7905 = vmatmul.mubr.bf16.gmra.mrb[44].mxu1 %v763_v32  ;;  %7252 = vmatprep.subr.bf16.mxu0 %v8740_v4 }
 0x192   : > { %v7176_v47 = vpop.f32.mrb[36].mxu0 }
 0x193   : > { %v7177_v59 = vpop.f32.mrb[37].mxu0 }
 0x194   : > { %v9965_v38 = vadd.f32 %v7177_v59, %v7176_v47  ;;  %v7179_v2 = vpop.f32.mrb[38].mxu0 }
 0x195   : > { %v7180_v16 = vpop.f32.mrb[39].mxu0 }
 0x196   : > { %v9967_v17 = vadd.f32 %v7180_v16, %v7179_v2 }
 0x19a   : > { %v7182_v11 = vpop.f32.mrb[40].mxu0 }
 0x19b   : > { %v7183_v8 = vpop.f32.mrb[41].mxu0 }
 0x19c   : > { %v9969_v61 = vadd.f32 %v7183_v8, %v7182_v11  ;;  %v7185_v22 = vpop.f32.mrb[42].mxu0 }
 0x19d   : > { %v7186_v53 = vpop.f32.mrb[43].mxu0 }
 0x19e   : > { %v9971_v33 = vadd.f32 %v7186_v53, %v7185_v22 }
 0x1a2   : > { %v7188_v19 = vpop.f32.mrb[44].mxu0 }
 0x1a3   : > { %v7189_v35 = vpop.f32.mrb[45].mxu0 }
 0x1a4   : > { %v9982_v0 = vadd.f32 %v7189_v35, %v7188_v19  ;;  %v7191_v28 = vpop.f32.mrb[46].mxu0 }
 0x1a5   : > { %v7192_v41 = vpop.f32.mrb[47].mxu0 }
 0x1a6   : > { %v9984_v62 = vadd.f32 %v7192_v41, %v7191_v28 }
 0x1aa   : > { %v7050_v37 = vpop.f32.mrb[48].mxu1  ;;  %v7194_v2 = vpop.f32.mrb[48].mxu0 }
 0x1ab   : > { %v7051_v26 = vpop.f32.mrb[49].mxu1  ;;  %v7195_v11 = vpop.f32.mrb[49].mxu0 }
 0x1ac   : > { %v7052_v12 = vadd.f32 %v7051_v26, %v7050_v37  ;;  %v7053_v30 = vpop.f32.mrb[50].mxu1  ;;  %v9995_v53 = vadd.f32 %v7195_v11, %v7194_v2  ;;  %v8741_v26 = vld [vmem:[%s11431_s3 + $0x8] sm:$0xff]   ;;  %v8739_v2 = vld [vmem:[%s11431_s3 + $0x98] sm:$0xff]   ;;  %v8176_v11 = vadd.f32 %v9912_v7, %v9976_v14 }
 0x1ad   : > { %v7054_v23 = vpop.f32.mrb[51].mxu1  ;;  %7253 = vmatpush3.bf16.msra.mxu0 %v8741_v26  ;;  %7914 = vmatprep.subr.bf16.mxu1 %v8739_v2  ;;  %v8748_v26 = vld [vmem:[%s11431_s3 + $0x60] sm:$0xff]  }
 0x1ae   : > { %v8165_v18 = vadd.f32 %v8164_v54, %v7052_v12  ;;  %v7055_v32 = vadd.f32 %v7054_v23, %v7053_v30  ;;  %7915 = vmatpush3.bf16.msra.mxu1 %v8739_v2 }
 0x1b0   : > { %v8173_v10 = vadd.f32 %v8172_v57, %v7055_v32  ;;  %v9987_v13 = vadd.f32 %v8165_v18, %v9937_v31  ;;  %v7197_v31 = vpop.f32.mrb[50].mxu0  ;;  %v8180_v57 = vadd.f32 %v9902_v55, %v9976_v14  ;;  %v8742_v32 = vld [vmem:[%s11431_s3 + $0x50] sm:$0xff]  }
 0x1b1   : > { %v7198_v54 = vpop.f32.mrb[51].mxu0  ;;  %v8743_v55 = vld [vmem:[%s11431_s3 + $0x10] sm:$0xff]   ;;  %7254 = vmatprep.subr.bf16.mxu0 %v8742_v32  ;;  %v2339_v32 = vld [vmem:[#allocation2 + $0x8] sm:$0x1] }
 0x1b2   : > { %v7056_v1 = vpop.f32.mrb[52].mxu1  ;;  %v9991_v9 = vadd.f32 %v8173_v10, %v7163_v6  ;;  %v9997_v27 = vadd.f32 %v7198_v54, %v7197_v31  ;;  %v7200_v18 = vpop.f32.mrb[52].mxu0  ;;  %7255 = vmatpush3.bf16.msra.mxu0 %v8743_v55  ;;  %v8184_v31 = vadd.f32 %v9916_v50, %v9976_v14 }
 0x1b3   : > { %v7057_v36 = vpop.f32.mrb[53].mxu1  ;;  %v7201_v41 = vpop.f32.mrb[53].mxu0 }
 0x1b4   : > { %v7058_v47 = vadd.f32 %v7057_v36, %v7056_v1  ;;  %v7059_v59 = vpop.f32.mrb[54].mxu1  ;;  %v7203_v1 = vpop.f32.mrb[54].mxu0 }
 0x1b5   : > { %v7060_v16 = vpop.f32.mrb[55].mxu1 }
 0x1b6   : > { %v8161_v8 = vadd.f32 %v8160_v29, %v7058_v47  ;;  %v7061_v22 = vadd.f32 %v7060_v16, %v7059_v59  ;;  %v10020_v29 = vadd.f32 %v7201_v41, %v7200_v18  ;;  %v8745_v59 = vld [vmem:[%s11431_s3 + $0x58] sm:$0xff]  }
 0x1b7   : > { %v8746_v16 = vld [vmem:[%s11431_s3 + $0x18] sm:$0xff]   ;;  %7256 = vmatprep.subr.bf16.mxu0 %v8745_v59 }
 0x1b8   : > { %v8169_v37 = vadd.f32 %v8168_v48, %v7061_v22  ;;  %v9999_v6 = vadd.f32 %v8161_v8, %v7166_v58  ;;  %v8188_v58 = vadd.f32 %v9906_v5, %v9976_v14  ;;  %v7204_v5 = vpop.f32.mrb[55].mxu0  ;;  %7257 = vmatpush3.bf16.msra.mxu0 %v8746_v16 }
 0x1b9   : > { %v10022_v48 = vadd.f32 %v7204_v5, %v7203_v1  ;;  %7258 = vmatprep.subr.bf16.mxu0 %v8748_v26  ;;  %v8747_v1 = vld [vmem:[%s11431_s3 + $0xa8] sm:$0xff]  }
 0x1ba   : > { %v7062_v12 = vpop.f32.mrb[56].mxu1  ;;  %v10010_v30 = vadd.f32 %v8169_v37, %v9959_v42  ;;  %v7206_v4 = vpop.f32.mrb[56].mxu0  ;;  %v8751_v5 = vld [vmem:[%s11431_s3 + $0x28] sm:$0xff]  }
 0x1bb   : > { %v7063_v19 = vpop.f32.mrb[57].mxu1 }
 0x1bc   : > { %v7064_v23 = vadd.f32 %v7063_v19, %v7062_v12  ;;  %v7065_v35 = vpop.f32.mrb[58].mxu1  ;;  %v8749_v12 = vld [vmem:[%s11431_s3 + $0x20] sm:$0xff]  }
 0x1bd   : > { %v7066_v28 = vpop.f32.mrb[59].mxu1  ;;  %7259 = vmatpush3.bf16.msra.mxu0 %v8749_v12 }
 0x1be   : > { %v8181_v42 = vadd.f32 %v8180_v57, %v7064_v23  ;;  %v7067_v10 = vadd.f32 %v7066_v28, %v7065_v35  ;;  %v7207_v57 = vpop.f32.mrb[57].mxu0  ;;  %v2342_v35 = vld [vmem:[#allocation2 + $0x14] sm:$0x1] }
 0x1bf   : > { %v7209_v23 = vpop.f32.mrb[58].mxu0  ;;  %v2343_v28 = vsel %vm9367_vm2, 0, %v2342_v35 }
 0x1c0   : > { %v8189_v36 = vadd.f32 %v8188_v58, %v7067_v10  ;;  %v10025_v47 = vadd.f32 %v8181_v42, %v9961_v45  ;;  %v10052_v58 = vadd.f32 %v7207_v57, %v7206_v4  ;;  %v7210_v18 = vpop.f32.mrb[59].mxu0  ;;  %v8750_v10 = vld [vmem:[%s11431_s3 + $0x68] sm:$0xff]   ;;  %2344 = vst [vmem:[#allocation2 + $0x14] sm:$0x1] %v2343_v28  ;;  %v8754_v4 = vld [vmem:[%s11431_s3 + $0x30] sm:$0xff]  }
 0x1c1   : > { %v10056_v55 = vadd.f32 %v7210_v18, %v7209_v23  ;;  %7260 = vmatprep.subr.bf16.mxu0 %v8750_v10 }
 0x1c2   : > { %v7068_v8 = vpop.f32.mrb[60].mxu1  ;;  %v10039_v45 = vadd.f32 %v8189_v36, %v9963_v24  ;;  %v8744_v24 = vld [vmem:[%s11431_s3 + $0xa0] sm:$0xff]   ;;  %v2340_v36 = vsel %vm9367_vm2, 0, %v2339_v32  ;;  %7261 = vmatpush3.bf16.msra.mxu0 %v8751_v5  ;;  %v8757_v32 = vld [vmem:[%s11431_s3 + $0x78] sm:$0xff]  }
 0x1c3   : > { %v7069_v22 = vpop.f32.mrb[61].mxu1  ;;  %7916 = vmatprep.subr.bf16.mxu1 %v8744_v24  ;;  %2341 = vst [vmem:[#allocation2 + $0x8] sm:$0x1] %v2340_v36  ;;  %v8758_v5 = vld [vmem:[%s11431_s3 + $0x38] sm:$0xff]  }
 0x1c4   : > { %v7070_v54 = vadd.f32 %v7069_v22, %v7068_v8  ;;  %v7071_v37 = vpop.f32.mrb[62].mxu1  ;;  %7917 = vmatpush3.bf16.msra.mxu1 %v8744_v24  ;;  %v2348_v24 = vld [vmem:[#allocation2 + $0x2c] sm:$0x1] }
 0x1c5   : > { %v7072_v7 = vpop.f32.mrb[63].mxu1  ;;  %7918 = vmatprep.subr.bf16.mxu1 %v8747_v1  ;;  %v2349_v28 = vsel %vm9367_vm2, 0, %v2348_v24 }
 0x1c6   : > { %v8177_v19 = vadd.f32 %v8176_v11, %v7070_v54  ;;  %v7073_v50 = vadd.f32 %v7072_v7, %v7071_v37  ;;  %v8204_v11 = vadd.f32 %v9926_v51, %v9976_v14  ;;  %2350 = vst [vmem:[#allocation2 + $0x2c] sm:$0x1] %v2349_v28 }
 0x1c8   : > { %v8185_v41 = vadd.f32 %v8184_v31, %v7073_v50  ;;  %v10059_v42 = vadd.f32 %v8177_v19, %v9965_v38  ;;  %v8196_v38 = vadd.f32 %v9922_v63, %v9976_v14  ;;  %v7212_v31 = vpop.f32.mrb[60].mxu0  ;;  %7919 = vmatpush3.bf16.msra.mxu1 %v8747_v1  ;;  %v8753_v63 = vld [vmem:[%s11431_s3 + $0x70] sm:$0xff]   ;;  %v2345_v19 = vld [vmem:[#allocation2 + $0x20] sm:$0x1] }
 0x1c9   : > { %v7213_v37 = vpop.f32.mrb[61].mxu0  ;;  %7262 = vmatprep.subr.bf16.mxu0 %v8753_v63  ;;  %v2346_v18 = vsel %vm9367_vm2, 0, %v2345_v19 }
 0x1ca   : > { %v7074_v59 = vpop.f32.mrb[64].mxu1  ;;  %v10075_v2 = vadd.f32 %v8185_v41, %v9967_v17  ;;  %v8752_v17 = vld [vmem:[%s11431_s3 + $0xb0] sm:$0xff]   ;;  %v10088_v7 = vadd.f32 %v7213_v37, %v7212_v31  ;;  %v7215_v57 = vpop.f32.mrb[62].mxu0  ;;  %7263 = vmatpush3.bf16.msra.mxu0 %v8754_v4  ;;  %2347 = vst [vmem:[#allocation2 + $0x20] sm:$0x1] %v2346_v18  ;;  %v8192_v41 = vadd.f32 %v9928_v60, %v9976_v14 }
 0x1cb   : > { %v7075_v16 = vpop.f32.mrb[65].mxu1  ;;  %v7216_v12 = vpop.f32.mrb[63].mxu0  ;;  %7920 = vmatprep.subr.bf16.mxu1 %v8752_v17  ;;  %7264 = vmatprep.subr.bf16.mxu0 %v8757_v32  ;;  %v2354_v37 = vld [vmem:[#allocation2 + $0x44] sm:$0x1] }
 0x1cc   : > { %v7076_v8 = vadd.f32 %v7075_v16, %v7074_v59  ;;  %v7077_v22 = vpop.f32.mrb[66].mxu1  ;;  %v10090_v23 = vadd.f32 %v7216_v12, %v7215_v57  ;;  %7921 = vmatpush3.bf16.msra.mxu1 %v8752_v17  ;;  %v7218_v16 = vpop.f32.mrb[64].mxu0 }
 0x1cd   : > { %v7078_v54 = vpop.f32.mrb[67].mxu1 }
 0x1ce   : > { %v8197_v26 = vadd.f32 %v8196_v38, %v7076_v8  ;;  %v7079_v51 = vadd.f32 %v7078_v54, %v7077_v22  ;;  %v8200_v38 = vadd.f32 %v9933_v39, %v9976_v14  ;;  %7265 = vmatpush3.bf16.msra.mxu0 %v8758_v5 }
 0x1d0   : > { %v8205_v50 = vadd.f32 %v8204_v11, %v7079_v51  ;;  %v10093_v35 = vadd.f32 %v8197_v26, %v9969_v61  ;;  %v8756_v61 = vld [vmem:[%s11431_s3 + $0xb8] sm:$0xff]   ;;  %v7219_v11 = vpop.f32.mrb[65].mxu0  ;;  %v2355_v26 = vsel %vm9367_vm2, 0, %v2354_v37  ;;  %v8208_v37 = vadd.f32 %v9874_v49, %v9976_v14  ;;  %v2363_v49 = vld [vmem:[#allocation2 + $0x68] sm:$0x1] }
 0x1d1   : > { %7922 = vmatprep.subr.bf16.mxu1 %v8756_v61  ;;  %v10115_v31 = vadd.f32 %v7219_v11, %v7218_v16  ;;  %v7221_v63 = vpop.f32.mrb[66].mxu0  ;;  %v2351_v51 = vld [vmem:[#allocation2 + $0x38] sm:$0x1]  ;;  %2356 = vst [vmem:[#allocation2 + $0x44] sm:$0x1] %v2355_v26 }
 0x1d2   : > { %v7080_v10 = vpop.f32.mrb[68].mxu1  ;;  %v10105_v1 = vadd.f32 %v8205_v50, %v9971_v33  ;;  %7923 = vmatpush3.bf16.msra.mxu1 %v8756_v61  ;;  %v7222_v54 = vpop.f32.mrb[67].mxu0  ;;  %v2352_v19 = vsel %vm9367_vm2, 0, %v2351_v51  ;;  %v8212_v50 = vadd.f32 %v9864_v20, %v9976_v14 }
 0x1d3   : > { %v7081_v36 = vpop.f32.mrb[69].mxu1  ;;  %v10117_v4 = vadd.f32 %v7222_v54, %v7221_v63  ;;  %2353 = vst [vmem:[#allocation2 + $0x38] sm:$0x1] %v2352_v19 }
 0x1d4   : > { %v7082_v59 = vadd.f32 %v7081_v36, %v7080_v10  ;;  %v7083_v60 = vpop.f32.mrb[70].mxu1  ;;  %v8220_v10 = vadd.f32 %v9869_v21, %v9976_v14  ;;  %v2360_v21 = vld [vmem:[#allocation2 + $0x5c] sm:$0x1] }
 0x1d5   : > { %v7084_v33 = vpop.f32.mrb[71].mxu1  ;;  %v2361_v54 = vsel %vm9367_vm2, 0, %v2360_v21 }
 0x1d6   : > { %v8193_v8 = vadd.f32 %v8192_v41, %v7082_v59  ;;  %v7085_v22 = vadd.f32 %v7084_v33, %v7083_v60  ;;  %2362 = vst [vmem:[#allocation2 + $0x5c] sm:$0x1] %v2361_v54 }
 0x1d8   : > { %v8201_v17 = vadd.f32 %v8200_v38, %v7085_v22  ;;  %v10120_v39 = vadd.f32 %v8193_v8, %v9982_v0  ;;  %v7224_v0 = vpop.f32.mrb[68].mxu0  ;;  %v10138_v38 = vld [vmem:[%s11431_s3 + $0x140] sm:$0xff]   ;;  %v2357_v8 = vld [vmem:[#allocation2 + $0x50] sm:$0x1] }
 0x1d9   : > { %v7225_v41 = vpop.f32.mrb[69].mxu0  ;;  %7944 = vmatprep.subr.bf16.mxu1 %v10138_v38  ;;  %v2358_v63 = vsel %vm9367_vm2, 0, %v2357_v8  ;;  %v2369_v8 = vld [vmem:[#allocation2 + $0x80] sm:$0x1] }
 0x1da   : > { %v7086_v57 = vpop.f32.mrb[72].mxu1  ;;  %v10125_v24 = vadd.f32 %v8201_v17, %v9984_v62  ;;  %v10133_v62 = vadd.f32 %v7225_v41, %v7224_v0  ;;  %v7227_v36 = vpop.f32.mrb[70].mxu0  ;;  %2359 = vst [vmem:[#allocation2 + $0x50] sm:$0x1] %v2358_v63  ;;  %v8224_v63 = vadd.f32 %v9898_v56, %v9976_v14 }
 0x1db   : > { %v7087_v12 = vpop.f32.mrb[73].mxu1  ;;  %v7228_v20 = vpop.f32.mrb[71].mxu0 }
 0x1dc   : > { %v7088_v18 = vadd.f32 %v7087_v12, %v7086_v57  ;;  %v7089_v32 = vpop.f32.mrb[74].mxu1  ;;  %v10140_v60 = vadd.f32 %v7228_v20, %v7227_v36 }
 0x1dd   : > { %v7090_v28 = vpop.f32.mrb[75].mxu1 }
 0x1de   : > { %v8213_v61 = vadd.f32 %v8212_v50, %v7088_v18  ;;  %v7091_v5 = vadd.f32 %v7090_v28, %v7089_v32  ;;  %v2366_v50 = vld [vmem:[#allocation2 + $0x74] sm:$0x1] }
 0x1df   : > { %v2367_v0 = vsel %vm9367_vm2, 0, %v2366_v50  ;;  %v8244_v50 = vadd.f32 %v9908_v40, %v9976_v14  ;;  %v8240_v40 = vadd.f32 %v9918_v52, %v9976_v14  ;;  %v10215_v52 = vstv %s6234_s19 }
 0x1e0   : > { %v8221_v59 = vadd.f32 %v8220_v10, %v7091_v5  ;;  %v10143_v16 = vadd.f32 %v8213_v61, %v9995_v53  ;;  %2368 = vst [vmem:[#allocation2 + $0x74] sm:$0x1] %v2367_v0  ;;  %vm2257_vm11 = vcmp.ge.s32.totalorder %v10215_v52, 0  ;;  %vm2269_vm12 = vcmp.lt.s32.totalorder %v10215_v52, 16 }
 0x1e2   : > { %v7092_v33 = vpop.f32.mrb[76].mxu1  ;;  %v10147_v11 = vadd.f32 %v8221_v59, %v9997_v27  ;;  %v8216_v27 = vadd.f32 %v9876_v3, %v9976_v14  ;;  %v8228_v3 = vadd.f32 %v9884_v43, %v9976_v14 }
 0x1e3   : > { %v7093_v22 = vpop.f32.mrb[77].mxu1 }
 0x1e4   : > { %v7094_v53 = vadd.f32 %v7093_v22, %v7092_v33  ;;  %v7095_v17 = vpop.f32.mrb[78].mxu1  ;;  %v2372_v22 = vld [vmem:[#allocation2 + $0x8c] sm:$0x1] }
 0x1e5   : > { %v7096_v26 = vpop.f32.mrb[79].mxu1 }
 0x1e6   : > { %v8209_v51 = vadd.f32 %v8208_v37, %v7094_v53  ;;  %v7097_v57 = vadd.f32 %v7096_v26, %v7095_v17  ;;  %v8232_v17 = vadd.f32 %v9900_v15, %v9976_v14  ;;  %v8252_v15 = vadd.f32 %v9910_v44, %v9976_v14 }
 0x1e7   : > { %v8248_v44 = vadd.f32 %v9920_v46, %v9976_v14  ;;  %v10219_v46 = vadd.s32 3, %v10215_v52 }
 0x1e8   : > { %v8217_v12 = vadd.f32 %v8216_v27, %v7097_v57  ;;  %v10158_v19 = vadd.f32 %v8209_v51, %v10020_v29  ;;  %v2364_v29 = vsel %vm9367_vm2, 0, %v2363_v49 }
 0x1e9   : > { %2365 = vst [vmem:[#allocation2 + $0x68] sm:$0x1] %v2364_v29 }
 0x1ea   : > { %v7098_v18 = vpop.f32.mrb[80].mxu1  ;;  %v10161_v32 = vadd.f32 %v8217_v12, %v10022_v48  ;;  %v8236_v48 = vadd.f32 %v9890_v34, %v9976_v14  ;;  %v2370_v34 = vsel %vm9367_vm2, 0, %v2369_v8  ;;  %v2234_v8 = vadd.s32 1, %v10215_v52 }
 0x1eb   : > { %v7099_v28 = vpop.f32.mrb[81].mxu1  ;;  %2371 = vst [vmem:[#allocation2 + $0x80] sm:$0x1] %v2370_v34  ;;  %v10234_v34 = vadd.s32 7, %v10215_v52 }
 0x1ec   : > { %v7100_v41 = vadd.f32 %v7099_v28, %v7098_v18  ;;  %v7101_v10 = vpop.f32.mrb[82].mxu1  ;;  %v6433_v14 = vadd.s32 4294967294, %v2234_v8 }
 0x1ed   : > { %v7102_v61 = vpop.f32.mrb[83].mxu1 }
 0x1ee   : > { %v8229_v5 = vadd.f32 %v8228_v3, %v7100_v41  ;;  %v7103_v36 = vadd.f32 %v7102_v61, %v7101_v10  ;;  %vm2256_vm4 = vcmp.ge.s32.totalorder %v6433_v14, 0  ;;  %vm2268_vm5 = vcmp.lt.s32.totalorder %v6433_v14, 16 }
 0x1ef   : > { %vm2280_vm10 = vmand %vm2256_vm4, %vm2268_vm5 }
 0x1f0   : > { %v8237_v20 = vadd.f32 %v8236_v48, %v7103_v36  ;;  %v10172_v59 = vadd.f32 %v8229_v5, %v10052_v58  ;;  %v2373_v58 = vsel %vm9367_vm2, 0, %v2372_v22  ;;  %v10222_v22 = vadd.s32 5, %v10215_v52  ;;  %vm10244_vm4 = vmand %vm2257_vm11, %vm2269_vm12 }
 0x1f1   : > { %2374 = vst [vmem:[#allocation2 + $0x8c] sm:$0x1] %v2373_v58 }
 0x1f2   : > { %v7104_v21 = vpop.f32.mrb[84].mxu1  ;;  %v10175_v33 = vadd.f32 %v8237_v20, %v10056_v55 }
 0x1f3   : > { %v7105_v43 = vpop.f32.mrb[85].mxu1 }
 0x1f4   : > { %v7106_v54 = vadd.f32 %v7105_v43, %v7104_v21  ;;  %v7107_v37 = vpop.f32.mrb[86].mxu1 }
 0x1f5   : > { %v7108_v53 = vpop.f32.mrb[87].mxu1 }
 0x1f6   : > { %v8225_v55 = vadd.f32 %v8224_v63, %v7106_v54  ;;  %v7109_v26 = vadd.f32 %v7108_v53, %v7107_v37  ;;  %v6432_v63 = vadd.s32 4294967294, %v10215_v52  ;;  %v6436_v54 = vadd.s32 4294967294, %v10222_v22  ;;  %v8761_v53 = vld [vmem:[#allocation2 + $0x14] ss:$0 sps:$4 sm:$0x11]  }
 0x1f8   : > { %v8233_v27 = vadd.f32 %v8232_v17, %v7109_v26  ;;  %v10186_v51 = vadd.f32 %v8225_v55, %v10088_v7  ;;  %vm2255_vm6 = vcmp.ge.s32.totalorder %v6432_v63, 0  ;;  %vm2267_vm7 = vcmp.lt.s32.totalorder %v6432_v63, 16 }
 0x1f9   : > { %vm2279_vm13 = vmand %vm2255_vm6, %vm2267_vm7  ;;  %vm2260_vm14 = vcmp.ge.s32.totalorder %v6436_v54, 0  ;;  %vm2272_vm15 = vcmp.lt.s32.totalorder %v6436_v54, 16  ;;  %v9108_v26 = vmov 0.0  }
 0x1fa   : > { %v7110_v56 = vpop.f32.mrb[88].mxu1  ;;  %v10189_v57 = vadd.f32 %v8233_v27, %v10090_v23  ;;  %v6444_v27 = vsel %vm2280_vm10, 1.0, %v9108_v26  ;;  %vm10255_vm5 = vmand %vm2260_vm14, %vm2272_vm15 }
 0x1fb   : > { %v7111_v12 = vpop.f32.mrb[89].mxu1 }
 0x1fc   : > { %v7112_v18 = vadd.f32 %v7111_v12, %v7110_v56  ;;  %v7113_v49 = vpop.f32.mrb[90].mxu1 }
 0x1fd   : > { %v7114_v0 = vpop.f32.mrb[91].mxu1 }
 0x1fe   : > { %v8245_v28 = vadd.f32 %v8244_v50, %v7112_v18  ;;  %v7115_v3 = vadd.f32 %v7114_v0, %v7113_v49  ;;  %v10249_v50 = vadd.s32 6, %v10215_v52  ;;  %v6443_v49 = vsel %vm2279_vm13, 1.0, %v9108_v26 }
 0x200   : > { %v8253_v41 = vadd.f32 %v8252_v15, %v7115_v3  ;;  %v10196_v7 = vadd.f32 %v8245_v28, %v10115_v31  ;;  %v8790_v31 = vld [vmem:[%s11431_s3 + $0x100] sm:$0xff]   ;;  %v2757_v15 = vshll.u32 %v8761_v53, 16  ;;  %v10260_v28 = vadd.s32 9, %v10215_v52 }
 0x201   : > { %7344 = vmatprep.subr.bf16.mxu0 %v8790_v31  ;;  %v6437_v31 = vadd.s32 4294967294, %v10249_v50 }
 0x202   : > { %v7116_v10 = vpop.f32.mrb[92].mxu1  ;;  %v10199_v23 = vadd.f32 %v8253_v41, %v10117_v4  ;;  %v10287_v8 = vrot.slane %v2757_v15, 1  ;;  %v6440_v14 = vadd.s32 4294967294, %v10260_v28 }
 0x203   : > { %v7117_v29 = vpop.f32.mrb[93].mxu1 }
 0x204   : > { %v7118_v61 = vadd.f32 %v7117_v29, %v7116_v10  ;;  %v7119_v48 = vpop.f32.mrb[94].mxu1  ;;  %v10267_v29 = vadd.s32 8, %v10215_v52  ;;  %vm2264_vm10 = vcmp.ge.s32.totalorder %v6440_v14, 0  ;;  %vm2276_vm11 = vcmp.lt.s32.totalorder %v6440_v14, 16 }
 0x205   : > { %v7120_v5 = vpop.f32.mrb[95].mxu1 }
 0x206   : > { %v8241_v36 = vadd.f32 %v8240_v40, %v7118_v61  ;;  %v7121_v20 = vadd.f32 %v7120_v5, %v7119_v48  ;;  %v8759_v5 = vld [vmem:[#allocation2 + $0x8] ss:$0 sps:$4 sm:$0x11]   ;;  %v6439_v54 = vadd.s32 4294967294, %v10267_v29 }
 0x208   : > { %v8249_v21 = vadd.f32 %v8248_v44, %v7121_v20  ;;  %v10209_v4 = vadd.f32 %v8241_v36, %v10133_v62  ;;  %v10226_v62 = vadd.s32 4, %v10215_v52  ;;  %v10281_v20 = vsel %vm10255_vm5, 1.0, %v9108_v26 }
 0x209   : > { %vm2263_vm13 = vcmp.ge.s32.totalorder %v6439_v54, 0  ;;  %vm2275_vm15 = vcmp.lt.s32.totalorder %v6439_v54, 16 }
 0x20a   : > { %v10212_v43 = vadd.f32 %v8249_v21, %v10140_v60  ;;  %v6434_v60 = vadd.s32 4294967294, %v10219_v46  ;;  %v6435_v37 = vadd.s32 4294967294, %v10226_v62 }
 0x20c   : > { %vm2258_vm8 = vcmp.ge.s32.totalorder %v6434_v60, 0  ;;  %vm2270_vm9 = vcmp.lt.s32.totalorder %v6434_v60, 16  ;;  %vm2259_vm1 = vcmp.ge.s32.totalorder %v6435_v37, 0  ;;  %vm2271_vm3 = vcmp.lt.s32.totalorder %v6435_v37, 16 }
 0x20d   : > { %vm10236_vm0 = vmand %vm2258_vm8, %vm2270_vm9  ;;  %v8765_v37 = vld [vmem:[#allocation2 + $0x20] ss:$0 sps:$4 sm:$0x11]   ;;  %vm2261_vm8 = vcmp.ge.s32.totalorder %v6437_v31, 0  ;;  %vm2273_vm9 = vcmp.lt.s32.totalorder %v6437_v31, 16 }
 0x20e   : > { %vm2283_vm6 = vmand %vm2259_vm1, %vm2271_vm3  ;;  %v6446_v48 = vsel %vm10236_vm0, 1.0, %v9108_v26 }
 0x20f   : > { %v10285_v21 = vsel %vm2283_vm6, 1.0, %v9108_v26  ;;  %vm2285_vm14 = vmand %vm2261_vm8, %vm2273_vm9  ;;  %vm11476_vm8 = vsmask.f32 7424 }
 0x210   : > { %vm2288_vm0 = vmand %vm2264_vm10, %vm2276_vm11 }
 0x211   : > { %vm10312_vm1 = vmand %vm2263_vm13, %vm2275_vm15 }
 0x212   : > { %vm11477_vm9 = vmmov %vm11476_vm8 }
 0x213   : > { %vm11480_vm11 = vmmov %vm11476_vm8 }
 0x214   : > { %vm11482_vm13 = vmmov %vm11476_vm8 }
 0x215   : > { %vm11484_vm15 = vmmov %vm11476_vm8 }
 0x23a   : > { %v7886_v58 = vpop.f32.mrb[24].mxu1 }
 0x23b   : > { %v8163_v55 = vadd.f32 %v9999_v6, %v7886_v58  ;;  %v2090_v56 = vpop.f32.mrb[25].mxu1 }
 0x23c   : > { %v8167_v18 = vadd.f32 %v9987_v13, %v2090_v56  ;;  %v7887_v0 = vpop.f32.mrb[26].mxu1  ;;  %v6438_v13 = vadd.s32 4294967294, %v10234_v34 }
 0x23d   : > { %v2211_v3 = vmax.f32 %v8163_v55, 0.0  ;;  %v8171_v41 = vadd.f32 %v10010_v30, %v7887_v0  ;;  %v2093_v10 = vpop.f32.mrb[27].mxu1  ;;  %v10276_v30 = vsel %vm10244_vm4, 1.0, %v9108_v26  ;;  %v2750_v55 = vshll.u32 %v8759_v5, 16 }
 0x23e   : > { %v2209_v40 = vmax.f32 %v8167_v18, 0.0  ;;  %v8175_v61 = vadd.f32 %v9991_v9, %v2093_v10  ;;  %vm2262_vm3 = vcmp.ge.s32.totalorder %v6438_v13, 0  ;;  %vm2274_vm7 = vcmp.lt.s32.totalorder %v6438_v13, 16  ;;  %v8767_v0 = vld [vmem:[#allocation2 + $0x2c] ss:$0 sps:$4 sm:$0x11]  }
 0x23f   : > { %v2317_v44 = vmul.f32 %v6444_v27, %v2211_v3  ;;  %v2212_v36 = vmax.f32 %v8171_v41, 0.0  ;;  %v8773_v3 = vld [vmem:[#allocation2 + $0x44] ss:$0 sps:$4 sm:$0x11]   ;;  %vm2286_vm12 = vmand %vm2262_vm3, %vm2274_vm7  ;;  %v2242_v13 = vadd.s32 10, %v10215_v52 }
 0x240   : > { %v2210_v9 = vmax.f32 %v8175_v61, 0.0  ;;  %v2315_v53 = vmul.f32 %v6443_v49, %v2209_v40 }
 0x241   : > { %v6819_v63 = vpack.c.bf16 %v2317_v44, %v2317_v44  ;;  %v2318_v60 = vmul.f32 %v6444_v27, %v2212_v36 }
 0x242   : > { %v2316_v58 = vmul.f32 %v6443_v49, %v2210_v9  ;;  %v7890_v17 = vpop.f32.mrb[28].mxu1  ;;  %v10304_v9 = vsel %vm2286_vm12, 1.0, %v9108_v26  ;;  %vm11481_vm12 = vmmov %vm11476_vm8 }
 0x243   : > { %2473 = vst [vmem:[#allocation2 + $0xc] sm:$0xf] %v6819_v63  ;;  %v6820_v56 = vpack.c.bf16 %v2318_v60, %v2318_v60  ;;  %v8179_v12 = vadd.f32 %v10059_v42, %v7890_v17  ;;  %v2106_v18 = vpop.f32.mrb[29].mxu1  ;;  %v2764_v42 = vshll.u32 %v8765_v37, 16  ;;  %v10306_v63 = vrot.slane %v2750_v55, 1 }
 0x244   : > { %v6865_v6 = vpack.c.bf16 %v2316_v58, %v2315_v53  ;;  %v8183_v27 = vadd.f32 %v10025_v47, %v2106_v18  ;;  %v7891_v15 = vpop.f32.mrb[30].mxu1  ;;  %v2243_v47 = vadd.s32 11, %v10215_v52  ;;  %v10309_v37 = vsel %vm2285_vm14, 1.0, %v9108_v26  ;;  %vm11483_vm14 = vmmov %vm11476_vm8 }
 0x245   : > { %2474 = vst [vmem:[#allocation2 + $0x10] sm:$0xf] %v6820_v56  ;;  %v2215_v49 = vmax.f32 %v8179_v12, 0.0  ;;  %v8187_v41 = vadd.f32 %v10075_v2, %v7891_v15  ;;  %v2109_v10 = vpop.f32.mrb[31].mxu1  ;;  %v2771_v2 = vshll.u32 %v8767_v0, 16  ;;  %v10316_v14 = vrot.slane %v2764_v42, 1 }
 0x246   : > { %6866 = vst [vmem:[#allocation2] sm:$0xff] %v6865_v6   ;;  %v2213_v40 = vmax.f32 %v8183_v27, 0.0  ;;  %v8191_v61 = vadd.f32 %v10039_v45, %v2109_v10  ;;  %v2785_v45 = vshll.u32 %v8773_v3, 16  ;;  %v10321_v55 = vsel %vm2288_vm0, 1.0, %v9108_v26  ;;  %vm11485_vm0 = vmmov %vm11476_vm8 }
 0x247   : > { %v2321_v5 = vmul.f32 %v6446_v48, %v2215_v49  ;;  %v2216_v44 = vmax.f32 %v8187_v41, 0.0  ;;  %v6442_v12 = vadd.s32 4294967294, %v2243_v47  ;;  %v10324_v0 = vrot.slane %v2771_v2, 1 }
 0x248   : > { %v2214_v36 = vmax.f32 %v8191_v61, 0.0  ;;  %v2319_v58 = vmul.f32 %v10276_v30, %v2213_v40  ;;  %v10326_v6 = vadd.s32 4294967294, %v2242_v13  ;;  %v10334_v41 = vsel %vm10312_vm1, 1.0, %v9108_v26  ;;  %v10343_v13 = vld [vmem:[#allocation2 + $0x38] ss:$0 sps:$4 sm:$0x11]   ;;  %vm11486_vm1 = vmmov %vm11485_vm0 }
 0x249   : > { %v6823_v31 = vpack.c.bf16 %v2321_v5, %v2321_v5  ;;  %v2322_v60 = vmul.f32 %v6446_v48, %v2216_v44  ;;  %v10336_v10 = vrot.slane %v2785_v45, 1  ;;  %vm2266_vm4 = vcmp.ge.s32.totalorder %v6442_v12, 0 }
 0x24a   : > { %v2320_v17 = vmul.f32 %v10276_v30, %v2214_v36  ;;  %v7894_v56 = vpop.f32.mrb[32].mxu1  ;;  %vm2278_vm5 = vcmp.lt.s32.totalorder %v6442_v12, 16  ;;  %vm2265_vm6 = vcmp.ge.s32.totalorder %v10326_v6, 0  ;;  %vm2277_vm3 = vcmp.lt.s32.totalorder %v10326_v6, 16  ;;  %v8793_v12 = vld [vmem:[%s11431_s3 + $0x108] sm:$0xff]  }
 0x24b   : > { %2477 = vst [vmem:[#allocation2 + $0x24] sm:$0xf] %v6823_v31  ;;  %v6824_v48 = vpack.c.bf16 %v2322_v60, %v2322_v60  ;;  %v8195_v18 = vadd.f32 %v10120_v39, %v7894_v56  ;;  %v2122_v54 = vpop.f32.mrb[33].mxu1  ;;  %vm10365_vm7 = vmand %vm2266_vm4, %vm2278_vm5  ;;  %v8795_v6 = vld [vmem:[%s11431_s3 + $0xc8] sm:$0xff]  }
 0x24c   : > { %v6870_v27 = vpack.c.bf16 %v2320_v17, %v2319_v58  ;;  %v8199_v15 = vadd.f32 %v10093_v35, %v2122_v54  ;;  %v7895_v3 = vpop.f32.mrb[34].mxu1  ;;  %v10329_v49 = vld [vmem:[#allocation2 + $0xc] sm:$0xff]   ;;  %vm10399_vm10 = vmand %vm2265_vm6, %vm2277_vm3 }
 0x24d   : > { %2478 = vst [vmem:[#allocation2 + $0x28] sm:$0xf] %v6824_v48  ;;  %v2219_v39 = vmax.f32 %v8195_v18, 0.0  ;;  %v8203_v42 = vadd.f32 %v10125_v24, %v7895_v3  ;;  %v2125_v40 = vpop.f32.mrb[35].mxu1  ;;  %v8755_v35 = vld [vmem:[#allocation2] sm:$0xff]   ;;  %v2602_v5 = vshll.u32 %v10329_v49, 16  ;;  %vm11487_vm4 = vmmov %vm11485_vm0 }
 0x24e   : > { %6917 = vst [vmem:[#allocation2 + $0x18] sm:$0xff] %v6870_v27   ;;  %v2217_v61 = vmax.f32 %v8199_v15, 0.0  ;;  %v8207_v47 = vadd.f32 %v10105_v1, %v2125_v40  ;;  %v2592_v45 = vshrl.u32 %v8755_v35, 16  ;;  %v2595_v24 = vshll.u32 %v8755_v35, 16  ;;  %3074 = vmatprep.mubr.bf16.mxu0 %v8755_v35  ;;  %vm11488_vm5 = vmmov %vm11485_vm0 }
 0x24f   : > { %v2325_v44 = vmul.f32 %v10281_v20, %v2219_v39  ;;  %v2220_v2 = vmax.f32 %v8203_v42, 0.0  ;;  %v2599_v60 = vshrl.u32 %v10329_v49, 16  ;;  %v2754_v53 = vrot.slane %v2602_v5, 1  ;;  %vm11489_vm6 = vmmov %vm11485_vm0 }
 0x250   : > { %v2218_v36 = vmax.f32 %v8207_v47, 0.0  ;;  %v2323_v58 = vmul.f32 %v10285_v21, %v2217_v61  ;;  %v2594_v48 = vrot.slane %v2592_v45, 7  ;;  %v2747_v18 = vrot.slane %v2595_v24, 1 }
 0x251   : > { %v6827_v31 = vpack.c.bf16 %v2325_v44, %v2325_v44  ;;  %v2326_v1 = vmul.f32 %v10281_v20, %v2220_v2  ;;  %v2755_v3 = vor.u32 %v2754_v53, %v2599_v60  ;;  %v2778_v20 = vshll.u32 %v10343_v13, 16 }
 0x252   : > { %v2324_v17 = vmul.f32 %v10285_v21, %v2218_v36  ;;  %v7898_v56 = vpop.f32.mrb[36].mxu1  ;;  %v2597_v47 = vor.u32 %v2595_v24, %v2594_v48  ;;  %v2748_v35 = vor.u32 %v2747_v18, %v2592_v45  ;;  %v8791_v21 = vld [vmem:[%s11431_s3 + $0xc0] sm:$0xff]   ;;  %v2601_v36 = vrot.slane %v2599_v60, 7  ;;  %v8763_v60 = vld [vmem:[%s11431_s3 + $0x148] sm:$0xff]  }
 0x253   : > { %2481 = vst [vmem:[#allocation2 + $0x3c] sm:$0xf] %v6827_v31  ;;  %v6828_v54 = vpack.c.bf16 %v2326_v1, %v2326_v1  ;;  %v8211_v27 = vadd.f32 %v10158_v19, %v7898_v56  ;;  %v2138_v15 = vpop.f32.mrb[37].mxu1  ;;  %v10393_v18 = vsel %vm10365_vm7, 1.0, %v9108_v26 }
 0x254   : > { %v6875_v39 = vpack.c.bf16 %v2324_v17, %v2323_v58  ;;  %v8215_v42 = vadd.f32 %v10143_v16, %v2138_v15  ;;  %v7899_v40 = vpop.f32.mrb[38].mxu1  ;;  %v10355_v61 = vld [vmem:[#allocation2 + $0x24] sm:$0xff]   ;;  %v2687_v1 = vsel %vm9367_vm2, 0, %v2597_v47  ;;  %v2604_v15 = vor.u32 %v2602_v5, %v2601_v36  ;;  %v8768_v5 = vld [vmem:[%s11431_s3 + $0x150] sm:$0xff]  }
 0x255   : > { %2482 = vst [vmem:[#allocation2 + $0x40] sm:$0xf] %v6828_v54  ;;  %v2223_v44 = vmax.f32 %v8211_v27, 0.0  ;;  %v8219_v19 = vadd.f32 %v10161_v32, %v7899_v40  ;;  %v2141_v2 = vpop.f32.mrb[39].mxu1  ;;  %v10361_v31 = vld [vmem:[#allocation2 + $0x18] sm:$0xff]   ;;  %v2753_v32 = vsel %vm11476_vm8, %v2748_v35, %v10306_v63  ;;  %3075 = vmatmul.mubr.bf16.vlgmr.msra.gmra.mrb[72].mxu0 %v2687_v1  ;;  %v2616_v48 = vshll.u32 %v10355_v61, 16 }
 0x256   : > { %6918 = vst [vmem:[#allocation2 + $0x30] sm:$0xff] %v6875_v39   ;;  %v2221_v45 = vmax.f32 %v8215_v42, 0.0  ;;  %v8223_v24 = vadd.f32 %v10147_v11, %v2141_v2  ;;  %7924 = vmatprep.mubr.bf16.mxu1 %v2753_v32  ;;  %v10383_v11 = vsel %vm11477_vm9, %v2755_v3, %v10287_v8  ;;  %v2609_v17 = vshll.u32 %v10361_v31, 16  ;;  %3082 = vmatprep.mubr.bf16.mxu0 %v10329_v49 }
 0x257   : > { %v2329_v53 = vmul.f32 %v10304_v9, %v2223_v44  ;;  %v2224_v58 = vmax.f32 %v8219_v19, 0.0  ;;  %7925 = vmatmul.mubr.bf16.vlgmr.msra.gmra.mrb[96].mxu1 %v10383_v11  ;;  %v2606_v56 = vshrl.u32 %v10361_v31, 16  ;;  %7345 = vmatpush3.bf16.msra.mxu0 %v8791_v21  ;;  %v8796_v19 = vld [vmem:[%s11431_s3 + $0x110] sm:$0xff]  }
 0x258   : > { %v2222_v63 = vmax.f32 %v8223_v24, 0.0  ;;  %7945 = vmatpush3.bf16.msra.mxu1 %v10138_v38  ;;  %v2761_v3 = vrot.slane %v2609_v17, 1  ;;  %v2327_v39 = vmul.f32 %v10309_v37, %v2221_v45  ;;  %v2768_v38 = vrot.slane %v2616_v48, 1  ;;  %7346 = vmatprep.subr.bf16.mxu0 %v8793_v12 }
 0x259   : > { %v6831_v54 = vpack.c.bf16 %v2329_v53, %v2329_v53  ;;  %v2330_v27 = vmul.f32 %v10304_v9, %v2224_v58  ;;  %7946 = vmatprep.subr.bf16.mxu1 %v8763_v60  ;;  %v2613_v9 = vshrl.u32 %v10355_v61, 16  ;;  %v2608_v24 = vrot.slane %v2606_v56, 7 }
 0x25a   : > { %v2328_v42 = vmul.f32 %v10309_v37, %v2222_v63  ;;  %v7902_v40 = vpop.f32.mrb[40].mxu1  ;;  %v2762_v44 = vor.u32 %v2761_v3, %v2606_v56  ;;  %v10424_v37 = vsel %vm10399_vm10, 1.0, %v9108_v26 }
 0x25b   : > { %2485 = vst [vmem:[#allocation2 + $0x54] sm:$0xf] %v6831_v54  ;;  %v6832_v47 = vpack.c.bf16 %v2330_v27, %v2330_v27  ;;  %v8227_v35 = vadd.f32 %v10186_v51, %v7902_v40  ;;  %v2154_v21 = vpop.f32.mrb[41].mxu1  ;;  %v2769_v45 = vor.u32 %v2768_v38, %v2613_v9  ;;  %7347 = vmatpush3.bf16.msra.mxu0 %v8795_v6 }
 0x25c   : > { %v6880_v2 = vpack.c.bf16 %v2328_v42, %v2327_v39  ;;  %v8231_v36 = vadd.f32 %v10172_v59, %v2154_v21  ;;  %v7903_v16 = vpop.f32.mrb[42].mxu1  ;;  %v10432_v51 = vld [vmem:[#allocation2 + $0x3c] sm:$0xff]   ;;  %7947 = vmatpush3.bf16.msra.mxu1 %v8763_v60  ;;  %v10437_v53 = vsel %vm11480_vm11, %v2762_v44, %v10316_v14  ;;  %v8798_v59 = vld [vmem:[%s11431_s3 + $0xd0] sm:$0xff]   ;;  %7348 = vmatprep.subr.bf16.mxu0 %v8796_v19  ;;  %v2780_v39 = vrot.slane %v2778_v20, 1 }
 0x25d   : > { %2486 = vst [vmem:[#allocation2 + $0x58] sm:$0xf] %v6832_v47  ;;  %v2227_v1 = vmax.f32 %v8227_v35, 0.0  ;;  %v8235_v32 = vadd.f32 %v10189_v57, %v7903_v16  ;;  %v2157_v12 = vpop.f32.mrb[43].mxu1  ;;  %v10439_v58 = vld [vmem:[#allocation2 + $0x30] sm:$0xff]   ;;  %v10447_v57 = vsel %vm9367_vm2, 0, %v2604_v15  ;;  %7928 = vmatprep.mubr.bf16.mxu1 %v10437_v53  ;;  %7948 = vmatprep.subr.bf16.mxu1 %v8768_v5  ;;  %v2611_v6 = vor.u32 %v2609_v17, %v2608_v24 }
 0x25e   : > { %6919 = vst [vmem:[#allocation2 + $0x48] sm:$0xff] %v6880_v2   ;;  %v2225_v63 = vmax.f32 %v8231_v36, 0.0  ;;  %v8239_v56 = vadd.f32 %v10175_v33, %v2157_v12  ;;  %v8771_v14 = vld [vmem:[%s11431_s3 + $0x158] sm:$0xff]   ;;  %3083 = vmatmul.mubr.bf16.gmra.mrb[76].mxu0 %v10447_v57  ;;  %v10460_v33 = vsel %vm11481_vm12, %v2769_v45, %v10324_v0  ;;  %v2623_v27 = vshll.u32 %v10439_v58, 16  ;;  %v8774_v44 = vld [vmem:[%s11431_s3 + $0x160] sm:$0xff]  }
 0x25f   : > { %v8800_v60 = vld [vmem:[%s11431_s3 + $0x118] sm:$0xff]   ;;  %v2333_v8 = vmul.f32 %v10321_v55, %v2227_v1  ;;  %v2228_v54 = vmax.f32 %v8235_v32, 0.0  ;;  %v10463_v15 = vld [vmem:[#allocation2 + $0x50] ss:$0 sps:$4 sm:$0x11]   ;;  %3090 = vmatprep.mubr.bf16.mxu0 %v10361_v31  ;;  %7929 = vmatmul.mubr.bf16.gmra.mrb[100].mxu1 %v10460_v33  ;;  %v2630_v42 = vshll.u32 %v10432_v51, 16 }
 0x260   : > { %v2226_v3 = vmax.f32 %v8239_v56, 0.0  ;;  %7949 = vmatpush3.bf16.msra.mxu1 %v8768_v5  ;;  %v2620_v38 = vshrl.u32 %v10439_v58, 16  ;;  %v2775_v47 = vrot.slane %v2623_v27, 1  ;;  %v10476_v35 = vld [vmem:[#allocation2 + $0x5c] ss:$0 sps:$4 sm:$0x11]   ;;  %7349 = vmatpush3.bf16.msra.mxu0 %v8798_v59  ;;  %v2331_v13 = vmul.f32 %v10334_v41, %v2225_v63 }
 0x261   : > { %v6835_v0 = vpack.c.bf16 %v2333_v8, %v2333_v8  ;;  %v2334_v40 = vmul.f32 %v10321_v55, %v2228_v54  ;;  %v8801_v17 = vld [vmem:[%s11431_s3 + $0xd8] sm:$0xff]   ;;  %7950 = vmatprep.subr.bf16.mxu1 %v8771_v14  ;;  %v2627_v55 = vshrl.u32 %v10432_v51, 16  ;;  %v2782_v5 = vrot.slane %v2630_v42, 1  ;;  %7350 = vmatprep.subr.bf16.mxu0 %v8800_v60  ;;  %v8804_v45 = vld [vmem:[%s11431_s3 + $0x120] sm:$0xff]  }
 0x262   : > { %v2332_v20 = vmul.f32 %v10334_v41, %v2226_v3  ;;  %v7906_v21 = vpop.f32.mrb[44].mxu1  ;;  %v2776_v41 = vor.u32 %v2775_v47, %v2620_v38  ;;  %v2792_v16 = vshll.u32 %v10463_v15, 16  ;;  %v8805_v63 = vld [vmem:[%s11431_s3 + $0xe0] sm:$0xff]   ;;  %v10513_v15 = vsel %vm9367_vm2, 0, %v2611_v6 }
 0x263   : > { %2489 = vst [vmem:[#allocation2 + $0x6c] sm:$0xf] %v6835_v0  ;;  %v6836_v19 = vpack.c.bf16 %v2334_v40, %v2334_v40  ;;  %v8243_v2 = vadd.f32 %v10209_v4, %v7906_v21  ;;  %v2170_v36 = vpop.f32.mrb[45].mxu1  ;;  %v2783_v12 = vor.u32 %v2782_v5, %v2627_v55  ;;  %v2615_v4 = vrot.slane %v2613_v9, 7 }
 0x264   : > { %v6885_v24 = vpack.c.bf16 %v2332_v20, %v2331_v13  ;;  %v8247_v1 = vadd.f32 %v10196_v7, %v2170_v36  ;;  %v7907_v32 = vpop.f32.mrb[46].mxu1  ;;  %v10501_v59 = vld [vmem:[#allocation2 + $0x54] sm:$0xff]   ;;  %v10508_v7 = vsel %vm11482_vm13, %v2776_v41, %v2780_v39  ;;  %7951 = vmatpush3.bf16.msra.mxu1 %v8771_v14  ;;  %7351 = vmatpush3.bf16.msra.mxu0 %v8801_v17  ;;  %v8779_v14 = vld [vmem:[%s11431_s3 + $0x168] sm:$0xff]   ;;  %v2794_v13 = vrot.slane %v2792_v16, 1 }
 0x265   : > { %2490 = vst [vmem:[#allocation2 + $0x70] sm:$0xf] %v6836_v19  ;;  %v2231_v56 = vmax.f32 %v8243_v2, 0.0  ;;  %v8251_v60 = vadd.f32 %v10212_v43, %v7907_v32  ;;  %v2173_v8 = vpop.f32.mrb[47].mxu1  ;;  %7932 = vmatprep.mubr.bf16.mxu1 %v10508_v7  ;;  %7952 = vmatprep.subr.bf16.mxu1 %v8774_v44  ;;  %v10516_v3 = vld [vmem:[#allocation2 + $0x48] sm:$0xff]   ;;  %v2799_v43 = vshll.u32 %v10476_v35, 16  ;;  %v10529_v6 = vsel %vm11483_vm14, %v2783_v12, %v10336_v10 }
 0x266   : > { %6920 = vst [vmem:[#allocation2 + $0x60] sm:$0xff] %v6885_v24   ;;  %v2229_v54 = vmax.f32 %v8247_v1, 0.0  ;;  %v8255_v9 = vadd.f32 %v10199_v23, %v2173_v8  ;;  %v8808_v39 = vld [vmem:[%s11431_s3 + $0x128] sm:$0xff]   ;;  %3091 = vmatmul.mubr.bf16.gmra.mrb[80].mxu0 %v10513_v15  ;;  %v2644_v40 = vshll.u32 %v10501_v59, 16  ;;  %7352 = vmatprep.subr.bf16.mxu0 %v8804_v45  ;;  %v2618_v35 = vor.u32 %v2616_v48, %v2615_v4  ;;  %v8811_v16 = vld [vmem:[%s11431_s3 + $0x130] sm:$0xff]  }
 0x267   : > { %v2337_v23 = vmul.f32 %v10393_v18, %v2231_v56  ;;  %v2232_v0 = vmax.f32 %v8251_v60, 0.0  ;;  %3098 = vmatprep.mubr.bf16.mxu0 %v10355_v61  ;;  %7933 = vmatmul.mubr.bf16.gmra.mrb[104].mxu1 %v10529_v6  ;;  %v2637_v17 = vshll.u32 %v10516_v3, 16  ;;  %v2641_v10 = vshrl.u32 %v10501_v59, 16  ;;  %v8782_v19 = vld [vmem:[#allocation2 + $0x68] ss:$0 sps:$4 sm:$0x11]  }
 0x268   : > { %v2230_v47 = vmax.f32 %v8255_v9, 0.0  ;;  %7953 = vmatpush3.bf16.msra.mxu1 %v8774_v44  ;;  %v2796_v5 = vrot.slane %v2644_v40, 1  ;;  %7353 = vmatpush3.bf16.msra.mxu0 %v8805_v63  ;;  %v8809_v2 = vld [vmem:[%s11431_s3 + $0xe8] sm:$0xff]   ;;  %v2335_v48 = vmul.f32 %v10424_v37, %v2229_v54  ;;  %v2634_v41 = vshrl.u32 %v10516_v3, 16  ;;  %v8780_v44 = vld [vmem:[%s11431_s3 + $0x170] sm:$0xff]  }
 0x269   : > { %v6839_v20 = vpack.c.bf16 %v2337_v23, %v2337_v23  ;;  %v2338_v21 = vmul.f32 %v10393_v18, %v2232_v0  ;;  %v2789_v18 = vrot.slane %v2637_v17, 1  ;;  %7954 = vmatprep.subr.bf16.mxu1 %v8779_v14  ;;  %7354 = vmatprep.subr.bf16.mxu0 %v8808_v39  ;;  %v2801_v24 = vrot.slane %v2799_v43, 1  ;;  %v8784_v1 = vld [vmem:[#allocation2 + $0x74] ss:$0 sps:$4 sm:$0x11]   ;;  %v8816_v39 = vld [vmem:[%s11431_s3 + $0x138] sm:$0xff]  }
 0x26a   : > { %v2336_v36 = vmul.f32 %v10424_v37, %v2230_v47  ;;  %v2797_v37 = vor.u32 %v2796_v5, %v2641_v10  ;;  %v8813_v63 = vld [vmem:[%s11431_s3 + $0xf0] sm:$0xff]   ;;  %v2806_v60 = vshll.u32 %v8782_v19, 16  ;;  %v10568_v8 = vsel %vm9367_vm2, 0, %v2618_v35  ;;  %v8818_v5 = vld [vmem:[%s11431_s3 + $0xf8] sm:$0xff]  }
 0x26b   : > { %2493 = vst [vmem:[#allocation2 + $0x84] sm:$0xf] %v6839_v20  ;;  %v6840_v45 = vpack.c.bf16 %v2338_v21, %v2338_v21  ;;  %v2790_v12 = vor.u32 %v2789_v18, %v2634_v41  ;;  %v2622_v9 = vrot.slane %v2620_v38, 7  ;;  %v2813_v0 = vshll.u32 %v8784_v1, 16 }
 0x26c   : > { %v6890_v32 = vpack.c.bf16 %v2336_v36, %v2335_v48  ;;  %v10559_v4 = vld [vmem:[#allocation2 + $0x6c] sm:$0xff]   ;;  %7955 = vmatpush3.bf16.msra.mxu1 %v8779_v14  ;;  %7355 = vmatpush3.bf16.msra.mxu0 %v8809_v2  ;;  %v8785_v14 = vld [vmem:[%s11431_s3 + $0x178] sm:$0xff]   ;;  %v10585_v23 = vsel %vm11485_vm0, %v2797_v37, %v2801_v24  ;;  %v2808_v20 = vrot.slane %v2806_v60, 1  ;;  %v8786_v2 = vld [vmem:[%s11431_s3 + $0x1c0] sm:$0xff]  }
 0x26d   : > { %2494 = vst [vmem:[#allocation2 + $0x88] sm:$0xf] %v6840_v45  ;;  %v10564_v56 = vld [vmem:[#allocation2 + $0x60] sm:$0xff]   ;;  %v10571_v54 = vsel %vm11484_vm15, %v2790_v12, %v2794_v13  ;;  %7956 = vmatprep.subr.bf16.mxu1 %v8780_v44  ;;  %v2658_v43 = vshll.u32 %v10559_v4, 16  ;;  %7356 = vmatprep.subr.bf16.mxu0 %v8811_v16  ;;  %v2655_v21 = vshrl.u32 %v10559_v4, 16  ;;  %v2625_v19 = vor.u32 %v2623_v27, %v2622_v9 }
 0x26e   : > { %6921 = vst [vmem:[#allocation2 + $0x78] sm:$0xff] %v6890_v32   ;;  %3099 = vmatmul.mubr.bf16.gmra.mrb[84].mxu0 %v10568_v8  ;;  %7936 = vmatprep.mubr.bf16.mxu1 %v10571_v54  ;;  %v2651_v38 = vshll.u32 %v10564_v56, 16  ;;  %v2648_v35 = vshrl.u32 %v10564_v56, 16  ;;  %v2815_v18 = vrot.slane %v2813_v0, 1  ;;  %v2629_v45 = vrot.slane %v2627_v55, 7 }
 0x26f   : > { %3106 = vmatprep.mubr.bf16.mxu0 %v10439_v58  ;;  %7937 = vmatmul.mubr.bf16.gmra.mrb[108].mxu1 %v10585_v23  ;;  %v2810_v47 = vrot.slane %v2658_v43, 1  ;;  %v10615_v27 = vsel %vm9367_vm2, 0, %v2625_v19  ;;  %v2636_v9 = vrot.slane %v2634_v41, 7  ;;  %v8792_v41 = vld [vmem:[%s11431_s3 + $0x1d0] sm:$0xff]  }
 0x270   : > { %v2803_v13 = vrot.slane %v2651_v38, 1  ;;  %7957 = vmatpush3.bf16.msra.mxu1 %v8780_v44  ;;  %7357 = vmatpush3.bf16.msra.mxu0 %v8813_v63  ;;  %v2632_v55 = vor.u32 %v2630_v42, %v2629_v45  ;;  %v8787_v63 = vld [vmem:[%s11431_s3 + $0x180] sm:$0xff]   ;;  %v8789_v42 = vld [vmem:[%s11431_s3 + $0x188] sm:$0xff]   ;;  %v8812_v45 = vld [vmem:[%s11431_s3 + $0x1b0] sm:$0xff]  }
 0x271   : > { %7958 = vmatprep.subr.bf16.mxu1 %v8785_v14  ;;  %7358 = vmatprep.subr.bf16.mxu0 %v8816_v39  ;;  %v2811_v36 = vor.u32 %v2810_v47, %v2655_v21  ;;  %v8794_v39 = vld [vmem:[%s11431_s3 + $0x190] sm:$0xff]   ;;  %v2643_v47 = vrot.slane %v2641_v10, 7 }
 0x272   : > { %v2804_v48 = vor.u32 %v2803_v13, %v2648_v35  ;;  %v10640_v60 = vsel %vm9367_vm2, 0, %v2632_v55  ;;  %v8799_v13 = vld [vmem:[%s11431_s3 + $0x198] sm:$0xff]   ;;  %v2657_v55 = vrot.slane %v2655_v21, 7 }
 0x273   : > { %v10622_v37 = vsel %vm11487_vm4, %v2811_v36, %v2815_v18  ;;  %v2646_v10 = vor.u32 %v2644_v40, %v2643_v47  ;;  %v8806_v40 = vld [vmem:[%s11431_s3 + $0x1e8] sm:$0xff]   ;;  %v8810_v36 = vld [vmem:[%s11431_s3 + $0x1f0] sm:$0xff]   ;;  %v8815_v18 = vld [vmem:[#allocation2 + $0x80] ss:$0 sps:$4 sm:$0x11]  }
 0x274   : > { %v10609_v44 = vsel %vm11486_vm1, %v2804_v48, %v2808_v20  ;;  %7959 = vmatpush3.bf16.msra.mxu1 %v8785_v14  ;;  %7359 = vmatpush3.bf16.msra.mxu0 %v8818_v5  ;;  %v2639_v14 = vor.u32 %v2637_v17, %v2636_v9  ;;  %v8797_v17 = vld [vmem:[%s11431_s3 + $0x1d8] sm:$0xff]   ;;  %v8802_v20 = vld [vmem:[%s11431_s3 + $0x1e0] sm:$0xff]   ;;  %v8807_v48 = vld [vmem:[%s11431_s3 + $0x1a8] sm:$0xff]   ;;  %v2660_v21 = vor.u32 %v2658_v43, %v2657_v55 }
 0x275   : > { %v10611_v16 = vld [vmem:[#allocation2 + $0x78] sm:$0xff]   ;;  %7940 = vmatprep.mubr.bf16.mxu1 %v10609_v44  ;;  %7438 = vmatprep.subr.bf16.mxu1 %v8786_v2  ;;  %v8803_v5 = vld [vmem:[%s11431_s3 + $0x1a0] sm:$0xff]   ;;  %v10688_v19 = vsel %vm9367_vm2, 0, %v2646_v10  ;;  %v2650_v2 = vrot.slane %v2648_v35, 7  ;;  %v8821_v43 = vld [vmem:[%s11431_s3 + $0x208] sm:$0xff]  }
 0x276   : > { %3107 = vmatmul.mubr.bf16.gmra.mrb[88].mxu0 %v10615_v27  ;;  %v2662_v24 = vshrl.u32 %v10611_v16, 16  ;;  %v2665_v1 = vshll.u32 %v10611_v16, 16  ;;  %v10664_v0 = vsel %vm9367_vm2, 0, %v2639_v14  ;;  %v8819_v9 = vld [vmem:[%s11431_s3 + $0x1b8] sm:$0xff]  }
 0x277   : > { %3114 = vmatprep.mubr.bf16.mxu0 %v10432_v51  ;;  %7941 = vmatmul.mubr.bf16.gmra.mrb[112].mxu1 %v10622_v37  ;;  %v2653_v35 = vor.u32 %v2651_v38, %v2650_v2  ;;  %v8817_v38 = vld [vmem:[%s11431_s3 + $0x1f8] sm:$0xff]  }
 0x278   : > { %7960 = vmatprep.mubr.bf16.mxu1 %v10383_v11  ;;  %v2664_v32 = vrot.slane %v2662_v24, 7  ;;  %v8788_v11 = vld [vmem:[%s11431_s3 + $0x1c8] sm:$0xff]   ;;  %v8834_v10 = vld [vmem:[#allocation4 + $0x50] sm:$0xff]  }
 0x27a   : > { %v10633_v12 = vor.u32 %v2665_v1, %v2664_v32  ;;  %v10712_v32 = vsel %vm9367_vm2, 0, %v2653_v35 }
 0x27e   : > { %3115 = vmatmul.mubr.bf16.gmra.mrb[92].mxu0 %v10640_v60 }
 0x27f   : > { %3122 = vmatprep.mubr.bf16.mxu0 %v10516_v3  ;;  %7961 = vmatmul.mubr.bf16.vlgmr.msra.gmra.mrb[96].mxu1 %v10437_v53 }
 0x280   : > { %7964 = vmatprep.mubr.bf16.mxu1 %v10460_v33  ;;  %7439 = vmatpush3.bf16.msra.mxu1 %v8787_v63  ;;  %v2817_v63 = vrot.slane %v2665_v1, 1  ;;  %v8820_v1 = vld [vmem:[%s11431_s3 + $0x200] sm:$0xff]  }
 0x281   : > { %7440 = vmatprep.subr.bf16.mxu1 %v8788_v11  ;;  %v2820_v11 = vshll.u32 %v8815_v18, 16  ;;  %v8837_v18 = vld [vmem:[#allocation4 + $0x18] sm:$0xff]  }
 0x283   : > { %v2822_v14 = vrot.slane %v2820_v11, 1 }
 0x284   : > { %7441 = vmatpush3.bf16.msra.mxu1 %v8789_v42  ;;  %v2818_v42 = vor.u32 %v2817_v63, %v2662_v24  ;;  %v8823_v24 = vld [vmem:[%s11431_s3 + $0x218] sm:$0xff]  }
 0x285   : > { %7442 = vmatprep.subr.bf16.mxu1 %v8792_v41  ;;  %v2696_v41 = vsel %vm9367_vm2, 0, %v2660_v21  ;;  %v8839_v21 = vld [vmem:[#allocation4 + $0x20] sm:$0xff]  }
 0x286   : > { %3123 = vmatmul.mubr.bf16.gmra.mrb[96].mxu0 %v10664_v0 }
 0x287   : > { %3130 = vmatprep.mubr.bf16.mxu0 %v10501_v59  ;;  %7965 = vmatmul.mubr.bf16.gmra.mrb[100].mxu1 %v10508_v7 }
 0x288   : > { %7968 = vmatprep.mubr.bf16.mxu1 %v10529_v6  ;;  %7443 = vmatpush3.bf16.msra.mxu1 %v8794_v39  ;;  %v10736_v39 = vsel %vm11488_vm5, %v2818_v42, %v2822_v14 }
 0x289   : > { %7444 = vmatprep.subr.bf16.mxu1 %v8797_v17 }
 0x28c   : > { %7445 = vmatpush3.bf16.msra.mxu1 %v8799_v13 }
 0x28d   : > { %7446 = vmatprep.subr.bf16.mxu1 %v8802_v20  ;;  %v8835_v20 = vld [vmem:[#allocation4 + $0x10] sm:$0xff]  }
 0x28e   : > { %3131 = vmatmul.mubr.bf16.gmra.mrb[100].mxu0 %v10688_v19 }
 0x28f   : > { %3138 = vmatprep.mubr.bf16.mxu0 %v10564_v56  ;;  %7969 = vmatmul.mubr.bf16.gmra.mrb[104].mxu1 %v10571_v54 }
 0x290   : > { %7972 = vmatprep.mubr.bf16.mxu1 %v10585_v23  ;;  %7447 = vmatpush3.bf16.msra.mxu1 %v8803_v5 }
 0x291   : > { %7448 = vmatprep.subr.bf16.mxu1 %v8806_v40 }
 0x294   : > { %7449 = vmatpush3.bf16.msra.mxu1 %v8807_v48 }
 0x295   : > { %7450 = vmatprep.subr.bf16.mxu1 %v8810_v36  ;;  %v8836_v36 = vld [vmem:[#allocation4 + $0x58] sm:$0xff]  }
 0x296   : > { %3139 = vmatmul.mubr.bf16.gmra.mrb[104].mxu0 %v10712_v32 }
 0x297   : > { %3146 = vmatprep.mubr.bf16.mxu0 %v10559_v4  ;;  %7973 = vmatmul.mubr.bf16.gmra.mrb[108].mxu1 %v10609_v44 }
 0x298   : > { %7976 = vmatprep.mubr.bf16.mxu1 %v10622_v37  ;;  %7451 = vmatpush3.bf16.msra.mxu1 %v8812_v45 }
 0x299   : > { %7452 = vmatprep.subr.bf16.mxu1 %v8817_v38 }
 0x29c   : > { %7453 = vmatpush3.bf16.msra.mxu1 %v8819_v9  ;;  %v8838_v9 = vld [vmem:[#allocation4 + $0x60] sm:$0xff]  }
 0x29d   : > { %7980 = vmatprep.subr.bf16.mxu1 %v8820_v1 }
 0x29e   : > { %3147 = vmatmul.mubr.bf16.gmra.mrb[108].mxu0 %v2696_v41 }
 0x29f   : > { %3513 = vmatprep.mubr.bf16.mxu0 %v10329_v49  ;;  %7977 = vmatmul.mubr.bf16.gmra.mrb[112].mxu1 %v10736_v39  ;;  %v8822_v49 = vld [vmem:[%s11431_s3 + $0x210] sm:$0xff]  }
 0x2a0   : > { %3952 = vmatprep.mubr.bf16.mxu1 %v10361_v31 }
 0x2a6   : > { %3514 = vmatmul.mubr.bf16.vlgmr.msra.gmra.mrb[112].mxu0 %v10447_v57  ;;  %v8825_v57 = vld [vmem:[%s11431_s3 + $0x228] sm:$0xff]  }
 0x2a7   : > { %3521 = vmatprep.mubr.bf16.mxu0 %v10361_v31  ;;  %3953 = vmatmul.mubr.bf16.vlgmr.msra.gmra.mrb[116].mxu1 %v10513_v15  ;;  %v8824_v31 = vld [vmem:[%s11431_s3 + $0x220] sm:$0xff]  }
 0x2a8   : > { %3960 = vmatprep.mubr.bf16.mxu1 %v10355_v61  ;;  %7981 = vmatpush3.bf16.msra.mxu1 %v8820_v1 }
 0x2a9   : > { %7982 = vmatprep.subr.bf16.mxu1 %v8821_v43 }
 0x2ac   : > { %7983 = vmatpush3.bf16.msra.mxu1 %v8821_v43 }
 0x2ad   : > { %7984 = vmatprep.subr.bf16.mxu1 %v8822_v49 }
 0x2ae   : > { %3522 = vmatmul.mubr.bf16.gmra.mrb[116].mxu0 %v10513_v15  ;;  %v8828_v15 = vld [vmem:[%s11431_s3 + $0x238] sm:$0xff]  }
 0x2af   : > { %3529 = vmatprep.mubr.bf16.mxu0 %v10355_v61  ;;  %3961 = vmatmul.mubr.bf16.gmra.mrb[120].mxu1 %v10568_v8  ;;  %v8826_v61 = vld [vmem:[%s11431_s3 + $0x230] sm:$0xff]  }
 0x2b0   : > { %3968 = vmatprep.mubr.bf16.mxu1 %v10439_v58  ;;  %7985 = vmatpush3.bf16.msra.mxu1 %v8822_v49  ;;  %v8840_v49 = vld [vmem:[#allocation4 + $0x100] sm:$0xff]  }
 0x2b1   : > { %7986 = vmatprep.subr.bf16.mxu1 %v8823_v24 }
 0x2b4   : > { %7987 = vmatpush3.bf16.msra.mxu1 %v8823_v24  ;;  %v8841_v24 = vld [vmem:[#allocation4 + $0xc0] sm:$0xff]  }
 0x2b5   : > { %7988 = vmatprep.subr.bf16.mxu1 %v8824_v31 }
 0x2b6   : > { %3530 = vmatmul.mubr.bf16.gmra.mrb[120].mxu0 %v10568_v8 }
 0x2b7   : > { %3537 = vmatprep.mubr.bf16.mxu0 %v10439_v58  ;;  %3969 = vmatmul.mubr.bf16.gmra.mrb[124].mxu1 %v10615_v27 }
 0x2b8   : > { %3976 = vmatprep.mubr.bf16.mxu1 %v10432_v51  ;;  %7989 = vmatpush3.bf16.msra.mxu1 %v8824_v31  ;;  %v8842_v31 = vld [vmem:[#allocation4 + $0x68] sm:$0xff]  }
 0x2b9   : > { %7990 = vmatprep.subr.bf16.mxu1 %v8825_v57 }
 0x2bc   : > { %7991 = vmatpush3.bf16.msra.mxu1 %v8825_v57 }
 0x2bd   : > { %7992 = vmatprep.subr.bf16.mxu1 %v8826_v61 }
 0x2be   : > { %3538 = vmatmul.mubr.bf16.gmra.mrb[124].mxu0 %v10615_v27 }
 0x2bf   : > { %3545 = vmatprep.mubr.bf16.mxu0 %v10432_v51  ;;  %3977 = vmatmul.mubr.bf16.gmra.mrb[128].mxu1 %v10640_v60  ;;  %v8827_v51 = vld [vmem:[#allocation2 + $0x84] sm:$0xff]  }
 0x2c0   : > { %3984 = vmatprep.mubr.bf16.mxu1 %v10516_v3  ;;  %7993 = vmatpush3.bf16.msra.mxu1 %v8826_v61  ;;  %v2669_v58 = vshrl.u32 %v8827_v51, 16 }
 0x2c1   : > { %7994 = vmatprep.subr.bf16.mxu1 %v8828_v15 }
 0x2c4   : > { %7995 = vmatpush3.bf16.msra.mxu1 %v8828_v15 }
 0x2c5   : > { %7612 = vmatprep.subr.bf16.mxu1 %v8840_v49  ;;  %v8862_v49 = vld [vmem:[#allocation4 + $0x138] sm:$0xff]  }
 0x2c6   : > { %3546 = vmatmul.mubr.bf16.gmra.mrb[128].mxu0 %v10640_v60 }
 0x2c7   : > { %3553 = vmatprep.mubr.bf16.mxu0 %v10516_v3  ;;  %3985 = vmatmul.mubr.bf16.gmra.mrb[132].mxu1 %v10664_v0  ;;  %v2671_v3 = vrot.slane %v2669_v58, 7 }
 0x2c8   : > { %3992 = vmatprep.mubr.bf16.mxu1 %v10501_v59 }
 0x2ce   : > { %3554 = vmatmul.mubr.bf16.gmra.mrb[132].mxu0 %v10664_v0 }
 0x2cf   : > { %3561 = vmatprep.mubr.bf16.mxu0 %v10501_v59  ;;  %3993 = vmatmul.mubr.bf16.gmra.mrb[136].mxu1 %v10688_v19  ;;  %v2697_v59 = vsel %vm9367_vm2, 0, %v10633_v12 }
 0x2d0   : > { %4000 = vmatprep.mubr.bf16.mxu1 %v10564_v56 }
 0x2d6   : > { %3562 = vmatmul.mubr.bf16.gmra.mrb[136].mxu0 %v10688_v19 }
 0x2d7   : > { %3569 = vmatprep.mubr.bf16.mxu0 %v10564_v56  ;;  %4001 = vmatmul.mubr.bf16.gmra.mrb[140].mxu1 %v10712_v32  ;;  %v2672_v56 = vshll.u32 %v8827_v51, 16 }
 0x2d8   : > { %4008 = vmatprep.mubr.bf16.mxu1 %v10559_v4 }
 0x2d9   : > { %v2674_v8 = vor.u32 %v2672_v56, %v2671_v3  ;;  %v2824_v27 = vrot.slane %v2672_v56, 1  ;;  %v8845_v3 = vld [vmem:[#allocation4 + $0xc8] sm:$0xff]  }
 0x2de   : > { %3570 = vmatmul.mubr.bf16.gmra.mrb[140].mxu0 %v10712_v32 }
 0x2df   : > { %3577 = vmatprep.mubr.bf16.mxu0 %v10559_v4  ;;  %4009 = vmatmul.mubr.bf16.gmra.mrb[144].mxu1 %v2696_v41  ;;  %v2698_v4 = vsel %vm9367_vm2, 0, %v2674_v8  ;;  %v8846_v8 = vld [vmem:[#allocation4 + $0x110] sm:$0xff]  }
 0x2e0   : > { %4016 = vmatprep.mubr.bf16.mxu1 %v10611_v16 }
 0x2e6   : > { %3578 = vmatmul.mubr.bf16.gmra.mrb[144].mxu0 %v2696_v41 }
 0x2e7   : > { %3585 = vmatprep.mubr.bf16.mxu0 %v10611_v16  ;;  %4017 = vmatmul.mubr.bf16.gmra.mrb[148].mxu1 %v2697_v59  ;;  %v8829_v16 = vld [vmem:[#allocation2 + $0x8c] ss:$0 sps:$4 sm:$0x11]  }
 0x2e8   : > { %4024 = vmatprep.mubr.bf16.mxu1 %v8827_v51  ;;  %v2827_v12 = vshll.u32 %v8829_v16, 16 }
 0x2ea   : > { %v2829_v60 = vrot.slane %v2827_v12, 1 }
 0x2ee   : > { %3586 = vmatmul.mubr.bf16.gmra.mrb[148].mxu0 %v2697_v59 }
 0x2ef   : > { %4025 = vmatmul.mubr.bf16.gmra.mrb[152].mxu1 %v2698_v4  ;;  %v8847_v4 = vld [vmem:[#allocation4 + $0xd0] sm:$0xff]  }
 0x2f0   : > { %7996 = vmatprep.mubr.bf16.mxu1 %v10437_v53  ;;  %v2825_v53 = vor.u32 %v2824_v27, %v2669_v58  ;;  %v8844_v58 = vld [vmem:[#allocation4 + $0x108] sm:$0xff]  }
 0x2f7   : > { %7997 = vmatmul.mubr.bf16.vlgmr.msra.gmra.mrb[96].mxu1 %v10460_v33  ;;  %v2830_v33 = vsel %vm11489_vm6, %v2825_v53, %v2829_v60  ;;  %v8843_v60 = vld [vmem:[#allocation4 + $0x28] sm:$0xff]  }
 0x2f8   : > { %8000 = vmatprep.mubr.bf16.mxu1 %v10508_v7  ;;  %v8830_v7 = vld [vmem:[#allocation4 + $0x40] sm:$0xff]   ;;  %7613 = vmatpush3.bf16.msra.mxu1 %v8841_v24 }
 0x2f9   : > { %7532 = vmatprep.subr.bf16.mxu0 %v8830_v7  ;;  %7614 = vmatprep.subr.bf16.mxu1 %v8844_v58  ;;  %v8857_v58 = vld [vmem:[#allocation4 + $0x38] sm:$0xff]  }
 0x2fc   : > { %7615 = vmatpush3.bf16.msra.mxu1 %v8845_v3 }
 0x2fd   : > { %7616 = vmatprep.subr.bf16.mxu1 %v8846_v8 }
 0x2ff   : > { %8001 = vmatmul.mubr.bf16.gmra.mrb[100].mxu1 %v10529_v6  ;;  %v8831_v6 = vld [vmem:[#allocation4] sm:$0xff]  }
 0x300   : > { %8004 = vmatprep.mubr.bf16.mxu1 %v10571_v54  ;;  %7533 = vmatpush3.bf16.msra.mxu0 %v8831_v6  ;;  %v8832_v54 = vld [vmem:[#allocation4 + $0x48] sm:$0xff]   ;;  %v8850_v6 = vld [vmem:[#allocation4 + $0xd8] sm:$0xff]  }
 0x301   : > { %7534 = vmatprep.subr.bf16.mxu0 %v8832_v54  ;;  %7617 = vmatpush3.bf16.msra.mxu1 %v8847_v4 }
 0x307   : > { %8005 = vmatmul.mubr.bf16.gmra.mrb[104].mxu1 %v10585_v23  ;;  %v8833_v23 = vld [vmem:[#allocation4 + $0x8] sm:$0xff]  }
 0x308   : > { %8008 = vmatprep.mubr.bf16.mxu1 %v10609_v44  ;;  %7535 = vmatpush3.bf16.msra.mxu0 %v8833_v23  ;;  %v8852_v23 = vld [vmem:[#allocation4 + $0x120] sm:$0xff]  }
 0x309   : > { %7536 = vmatprep.subr.bf16.mxu0 %v8834_v10  ;;  %v4264_v10 = vld [vmem:[#allocation3 + $0x14] sm:$0x1] }
 0x30c   : > { %7537 = vmatpush3.bf16.msra.mxu0 %v8835_v20 }
 0x30d   : > { %7538 = vmatprep.subr.bf16.mxu0 %v8836_v36  ;;  %v4265_v36 = vsel %vm9367_vm2, 0, %v4264_v10 }
 0x30e   : > { %4266 = vst [vmem:[#allocation3 + $0x14] sm:$0x1] %v4265_v36 }
 0x30f   : > { %8009 = vmatmul.mubr.bf16.gmra.mrb[108].mxu1 %v10622_v37 }
 0x310   : > { %8012 = vmatprep.mubr.bf16.mxu1 %v10736_v39  ;;  %7539 = vmatpush3.bf16.msra.mxu0 %v8837_v18 }
 0x311   : > { %7540 = vmatprep.subr.bf16.mxu0 %v8838_v9  ;;  %v8859_v9 = vld [vmem:[#allocation4 + $0xf0] sm:$0xff]  }
 0x314   : > { %7541 = vmatpush3.bf16.msra.mxu0 %v8839_v21 }
 0x315   : > { %7542 = vmatprep.subr.bf16.mxu0 %v8842_v31 }
 0x317   : > { %8013 = vmatmul.mubr.bf16.gmra.mrb[112].mxu1 %v2830_v33  ;;  %v8848_v33 = vld [vmem:[#allocation4 + $0x118] sm:$0xff]  }
 0x318   : > { %7543 = vmatpush3.bf16.msra.mxu0 %v8843_v60  ;;  %7618 = vmatprep.subr.bf16.mxu1 %v8848_v33  ;;  %v4273_v33 = vld [vmem:[#allocation3 + $0x38] sm:$0x1] }
 0x319   : > { %7619 = vmatpush3.bf16.msra.mxu1 %v8850_v6  ;;  %v4274_v6 = vsel %vm9367_vm2, 0, %v4273_v33 }
 0x31a   : > { %7620 = vmatprep.subr.bf16.mxu1 %v8852_v23  ;;  %4275 = vst [vmem:[#allocation3 + $0x38] sm:$0x1] %v4274_v6 }
 0x328   : > { %v7266_v44 = vpop.f32.mrb[72].mxu0 }
 0x329   : > { %v7267_v0 = vpop.f32.mrb[73].mxu0 }
 0x32a   : > { %v10809_v47 = vadd.f32 %v7267_v0, %v7266_v44  ;;  %v7269_v37 = vpop.f32.mrb[74].mxu0  ;;  %v8853_v44 = vld [vmem:[#allocation4 + $0xe0] sm:$0xff]  }
 0x32b   : > { %v7270_v17 = vpop.f32.mrb[75].mxu0  ;;  %7621 = vmatpush3.bf16.msra.mxu1 %v8853_v44  ;;  %v10857_v44 = vld [vmem:[#allocation4 + $0x80] sm:$0xff]  }
 0x32c   : > { %v10811_v13 = vadd.f32 %v7270_v17, %v7269_v37  ;;  %v4261_v17 = vld [vmem:[#allocation3 + $0x8] sm:$0x1] }
 0x331   : > { %v7272_v5 = vpop.f32.mrb[76].mxu0 }
 0x332   : > { %v7273_v19 = vpop.f32.mrb[77].mxu0 }
 0x333   : > { %v10813_v2 = vadd.f32 %v7273_v19, %v7272_v5  ;;  %v7275_v40 = vpop.f32.mrb[78].mxu0  ;;  %v8849_v19 = vld [vmem:[#allocation4 + $0x70] sm:$0xff]  }
 0x334   : > { %v7276_v48 = vpop.f32.mrb[79].mxu0  ;;  %7544 = vmatprep.subr.bf16.mxu0 %v8849_v19 }
 0x335   : > { %v10815_v35 = vadd.f32 %v7276_v48, %v7275_v40  ;;  %v8854_v40 = vld [vmem:[#allocation4 + $0x128] sm:$0xff]   ;;  %v4262_v48 = vsel %vm9367_vm2, 0, %v4261_v17 }
 0x336   : > { %4263 = vst [vmem:[#allocation3 + $0x8] sm:$0x1] %v4262_v48  ;;  %7622 = vmatprep.subr.bf16.mxu1 %v8854_v40  ;;  %v4279_v40 = vld [vmem:[#allocation3 + $0x50] sm:$0x1] }
 0x339   : > { %v7278_v45 = vpop.f32.mrb[80].mxu0 }
 0x33a   : > { %v7279_v32 = vpop.f32.mrb[81].mxu0 }
 0x33b   : > { %v10817_v55 = vadd.f32 %v7279_v32, %v7278_v45  ;;  %v7281_v38 = vpop.f32.mrb[82].mxu0  ;;  %v8855_v45 = vld [vmem:[#allocation4 + $0xe8] sm:$0xff]  }
 0x33c   : > { %v7282_v63 = vpop.f32.mrb[83].mxu0  ;;  %7623 = vmatpush3.bf16.msra.mxu1 %v8855_v45  ;;  %v10871_v45 = vld [vmem:[%s11432_s4] ss:$0 sm:$0xff] }
 0x33d   : > { %v10819_v11 = vadd.f32 %v7282_v63, %v7281_v38  ;;  %v8851_v38 = vld [vmem:[#allocation4 + $0x30] sm:$0xff]  }
 0x33e   : > { %7545 = vmatpush3.bf16.msra.mxu0 %v8851_v38  ;;  %v8858_v63 = vld [vmem:[#allocation4 + $0x130] sm:$0xff]  }
 0x33f   : > { %7624 = vmatprep.subr.bf16.mxu1 %v8858_v63 }
 0x340   : > { %7625 = vmatpush3.bf16.msra.mxu1 %v8859_v9 }
 0x341   : > { %v7284_v1 = vpop.f32.mrb[84].mxu0  ;;  %7626 = vmatprep.subr.bf16.mxu1 %v8862_v49  ;;  %v4288_v49 = vld [vmem:[#allocation3 + $0x74] sm:$0x1] }
 0x342   : > { %v7285_v42 = vpop.f32.mrb[85].mxu0 }
 0x343   : > { %v10821_v14 = vadd.f32 %v7285_v42, %v7284_v1  ;;  %v7287_v41 = vpop.f32.mrb[86].mxu0  ;;  %v4270_v42 = vld [vmem:[#allocation3 + $0x2c] sm:$0x1] }
 0x344   : > { %v7288_v39 = vpop.f32.mrb[87].mxu0  ;;  %v4271_v24 = vsel %vm9367_vm2, 0, %v4270_v42 }
 0x345   : > { %v10823_v43 = vadd.f32 %v7288_v39, %v7287_v41  ;;  %4272 = vst [vmem:[#allocation3 + $0x2c] sm:$0x1] %v4271_v24 }
 0x349   : > { %v7290_v57 = vpop.f32.mrb[88].mxu0 }
 0x34a   : > { %v7291_v61 = vpop.f32.mrb[89].mxu0 }
 0x34b   : > { %v10825_v15 = vadd.f32 %v7291_v61, %v7290_v57  ;;  %v7293_v51 = vpop.f32.mrb[90].mxu0  ;;  %v8856_v57 = vld [vmem:[#allocation4 + $0x78] sm:$0xff]  }
 0x34c   : > { %v7294_v59 = vpop.f32.mrb[91].mxu0  ;;  %v8863_v61 = vld [vmem:[#allocation4 + $0xf8] sm:$0xff]   ;;  %7546 = vmatprep.subr.bf16.mxu0 %v8856_v57 }
 0x34d   : > { %v10827_v56 = vadd.f32 %v7294_v59, %v7293_v51  ;;  %7627 = vmatpush3.bf16.msra.mxu1 %v8863_v61  ;;  %v4267_v59 = vld [vmem:[#allocation3 + $0x20] sm:$0x1]  ;;  %7547 = vmatpush3.bf16.msra.mxu0 %v8857_v58  ;;  %v4285_v61 = vld [vmem:[#allocation3 + $0x68] sm:$0x1]  ;;  %v8268_v58 = vadd.f32 %v10811_v13, %v10871_v45 }
 0x34e   : > { %v4268_v3 = vsel %vm9367_vm2, 0, %v4267_v59  ;;  %8016 = vmatprep.subr.bf16.mxu0 %v10857_v44 }
 0x34f   : > { %4269 = vst [vmem:[#allocation3 + $0x20] sm:$0x1] %v4268_v3 }
 0x351   : > { %v7296_v16 = vpop.f32.mrb[92].mxu0 }
 0x352   : > { %v7297_v27 = vpop.f32.mrb[93].mxu0 }
 0x353   : > { %v10829_v12 = vadd.f32 %v7297_v27, %v7296_v16  ;;  %v7299_v53 = vpop.f32.mrb[94].mxu0 }
 0x354   : > { %v7300_v7 = vpop.f32.mrb[95].mxu0 }
 0x355   : > { %v10831_v54 = vadd.f32 %v7300_v7, %v7299_v53  ;;  %v4276_v53 = vld [vmem:[#allocation3 + $0x44] sm:$0x1] }
 0x356   : > { %v4277_v23 = vsel %vm9367_vm2, 0, %v4276_v53 }
 0x357   : > { %4278 = vst [vmem:[#allocation3 + $0x44] sm:$0x1] %v4277_v23 }
 0x359   : > { %v7302_v0 = vpop.f32.mrb[96].mxu0 }
 0x35a   : > { %v7303_v37 = vpop.f32.mrb[97].mxu0 }
 0x35b   : > { %v10833_v20 = vadd.f32 %v7303_v37, %v7302_v0  ;;  %v7305_v5 = vpop.f32.mrb[98].mxu0 }
 0x35c   : > { %v7306_v18 = vpop.f32.mrb[99].mxu0 }
 0x35d   : > { %v10839_v32 = vadd.f32 %v7306_v18, %v7305_v5  ;;  %v4282_v5 = vld [vmem:[#allocation3 + $0x5c] sm:$0x1]  ;;  %v4280_v18 = vsel %vm9367_vm2, 0, %v4279_v40 }
 0x35e   : > { %v4283_v48 = vsel %vm9367_vm2, 0, %v4282_v5  ;;  %4281 = vst [vmem:[#allocation3 + $0x50] sm:$0x1] %v4280_v18  ;;  %v8264_v18 = vadd.f32 %v10815_v35, %v10871_v45 }
 0x35f   : > { %4284 = vst [vmem:[#allocation3 + $0x5c] sm:$0x1] %v4283_v48 }
 0x361   : > { %v7308_v21 = vpop.f32.mrb[100].mxu0 }
 0x362   : > { %v7309_v1 = vpop.f32.mrb[101].mxu0 }
 0x363   : > { %v10841_v41 = vadd.f32 %v7309_v1, %v7308_v21  ;;  %v7311_v39 = vpop.f32.mrb[102].mxu0  ;;  %v8260_v21 = vadd.f32 %v10809_v47, %v10871_v45  ;;  %v4289_v47 = vsel %vm9367_vm2, 0, %v4288_v49 }
 0x364   : > { %v7312_v31 = vpop.f32.mrb[103].mxu0  ;;  %4290 = vst [vmem:[#allocation3 + $0x74] sm:$0x1] %v4289_v47 }
 0x365   : > { %v10845_v51 = vadd.f32 %v7312_v31, %v7311_v39 }
 0x369   : > { %v7314_v8 = vpop.f32.mrb[104].mxu0 }
 0x36a   : > { %v7315_v4 = vpop.f32.mrb[105].mxu0 }
 0x36b   : > { %v10849_v16 = vadd.f32 %v7315_v4, %v7314_v8  ;;  %v7317_v27 = vpop.f32.mrb[106].mxu0 }
 0x36c   : > { %v7318_v60 = vpop.f32.mrb[107].mxu0 }
 0x36d   : > { %v10851_v7 = vadd.f32 %v7318_v60, %v7317_v27  ;;  %v4286_v27 = vsel %vm9367_vm2, 0, %v4285_v61 }
 0x36e   : > { %4287 = vst [vmem:[#allocation3 + $0x68] sm:$0x1] %v4286_v27 }
 0x371   : > { %v7320_v0 = vpop.f32.mrb[108].mxu0 }
 0x372   : > { %v7321_v37 = vpop.f32.mrb[109].mxu0 }
 0x373   : > { %v10860_v17 = vadd.f32 %v7321_v37, %v7320_v0  ;;  %v7323_v10 = vpop.f32.mrb[110].mxu0  ;;  %v8256_v0 = vadd.f32 %v10813_v2, %v10871_v45 }
 0x374   : > { %v7324_v19 = vpop.f32.mrb[111].mxu0 }
 0x375   : > { %v10864_v36 = vadd.f32 %v7324_v19, %v7323_v10 }
 0x379   : > { %v7360_v38 = vpop.f32.mrb[112].mxu0 }
 0x37a   : > { %v7361_v63 = vpop.f32.mrb[113].mxu0  ;;  %v7454_v9 = vpop.f32.mrb[116].mxu1 }
 0x37b   : > { %v7362_v1 = vadd.f32 %v7361_v63, %v7360_v38  ;;  %v7363_v42 = vpop.f32.mrb[114].mxu0  ;;  %v7455_v39 = vpop.f32.mrb[117].mxu1 }
 0x37c   : > { %v7456_v24 = vadd.f32 %v7455_v39, %v7454_v9  ;;  %v7364_v31 = vpop.f32.mrb[115].mxu0  ;;  %v7457_v57 = vpop.f32.mrb[118].mxu1 }
 0x37d   : > { %v8261_v59 = vadd.f32 %v8260_v21, %v7362_v1  ;;  %v7365_v3 = vadd.f32 %v7364_v31, %v7363_v42  ;;  %v7458_v8 = vpop.f32.mrb[119].mxu1  ;;  %v8276_v31 = vadd.f32 %v10817_v55, %v10871_v45 }
 0x37e   : > { %v7459_v4 = vadd.f32 %v7458_v8, %v7457_v57  ;;  %v8284_v8 = vadd.f32 %v10819_v11, %v10871_v45 }
 0x37f   : > { %v8269_v53 = vadd.f32 %v8268_v58, %v7365_v3  ;;  %v10881_v60 = vadd.f32 %v8261_v59, %v7456_v24 }
 0x381   : > { %v7366_v33 = vpop.f32.mrb[116].mxu0  ;;  %v10883_v6 = vadd.f32 %v8269_v53, %v7459_v4 }
 0x382   : > { %v7367_v23 = vpop.f32.mrb[117].mxu0  ;;  %v7460_v13 = vpop.f32.mrb[120].mxu1 }
 0x383   : > { %v7368_v37 = vadd.f32 %v7367_v23, %v7366_v33  ;;  %v7369_v10 = vpop.f32.mrb[118].mxu0  ;;  %v7461_v5 = vpop.f32.mrb[121].mxu1 }
 0x384   : > { %v7462_v19 = vadd.f32 %v7461_v5, %v7460_v13  ;;  %v7370_v40 = vpop.f32.mrb[119].mxu0  ;;  %v7463_v48 = vpop.f32.mrb[122].mxu1 }
 0x385   : > { %v8257_v38 = vadd.f32 %v8256_v0, %v7368_v37  ;;  %v7371_v63 = vadd.f32 %v7370_v40, %v7369_v10  ;;  %v7464_v9 = vpop.f32.mrb[123].mxu1  ;;  %v8272_v10 = vadd.f32 %v10821_v14, %v10871_v45 }
 0x386   : > { %v7465_v21 = vadd.f32 %v7464_v9, %v7463_v48 }
 0x387   : > { %v8265_v1 = vadd.f32 %v8264_v18, %v7371_v63  ;;  %v10889_v42 = vadd.f32 %v8257_v38, %v7462_v19  ;;  %v8280_v38 = vadd.f32 %v10823_v43, %v10871_v45 }
 0x389   : > { %v7372_v39 = vpop.f32.mrb[120].mxu0  ;;  %v10891_v49 = vadd.f32 %v8265_v1, %v7465_v21 }
 0x38a   : > { %v7373_v2 = vpop.f32.mrb[121].mxu0  ;;  %v7466_v24 = vpop.f32.mrb[124].mxu1 }
 0x38b   : > { %v7374_v57 = vadd.f32 %v7373_v2, %v7372_v39  ;;  %v7375_v61 = vpop.f32.mrb[122].mxu0  ;;  %v7467_v58 = vpop.f32.mrb[125].mxu1 }
 0x38c   : > { %v7468_v59 = vadd.f32 %v7467_v58, %v7466_v24  ;;  %v7376_v35 = vpop.f32.mrb[123].mxu0  ;;  %v7469_v3 = vpop.f32.mrb[126].mxu1 }
 0x38d   : > { %v8277_v4 = vadd.f32 %v8276_v31, %v7374_v57  ;;  %v7377_v27 = vadd.f32 %v7376_v35, %v7375_v61  ;;  %v7470_v47 = vpop.f32.mrb[127].mxu1  ;;  %v8292_v61 = vadd.f32 %v10825_v15, %v10871_v45 }
 0x38e   : > { %v7471_v53 = vadd.f32 %v7470_v47, %v7469_v3 }
 0x38f   : > { %v8285_v33 = vadd.f32 %v8284_v8, %v7377_v27  ;;  %v10897_v23 = vadd.f32 %v8277_v4, %v7468_v59  ;;  %v8300_v4 = vadd.f32 %v10827_v56, %v10871_v45 }
 0x391   : > { %v7378_v13 = vpop.f32.mrb[124].mxu0  ;;  %v10899_v0 = vadd.f32 %v8285_v33, %v7471_v53 }
 0x392   : > { %v7379_v55 = vpop.f32.mrb[125].mxu0  ;;  %v7472_v37 = vpop.f32.mrb[128].mxu1 }
 0x393   : > { %v7380_v5 = vadd.f32 %v7379_v55, %v7378_v13  ;;  %v7381_v19 = vpop.f32.mrb[126].mxu0  ;;  %v7473_v40 = vpop.f32.mrb[129].mxu1 }
 0x394   : > { %v7474_v48 = vadd.f32 %v7473_v40, %v7472_v37  ;;  %v7382_v11 = vpop.f32.mrb[127].mxu0  ;;  %v7475_v18 = vpop.f32.mrb[130].mxu1 }
 0x395   : > { %v8273_v63 = vadd.f32 %v8272_v10, %v7380_v5  ;;  %v7383_v9 = vadd.f32 %v7382_v11, %v7381_v19  ;;  %v7476_v21 = vpop.f32.mrb[131].mxu1  ;;  %v8288_v19 = vadd.f32 %v10829_v12, %v10871_v45 }
 0x396   : > { %v7477_v1 = vadd.f32 %v7476_v21, %v7475_v18 }
 0x397   : > { %v8281_v39 = vadd.f32 %v8280_v38, %v7383_v9  ;;  %v10905_v2 = vadd.f32 %v8273_v63, %v7474_v48  ;;  %v8296_v63 = vadd.f32 %v10831_v54, %v10871_v45 }
 0x399   : > { %v7384_v24 = vpop.f32.mrb[128].mxu0  ;;  %v10907_v31 = vadd.f32 %v8281_v39, %v7477_v1 }
 0x39a   : > { %v7385_v14 = vpop.f32.mrb[129].mxu0  ;;  %v7478_v57 = vpop.f32.mrb[132].mxu1 }
 0x39b   : > { %v7386_v58 = vadd.f32 %v7385_v14, %v7384_v24  ;;  %v7387_v59 = vpop.f32.mrb[130].mxu0  ;;  %v7479_v35 = vpop.f32.mrb[133].mxu1 }
 0x39c   : > { %v7480_v3 = vadd.f32 %v7479_v35, %v7478_v57  ;;  %v7388_v43 = vpop.f32.mrb[131].mxu0  ;;  %v7481_v8 = vpop.f32.mrb[134].mxu1 }
 0x39d   : > { %v8293_v27 = vadd.f32 %v8292_v61, %v7386_v58  ;;  %v7389_v47 = vadd.f32 %v7388_v43, %v7387_v59  ;;  %v7482_v53 = vpop.f32.mrb[135].mxu1  ;;  %v8308_v59 = vadd.f32 %v10833_v20, %v10871_v45 }
 0x39e   : > { %v7483_v33 = vadd.f32 %v7482_v53, %v7481_v8 }
 0x39f   : > { %v8301_v13 = vadd.f32 %v8300_v4, %v7389_v47  ;;  %v10913_v55 = vadd.f32 %v8293_v27, %v7480_v3  ;;  %v8316_v27 = vadd.f32 %v10839_v32, %v10871_v45 }
 0x3a1   : > { %v7390_v37 = vpop.f32.mrb[132].mxu0  ;;  %v10915_v10 = vadd.f32 %v8301_v13, %v7483_v33 }
 0x3a2   : > { %v7391_v15 = vpop.f32.mrb[133].mxu0  ;;  %v7484_v5 = vpop.f32.mrb[136].mxu1 }
 0x3a3   : > { %v7392_v40 = vadd.f32 %v7391_v15, %v7390_v37  ;;  %v7393_v48 = vpop.f32.mrb[134].mxu0  ;;  %v7485_v11 = vpop.f32.mrb[137].mxu1 }
 0x3a4   : > { %v7486_v18 = vadd.f32 %v7485_v11, %v7484_v5  ;;  %v7394_v56 = vpop.f32.mrb[135].mxu0  ;;  %v7487_v38 = vpop.f32.mrb[138].mxu1 }
 0x3a5   : > { %v8289_v9 = vadd.f32 %v8288_v19, %v7392_v40  ;;  %v7395_v21 = vadd.f32 %v7394_v56, %v7393_v48  ;;  %v7488_v1 = vpop.f32.mrb[139].mxu1  ;;  %v8304_v48 = vadd.f32 %v10841_v41, %v10871_v45 }
 0x3a6   : > { %v7489_v39 = vadd.f32 %v7488_v1, %v7487_v38 }
 0x3a7   : > { %v8297_v24 = vadd.f32 %v8296_v63, %v7395_v21  ;;  %v10921_v14 = vadd.f32 %v8289_v9, %v7486_v18  ;;  %v8312_v9 = vadd.f32 %v10845_v51, %v10871_v45 }
 0x3a9   : > { %v7396_v57 = vpop.f32.mrb[136].mxu0  ;;  %v10923_v61 = vadd.f32 %v8297_v24, %v7489_v39 }
 0x3aa   : > { %v7397_v12 = vpop.f32.mrb[137].mxu0  ;;  %v7490_v58 = vpop.f32.mrb[140].mxu1 }
 0x3ab   : > { %v7398_v35 = vadd.f32 %v7397_v12, %v7396_v57  ;;  %v7399_v3 = vpop.f32.mrb[138].mxu0  ;;  %v7491_v43 = vpop.f32.mrb[141].mxu1 }
 0x3ac   : > { %v7492_v8 = vadd.f32 %v7491_v43, %v7490_v58  ;;  %v7400_v54 = vpop.f32.mrb[139].mxu0  ;;  %v7493_v4 = vpop.f32.mrb[142].mxu1 }
 0x3ad   : > { %v8309_v47 = vadd.f32 %v8308_v59, %v7398_v35  ;;  %v7401_v53 = vadd.f32 %v7400_v54, %v7399_v3  ;;  %v7494_v33 = vpop.f32.mrb[143].mxu1  ;;  %v8324_v3 = vadd.f32 %v10849_v16, %v10871_v45 }
 0x3ae   : > { %v7495_v13 = vadd.f32 %v7494_v33, %v7493_v4 }
 0x3af   : > { %v8317_v37 = vadd.f32 %v8316_v27, %v7401_v53  ;;  %v10929_v15 = vadd.f32 %v8309_v47, %v7492_v8  ;;  %v8332_v47 = vadd.f32 %v10851_v7, %v10871_v45 }
 0x3b1   : > { %v7402_v5 = vpop.f32.mrb[140].mxu0  ;;  %v10931_v19 = vadd.f32 %v8317_v37, %v7495_v13 }
 0x3b2   : > { %v7403_v20 = vpop.f32.mrb[141].mxu0  ;;  %v7496_v40 = vpop.f32.mrb[144].mxu1 }
 0x3b3   : > { %v7404_v11 = vadd.f32 %v7403_v20, %v7402_v5  ;;  %v7405_v18 = vpop.f32.mrb[142].mxu0  ;;  %v7497_v56 = vpop.f32.mrb[145].mxu1 }
 0x3b4   : > { %v7498_v38 = vadd.f32 %v7497_v56, %v7496_v40  ;;  %v7406_v32 = vpop.f32.mrb[143].mxu0  ;;  %v7499_v63 = vpop.f32.mrb[146].mxu1 }
 0x3b5   : > { %v8305_v21 = vadd.f32 %v8304_v48, %v7404_v11  ;;  %v7407_v1 = vadd.f32 %v7406_v32, %v7405_v18  ;;  %v7500_v39 = vpop.f32.mrb[147].mxu1  ;;  %v8320_v18 = vadd.f32 %v10860_v17, %v10871_v45  ;;  %v4186_v17 = vadd.s32 2, %v10215_v52 }
 0x3b6   : > { %v7501_v24 = vadd.f32 %v7500_v39, %v7499_v63 }
 0x3b7   : > { %v8313_v57 = vadd.f32 %v8312_v9, %v7407_v1  ;;  %v10937_v12 = vadd.f32 %v8305_v21, %v7498_v38  ;;  %v8328_v21 = vadd.f32 %v10864_v36, %v10871_v45 }
 0x3b9   : > { %v7408_v58 = vpop.f32.mrb[144].mxu0  ;;  %v10939_v59 = vadd.f32 %v8313_v57, %v7501_v24  ;;  %v6672_v57 = vadd.s32 4294967295, %v10215_v52 }
 0x3ba   : > { %v7409_v41 = vpop.f32.mrb[145].mxu0  ;;  %v7502_v35 = vpop.f32.mrb[148].mxu1 }
 0x3bb   : > { %v7410_v43 = vadd.f32 %v7409_v41, %v7408_v58  ;;  %v7411_v8 = vpop.f32.mrb[146].mxu0  ;;  %v7503_v54 = vpop.f32.mrb[149].mxu1  ;;  %vm4196_vm3 = vcmp.ge.s32.totalorder %v6672_v57, 0  ;;  %vm4205_vm7 = vcmp.lt.s32.totalorder %v6672_v57, 16 }
 0x3bc   : > { %v7504_v4 = vadd.f32 %v7503_v54, %v7502_v35  ;;  %v7412_v51 = vpop.f32.mrb[147].mxu0  ;;  %v7505_v27 = vpop.f32.mrb[150].mxu1  ;;  %vm4214_vm8 = vmand %vm4196_vm3, %vm4205_vm7 }
 0x3bd   : > { %v8325_v53 = vadd.f32 %v8324_v3, %v7410_v43  ;;  %v7413_v33 = vadd.f32 %v7412_v51, %v7411_v8  ;;  %v7506_v13 = vpop.f32.mrb[151].mxu1  ;;  %v6674_v8 = vadd.s32 4294967295, %v10219_v46  ;;  %v6681_v46 = vsel %vm4214_vm8, 1.0, %v9108_v26 }
 0x3be   : > { %v7507_v37 = vadd.f32 %v7506_v13, %v7505_v27 }
 0x3bf   : > { %v8333_v5 = vadd.f32 %v8332_v47, %v7413_v33  ;;  %v10945_v20 = vadd.f32 %v8325_v53, %v7504_v4  ;;  %v6673_v53 = vadd.s32 4294967295, %v4186_v17  ;;  %vm4198_vm9 = vcmp.ge.s32.totalorder %v6674_v8, 0 }
 0x3c0   : > { %vm4207_vm10 = vcmp.lt.s32.totalorder %v6674_v8, 16 }
 0x3c1   : > { %v7414_v40 = vpop.f32.mrb[148].mxu0  ;;  %v10947_v48 = vadd.f32 %v8333_v5, %v7507_v37  ;;  %vm4216_vm11 = vmand %vm4198_vm9, %vm4207_vm10  ;;  %vm4197_vm12 = vcmp.ge.s32.totalorder %v6673_v53, 0  ;;  %vm4206_vm13 = vcmp.lt.s32.totalorder %v6673_v53, 16 }
 0x3c2   : > { %v7415_v16 = vpop.f32.mrb[149].mxu0  ;;  %v7508_v11 = vpop.f32.mrb[152].mxu1  ;;  %vm4215_vm14 = vmand %vm4197_vm12, %vm4206_vm13 }
 0x3c3   : > { %v7416_v56 = vadd.f32 %v7415_v16, %v7414_v40  ;;  %v7417_v38 = vpop.f32.mrb[150].mxu0  ;;  %v7509_v32 = vpop.f32.mrb[153].mxu1 }
 0x3c4   : > { %v7510_v63 = vadd.f32 %v7509_v32, %v7508_v11  ;;  %v7418_v7 = vpop.f32.mrb[151].mxu0  ;;  %v7511_v9 = vpop.f32.mrb[154].mxu1 }
 0x3c5   : > { %v8321_v1 = vadd.f32 %v8320_v18, %v7416_v56  ;;  %v7419_v39 = vadd.f32 %v7418_v7, %v7417_v38  ;;  %v7512_v24 = vpop.f32.mrb[155].mxu1 }
 0x3c6   : > { %v7513_v58 = vadd.f32 %v7512_v24, %v7511_v9 }
 0x3c7   : > { %v8329_v41 = vadd.f32 %v8328_v21, %v7419_v39  ;;  %v10954_v35 = vadd.f32 %v8321_v1, %v7510_v63  ;;  %v6683_v63 = vsel %vm4216_vm11, 1.0, %v9108_v26 }
 0x3c9   : > { %v10957_v3 = vadd.f32 %v8329_v41, %v7513_v58  ;;  %v6677_v58 = vadd.s32 4294967295, %v10249_v50 }
 0x3ca   : > { %v7998_v43 = vpop.f32.mrb[96].mxu1 }
 0x3cb   : > { %v8259_v36 = vadd.f32 %v10889_v42, %v7998_v43  ;;  %v4067_v45 = vpop.f32.mrb[97].mxu1  ;;  %vm4201_vm9 = vcmp.ge.s32.totalorder %v6677_v58, 0  ;;  %vm4210_vm10 = vcmp.lt.s32.totalorder %v6677_v58, 16 }
 0x3cc   : > { %v8263_v54 = vadd.f32 %v10881_v60, %v4067_v45  ;;  %v7999_v4 = vpop.f32.mrb[98].mxu1  ;;  %v6676_v60 = vadd.s32 4294967295, %v10222_v22  ;;  %vm11005_vm11 = vmand %vm4201_vm9, %vm4210_vm10 }
 0x3cd   : > { %v4168_v51 = vmax.f32 %v8259_v36, 0.0  ;;  %v8267_v27 = vadd.f32 %v10891_v49, %v7999_v4  ;;  %v4070_v47 = vpop.f32.mrb[99].mxu1 }
 0x3ce   : > { %v4166_v33 = vmax.f32 %v8263_v54, 0.0  ;;  %v8271_v52 = vadd.f32 %v10883_v6, %v4070_v47  ;;  %v6675_v6 = vadd.s32 4294967295, %v10226_v62  ;;  %vm4200_vm15 = vcmp.ge.s32.totalorder %v6676_v60, 0 }
 0x3cf   : > { %v4243_v13 = vmul.f32 %v10276_v30, %v4168_v51  ;;  %v4169_v42 = vmax.f32 %v8267_v27, 0.0  ;;  %vm4209_vm0 = vcmp.lt.s32.totalorder %v6676_v60, 16  ;;  %v6678_v62 = vadd.s32 4294967295, %v10234_v34 }
 0x3d0   : > { %v4167_v37 = vmax.f32 %v8271_v52, 0.0  ;;  %v4241_v49 = vmul.f32 %v6681_v46, %v4166_v33  ;;  %vm4199_vm1 = vcmp.ge.s32.totalorder %v6675_v6, 0  ;;  %vm4208_vm4 = vcmp.lt.s32.totalorder %v6675_v6, 16  ;;  %vm4218_vm5 = vmand %vm4200_vm15, %vm4209_vm0 }
 0x3d1   : > { %v6843_v5 = vpack.c.bf16 %v4243_v13, %v4243_v13  ;;  %v4244_v40 = vmul.f32 %v10276_v30, %v4169_v42  ;;  %vm4217_vm6 = vmand %vm4199_vm1, %vm4208_vm4  ;;  %vm4202_vm3 = vcmp.ge.s32.totalorder %v6678_v62, 0  ;;  %vm4211_vm7 = vcmp.lt.s32.totalorder %v6678_v62, 16 }
 0x3d2   : > { %v4242_v16 = vmul.f32 %v6681_v46, %v4167_v37  ;;  %v8002_v11 = vpop.f32.mrb[100].mxu1  ;;  %v6685_v36 = vsel %vm4218_vm5, 1.0, %v9108_v26  ;;  %v6684_v50 = vsel %vm4217_vm6, 1.0, %v9108_v26  ;;  %vm4220_vm8 = vmand %vm4202_vm3, %vm4211_vm7  ;;  %vm11494_vm4 = vsmask.f32 7424 }
 0x3d3   : > { %4373 = vst [vmem:[#allocation3 + $0xc] sm:$0xf] %v6843_v5  ;;  %v6844_v18 = vpack.c.bf16 %v4244_v40, %v4244_v40  ;;  %v8275_v56 = vadd.f32 %v10905_v2, %v8002_v11  ;;  %v4083_v38 = vpop.f32.mrb[101].mxu1  ;;  %v6687_v60 = vsel %vm4220_vm8, 1.0, %v9108_v26  ;;  %v10997_v40 = vadd.s32 4294967295, %v10267_v29  ;;  %vm11495_vm5 = vmmov %vm11494_vm4 }
 0x3d4   : > { %v6895_v32 = vpack.c.bf16 %v4242_v16, %v4241_v49  ;;  %v8279_v22 = vadd.f32 %v10897_v23, %v4083_v38  ;;  %v8003_v30 = vpop.f32.mrb[102].mxu1  ;;  %v6682_v23 = vsel %vm4215_vm14, 1.0, %v9108_v26  ;;  %vm11496_vm6 = vmmov %vm11494_vm4 }
 0x3d5   : > { %4374 = vst [vmem:[#allocation3 + $0x10] sm:$0xf] %v6844_v18  ;;  %v4172_v7 = vmax.f32 %v8275_v56, 0.0  ;;  %v8283_v9 = vadd.f32 %v10907_v31, %v8003_v30  ;;  %v4086_v21 = vpop.f32.mrb[103].mxu1  ;;  %vm4203_vm14 = vcmp.ge.s32.totalorder %v10997_v40, 0  ;;  %vm4212_vm15 = vcmp.lt.s32.totalorder %v10997_v40, 16  ;;  %vm11497_vm3 = vmmov %vm11494_vm4 }
 0x3d6   : > { %6896 = vst [vmem:[#allocation3] sm:$0xff] %v6895_v32   ;;  %v4170_v1 = vmax.f32 %v8279_v22, 0.0  ;;  %v8287_v2 = vadd.f32 %v10899_v0, %v4086_v21  ;;  %vm11048_vm1 = vmand %vm4203_vm14, %vm4212_vm15 }
 0x3d7   : > { %v4247_v39 = vmul.f32 %v6683_v63, %v4172_v7  ;;  %v4173_v24 = vmax.f32 %v8283_v9, 0.0  ;;  %vm11498_vm7 = vmmov %vm11497_vm3 }
 0x3d8   : > { %v4171_v57 = vmax.f32 %v8287_v2, 0.0  ;;  %v4245_v34 = vmul.f32 %v6682_v23, %v4170_v1  ;;  %vm11499_vm8 = vmmov %vm11497_vm3 }
 0x3d9   : > { %v6847_v31 = vpack.c.bf16 %v4247_v39, %v4247_v39  ;;  %v4248_v41 = vmul.f32 %v6683_v63, %v4173_v24  ;;  %v8866_v39 = vld [vmem:[#allocation4 + $0x88] sm:$0xff]   ;;  %vm11500_vm9 = vmmov %vm11497_vm3 }
 0x3da   : > { %v4246_v17 = vmul.f32 %v6682_v23, %v4171_v57  ;;  %v8006_v43 = vpop.f32.mrb[104].mxu1  ;;  %vm11501_vm10 = vmmov %vm11497_vm3 }
 0x3db   : > { %4377 = vst [vmem:[#allocation3 + $0x24] sm:$0xf] %v6847_v31  ;;  %v6848_v0 = vpack.c.bf16 %v4248_v41, %v4248_v41  ;;  %v8291_v8 = vadd.f32 %v10921_v14, %v8006_v43  ;;  %v4099_v45 = vpop.f32.mrb[105].mxu1 }
 0x3dc   : > { %v6900_v54 = vpack.c.bf16 %v4246_v17, %v4245_v34  ;;  %v8295_v4 = vadd.f32 %v10913_v55, %v4099_v45  ;;  %v8007_v51 = vpop.f32.mrb[106].mxu1  ;;  %v10982_v27 = vld [vmem:[#allocation3 + $0xc] sm:$0xff]  }
 0x3dd   : > { %4378 = vst [vmem:[#allocation3 + $0x28] sm:$0xf] %v6848_v0  ;;  %v4176_v47 = vmax.f32 %v8291_v8, 0.0  ;;  %v8299_v53 = vadd.f32 %v10923_v61, %v8007_v51  ;;  %v4102_v33 = vpop.f32.mrb[107].mxu1  ;;  %5315 = vmatprep.mubr.bf16.mxu1 %v10982_v27  ;;  %v10988_v55 = vld [vmem:[#allocation3] sm:$0xff]   ;;  %v4479_v13 = vshrl.u32 %v10982_v27, 16 }
 0x3de   : > { %6922 = vst [vmem:[#allocation3 + $0x18] sm:$0xff] %v6900_v54   ;;  %v4174_v14 = vmax.f32 %v8295_v4, 0.0  ;;  %v8303_v52 = vadd.f32 %v10915_v10, %v4102_v33  ;;  %v4482_v46 = vshll.u32 %v10982_v27, 16  ;;  %v4472_v61 = vshrl.u32 %v10988_v55, 16  ;;  %4912 = vmatprep.mubr.bf16.mxu0 %v10988_v55 }
 0x3df   : > { %v4251_v42 = vmul.f32 %v6685_v36, %v4176_v47  ;;  %v4177_v37 = vmax.f32 %v8299_v53, 0.0  ;;  %v6680_v10 = vadd.s32 4294967295, %v10260_v28  ;;  %v4481_v11 = vrot.slane %v4479_v13, 7 }
 0x3e0   : > { %v4175_v5 = vmax.f32 %v8303_v52, 0.0  ;;  %v4608_v6 = vrot.slane %v4482_v46, 1  ;;  %v4249_v18 = vmul.f32 %v6684_v50, %v4174_v14  ;;  %v4475_v38 = vshll.u32 %v10988_v55, 16 }
 0x3e1   : > { %v6851_v49 = vpack.c.bf16 %v4251_v42, %v4251_v42  ;;  %v4252_v16 = vmul.f32 %v6685_v36, %v4177_v37  ;;  %v4474_v63 = vrot.slane %v4472_v61, 7  ;;  %v4484_v7 = vor.u32 %v4482_v46, %v4481_v11 }
 0x3e2   : > { %v4250_v56 = vmul.f32 %v6684_v50, %v4175_v5  ;;  %v8010_v32 = vpop.f32.mrb[108].mxu1  ;;  %v11009_v9 = vor.u32 %v4608_v6, %v4479_v13  ;;  %vm4204_vm12 = vcmp.ge.s32.totalorder %v6680_v10, 0  ;;  %vm4213_vm13 = vcmp.lt.s32.totalorder %v6680_v10, 16  ;;  %v8868_v50 = vld [vmem:[#allocation4 + $0x90] sm:$0xff]  }
 0x3e3   : > { %4381 = vst [vmem:[#allocation3 + $0x3c] sm:$0xf] %v6851_v49  ;;  %v6852_v22 = vpack.c.bf16 %v4252_v16, %v4252_v16  ;;  %v8307_v30 = vadd.f32 %v10937_v12, %v8010_v32  ;;  %v4115_v28 = vpop.f32.mrb[109].mxu1  ;;  %v4477_v2 = vor.u32 %v4475_v38, %v4474_v63  ;;  %v4552_v58 = vsel %vm9367_vm2, 0, %v4484_v7  ;;  %vm4222_vm0 = vmand %vm4204_vm12, %vm4213_vm13 }
 0x3e4   : > { %v6905_v21 = vpack.c.bf16 %v4250_v56, %v4249_v18  ;;  %v8311_v62 = vadd.f32 %v10929_v15, %v4115_v28  ;;  %v8011_v1 = vpop.f32.mrb[110].mxu1  ;;  %v11014_v12 = vld [vmem:[#allocation3 + $0x24] sm:$0xff]   ;;  %5316 = vmatmul.mubr.bf16.vlgmr.msra.gmra.mrb[156].mxu1 %v4552_v58  ;;  %v6689_v13 = vsel %vm4222_vm0, 1.0, %v9108_v26  ;;  %v6688_v18 = vsel %vm11048_vm1, 1.0, %v9108_v26  ;;  %v8872_v28 = vld [vmem:[#allocation4 + $0xa0] sm:$0xff]  }
 0x3e5   : > { %4382 = vst [vmem:[#allocation3 + $0x40] sm:$0xf] %v6852_v22  ;;  %v4180_v23 = vmax.f32 %v8307_v30, 0.0  ;;  %v8315_v24 = vadd.f32 %v10939_v59, %v8011_v1  ;;  %v4118_v57 = vpop.f32.mrb[111].mxu1  ;;  %v11019_v31 = vld [vmem:[#allocation3 + $0x18] sm:$0xff]   ;;  %v4551_v34 = vsel %vm9367_vm2, 0, %v4477_v2 }
 0x3e6   : > { %6923 = vst [vmem:[#allocation3 + $0x30] sm:$0xff] %v6905_v21   ;;  %v4178_v15 = vmax.f32 %v8311_v62, 0.0  ;;  %v8319_v41 = vadd.f32 %v10931_v19, %v4118_v57  ;;  %v6686_v59 = vsel %vm11005_vm11, 1.0, %v9108_v26  ;;  %4913 = vmatmul.mubr.bf16.vlgmr.msra.gmra.mrb[152].mxu0 %v4551_v34  ;;  %5323 = vmatprep.mubr.bf16.mxu1 %v11019_v31  ;;  %v4486_v0 = vshrl.u32 %v11019_v31, 16  ;;  %v8874_v1 = vld [vmem:[#allocation4 + $0xa8] sm:$0xff]   ;;  %v8878_v34 = vld [vmem:[#allocation4 + $0xb8] sm:$0xff]   ;;  %vm11502_vm11 = vmmov %vm11497_vm3 }
 0x3e7   : > { %v4255_v17 = vmul.f32 %v6687_v60, %v4180_v23  ;;  %v4181_v43 = vmax.f32 %v8315_v24, 0.0  ;;  %4920 = vmatprep.mubr.bf16.mxu0 %v10982_v27  ;;  %8017 = vmatpush3.bf16.msra.mxu0 %v10857_v44  ;;  %v4493_v19 = vshrl.u32 %v11014_v12, 16  ;;  %v4489_v4 = vshll.u32 %v11019_v31, 16 }
 0x3e8   : > { %v4179_v8 = vmax.f32 %v8319_v41, 0.0  ;;  %8018 = vmatprep.subr.bf16.mxu0 %v8866_v39  ;;  %v4488_v54 = vrot.slane %v4486_v0, 7  ;;  %v4253_v51 = vmul.f32 %v6686_v59, %v4178_v15  ;;  %v4496_v56 = vshll.u32 %v11014_v12, 16 }
 0x3e9   : > { %v6855_v36 = vpack.c.bf16 %v4255_v17, %v4255_v17  ;;  %v4256_v45 = vmul.f32 %v6687_v60, %v4181_v43  ;;  %v8870_v60 = vld [vmem:[#allocation4 + $0x98] sm:$0xff]  }
 0x3ea   : > { %v4254_v44 = vmul.f32 %v6686_v59, %v4179_v8  ;;  %v8014_v27 = vpop.f32.mrb[112].mxu1  ;;  %v4491_v14 = vor.u32 %v4489_v4, %v4488_v54 }
 0x3eb   : > { %4385 = vst [vmem:[#allocation3 + $0x54] sm:$0xf] %v6855_v36  ;;  %v6856_v47 = vpack.c.bf16 %v4256_v45, %v4256_v45  ;;  %v8323_v53 = vadd.f32 %v10954_v35, %v8014_v27  ;;  %v4131_v33 = vpop.f32.mrb[113].mxu1  ;;  %8019 = vmatpush3.bf16.msra.mxu0 %v8866_v39  ;;  %v4495_v35 = vrot.slane %v4493_v19, 7 }
 0x3ec   : > { %v6910_v52 = vpack.c.bf16 %v4254_v44, %v4253_v51  ;;  %v8327_v46 = vadd.f32 %v10945_v20, %v4131_v33  ;;  %v8015_v37 = vpop.f32.mrb[114].mxu1  ;;  %v11057_v20 = vsel %vm9367_vm2, 0, %v4491_v14  ;;  %8020 = vmatprep.subr.bf16.mxu0 %v8868_v50  ;;  %v11072_v62 = vld [vmem:[#allocation3 + $0x3c] sm:$0xff]  }
 0x3ed   : > { %4386 = vst [vmem:[#allocation3 + $0x58] sm:$0xf] %v6856_v47  ;;  %v4184_v5 = vmax.f32 %v8323_v53, 0.0  ;;  %v8331_v10 = vadd.f32 %v10957_v3, %v8015_v37  ;;  %v4134_v49 = vpop.f32.mrb[115].mxu1  ;;  %v11059_v40 = vld [vmem:[#allocation3 + $0x30] sm:$0xff]   ;;  %5324 = vmatmul.mubr.bf16.gmra.mrb[160].mxu1 %v11057_v20  ;;  %v4507_v24 = vshrl.u32 %v11072_v62, 16 }
 0x3ee   : > { %6924 = vst [vmem:[#allocation3 + $0x48] sm:$0xff] %v6910_v52   ;;  %v4182_v16 = vmax.f32 %v8327_v46, 0.0  ;;  %v8335_v11 = vadd.f32 %v10947_v48, %v4134_v49  ;;  %4921 = vmatmul.mubr.bf16.gmra.mrb[156].mxu0 %v4552_v58  ;;  %5331 = vmatprep.mubr.bf16.mxu1 %v11014_v12  ;;  %v4498_v48 = vor.u32 %v4496_v56, %v4495_v35  ;;  %v4500_v30 = vshrl.u32 %v11059_v40, 16  ;;  %v8876_v58 = vld [vmem:[#allocation4 + $0xb0] sm:$0xff]   ;;  %v8881_v51 = vld [vmem:[#allocation4 + $0x140] sm:$0xff]  }
 0x3ef   : > { %v4259_v6 = vmul.f32 %v6689_v13, %v4184_v5  ;;  %v4185_v3 = vmax.f32 %v8331_v10, 0.0  ;;  %4928 = vmatprep.mubr.bf16.mxu0 %v11019_v31  ;;  %8021 = vmatpush3.bf16.msra.mxu0 %v8868_v50  ;;  %v4503_v23 = vshll.u32 %v11059_v40, 16  ;;  %v4509_v15 = vrot.slane %v4507_v24, 7  ;;  %v8879_v35 = vld [vmem:[#allocation3 + $0x8] ss:$0 sps:$4 sm:$0x11]  }
 0x3f0   : > { %v4183_v32 = vmax.f32 %v8335_v11, 0.0  ;;  %8022 = vmatprep.subr.bf16.mxu0 %v8870_v60  ;;  %v4257_v26 = vmul.f32 %v6688_v18, %v4182_v16  ;;  %v11076_v2 = vsel %vm9367_vm2, 0, %v4498_v48  ;;  %v4502_v39 = vrot.slane %v4500_v30, 7  ;;  %v8880_v11 = vld [vmem:[#allocation3 + $0x14] ss:$0 sps:$4 sm:$0x11]  }
 0x3f1   : > { %v6859_v63 = vpack.c.bf16 %v4259_v6, %v4259_v6  ;;  %v4260_v22 = vmul.f32 %v6689_v13, %v4185_v3  ;;  %v4510_v43 = vshll.u32 %v11072_v62, 16  ;;  %v4601_v10 = vrot.slane %v4475_v38, 1  ;;  %v8882_v3 = vld [vmem:[#allocation3 + $0x20] ss:$0 sps:$4 sm:$0x11]  }
 0x3f2   : > { %v4258_v29 = vmul.f32 %v6688_v18, %v4183_v32  ;;  %v4505_v57 = vor.u32 %v4503_v23, %v4502_v39  ;;  %v4604_v49 = vshll.u32 %v8879_v35, 16  ;;  %v4615_v38 = vrot.slane %v4489_v4, 1 }
 0x3f3   : > { %4389 = vst [vmem:[#allocation3 + $0x6c] sm:$0xf] %v6859_v63  ;;  %v6860_v7 = vpack.c.bf16 %v4260_v22, %v4260_v22  ;;  %8023 = vmatpush3.bf16.msra.mxu0 %v8870_v60  ;;  %v4512_v36 = vor.u32 %v4510_v43, %v4509_v15  ;;  %v4602_v6 = vor.u32 %v4601_v10, %v4472_v61  ;;  %v4611_v63 = vshll.u32 %v8880_v11, 16  ;;  %v8884_v61 = vld [vmem:[#allocation3 + $0x2c] ss:$0 sps:$4 sm:$0x11]  }
 0x3f4   : > { %v6915_v21 = vpack.c.bf16 %v4258_v29, %v4257_v26  ;;  %8024 = vmatprep.subr.bf16.mxu0 %v8872_v28  ;;  %v11094_v17 = vsel %vm9367_vm2, 0, %v4505_v57  ;;  %v11116_v53 = vld [vmem:[#allocation3 + $0x54] sm:$0xff]   ;;  %v4606_v18 = vrot.slane %v4604_v49, 1  ;;  %v4618_v48 = vshll.u32 %v8882_v3, 16 }
 0x3f5   : > { %4390 = vst [vmem:[#allocation3 + $0x70] sm:$0xf] %v6860_v7  ;;  %5332 = vmatmul.mubr.bf16.gmra.mrb[164].mxu1 %v11076_v2  ;;  %v11090_v41 = vld [vmem:[#allocation3 + $0x48] sm:$0xff]   ;;  %v11112_v27 = vsel %vm9367_vm2, 0, %v4512_v36  ;;  %v4521_v52 = vshrl.u32 %v11116_v53, 16  ;;  %v4524_v42 = vshll.u32 %v11116_v53, 16 }
 0x3f6   : > { %6925 = vst [vmem:[#allocation3 + $0x60] sm:$0xff] %v6915_v21   ;;  %4929 = vmatmul.mubr.bf16.gmra.mrb[160].mxu0 %v11057_v20  ;;  %5339 = vmatprep.mubr.bf16.mxu1 %v11059_v40  ;;  %v4514_v45 = vshrl.u32 %v11090_v41, 16  ;;  %v4517_v33 = vshll.u32 %v11090_v41, 16  ;;  %v4607_v22 = vsel %vm11494_vm4, %v4602_v6, %v4606_v18  ;;  %v4613_v55 = vrot.slane %v4611_v63, 1  ;;  %v8883_v7 = vld [vmem:[#allocation4 + $0x148] sm:$0xff]   ;;  %v8887_v36 = vld [vmem:[#allocation4 + $0x158] sm:$0xff]  }
 0x3f7   : > { %4936 = vmatprep.mubr.bf16.mxu0 %v11014_v12  ;;  %8025 = vmatpush3.bf16.msra.mxu0 %v8872_v28  ;;  %v4523_v46 = vrot.slane %v4521_v52, 7  ;;  %v4616_v28 = vor.u32 %v4615_v38, %v4486_v0  ;;  %v4620_v26 = vrot.slane %v4618_v48, 1  ;;  %v8886_v29 = vld [vmem:[#allocation3 + $0x38] ss:$0 sps:$4 sm:$0x11]   ;;  %v4622_v21 = vrot.slane %v4496_v56, 1 }
 0x3f8   : > { %8026 = vmatprep.subr.bf16.mxu0 %v8874_v1  ;;  %v4516_v47 = vrot.slane %v4514_v45, 7  ;;  %v4614_v4 = vsel %vm11495_vm5, %v11009_v9, %v4613_v55  ;;  %v4629_v39 = vrot.slane %v4503_v23, 1  ;;  %v8885_v0 = vld [vmem:[#allocation4 + $0x150] sm:$0xff]   ;;  %v8890_v23 = vld [vmem:[#allocation3 + $0x50] ss:$0 sps:$4 sm:$0x11]  }
 0x3f9   : > { %v4526_v37 = vor.u32 %v4524_v42, %v4523_v46  ;;  %v11169_v57 = vsel %vm11496_vm6, %v4616_v28, %v4620_v26  ;;  %v4623_v56 = vor.u32 %v4622_v21, %v4493_v19  ;;  %v4643_v19 = vrot.slane %v4517_v33, 1  ;;  %v8895_v3 = vld [vmem:[#allocation4 + $0x1c0] sm:$0xff]   ;;  %v8897_v38 = vld [vmem:[#allocation4 + $0x1c8] sm:$0xff]   ;;  %v8900_v48 = vld [vmem:[#allocation4 + $0x190] sm:$0xff]  }
 0x3fa   : > { %v4519_v14 = vor.u32 %v4517_v33, %v4516_v47  ;;  %v4630_v9 = vor.u32 %v4629_v39, %v4500_v30  ;;  %v4646_v30 = vshll.u32 %v8890_v23, 16  ;;  %v4650_v10 = vrot.slane %v4524_v42, 1  ;;  %v8894_v42 = vld [vmem:[#allocation4 + $0x178] sm:$0xff]   ;;  %v8896_v63 = vld [vmem:[#allocation4 + $0x180] sm:$0xff]   ;;  %v8917_v23 = vld [vmem:[#allocation4 + $0x228] sm:$0xff]  }
 0x3fb   : > { %8027 = vmatpush3.bf16.msra.mxu0 %v8874_v1  ;;  %v11141_v60 = vsel %vm9367_vm2, 0, %v4526_v37  ;;  %v4625_v1 = vshll.u32 %v8884_v61, 16  ;;  %v8892_v37 = vld [vmem:[#allocation3 + $0x5c] ss:$0 sps:$4 sm:$0x11]   ;;  %v4644_v35 = vor.u32 %v4643_v19, %v4514_v45  ;;  %v8893_v45 = vld [vmem:[#allocation4 + $0x170] sm:$0xff]  }
 0x3fc   : > { %8028 = vmatprep.subr.bf16.mxu0 %v8876_v58  ;;  %v11128_v13 = vsel %vm9367_vm2, 0, %v4519_v14  ;;  %v8889_v14 = vld [vmem:[#allocation4 + $0x160] sm:$0xff]   ;;  %v4648_v33 = vrot.slane %v4646_v30, 1  ;;  %v4651_v11 = vor.u32 %v4650_v10, %v4521_v52  ;;  %v8898_v52 = vld [vmem:[#allocation4 + $0x188] sm:$0xff]   ;;  %v8901_v55 = vld [vmem:[#allocation4 + $0x1d8] sm:$0xff]  }
 0x3fd   : > { %v11096_v59 = vld [vmem:[#allocation3 + $0x60] sm:$0xff]   ;;  %5340 = vmatmul.mubr.bf16.gmra.mrb[168].mxu1 %v11094_v17  ;;  %v4627_v15 = vrot.slane %v4625_v1, 1  ;;  %v8902_v61 = vld [vmem:[#allocation4 + $0x198] sm:$0xff]   ;;  %v8903_v28 = vld [vmem:[#allocation4 + $0x1e0] sm:$0xff]  }
 0x3fe   : > { %4937 = vmatmul.mubr.bf16.gmra.mrb[164].mxu0 %v11076_v2  ;;  %5347 = vmatprep.mubr.bf16.mxu1 %v11072_v62  ;;  %v4531_v8 = vshll.u32 %v11096_v59, 16  ;;  %v4528_v54 = vshrl.u32 %v11096_v59, 16  ;;  %v8907_v26 = vld [vmem:[#allocation3 + $0x68] ss:$0 sps:$4 sm:$0x11]  }
 0x3ff   : > { %4944 = vmatprep.mubr.bf16.mxu0 %v11059_v40  ;;  %8029 = vmatpush3.bf16.msra.mxu0 %v8876_v58  ;;  %v4632_v58 = vshll.u32 %v8886_v29, 16  ;;  %v8904_v29 = vld [vmem:[#allocation4 + $0x1a0] sm:$0xff]   ;;  %v4660_v21 = vshll.u32 %v8907_v26, 16  ;;  %v8908_v1 = vld [vmem:[#allocation4 + $0x1f0] sm:$0xff]  }
 0x400   : > { %8030 = vmatprep.subr.bf16.mxu0 %v8878_v34  ;;  %v4657_v50 = vrot.slane %v4531_v8, 1  ;;  %v4530_v5 = vrot.slane %v4528_v54, 7 }
 0x401   : > { %v4662_v39 = vrot.slane %v4660_v21, 1 }
 0x402   : > { %v11108_v44 = vor.u32 %v4657_v50, %v4528_v54  ;;  %v4533_v16 = vor.u32 %v4531_v8, %v4530_v5  ;;  %v4634_v8 = vrot.slane %v4632_v58, 1  ;;  %v4636_v54 = vrot.slane %v4510_v43, 1  ;;  %v8891_v5 = vld [vmem:[#allocation4 + $0x168] sm:$0xff]   ;;  %v8909_v58 = vld [vmem:[#allocation4 + $0x1b0] sm:$0xff]  }
 0x403   : > { %8031 = vmatpush3.bf16.msra.mxu0 %v8878_v34  ;;  %v8888_v34 = vld [vmem:[#allocation3 + $0x44] ss:$0 sps:$4 sm:$0x11]   ;;  %v11179_v50 = vsel %vm11497_vm3, %v4623_v56, %v4627_v15  ;;  %v8911_v15 = vld [vmem:[#allocation4 + $0x1b8] sm:$0xff]  }
 0x404   : > { %8048 = vmatprep.subr.bf16.mxu0 %v8881_v51  ;;  %v11153_v32 = vsel %vm9367_vm2, 0, %v4533_v16  ;;  %v11185_v47 = vsel %vm11498_vm7, %v4630_v9, %v4634_v8  ;;  %v4637_v43 = vor.u32 %v4636_v54, %v4507_v24  ;;  %v4653_v16 = vshll.u32 %v8892_v37, 16  ;;  %v8913_v9 = vld [vmem:[#allocation4 + $0x208] sm:$0xff]   ;;  %v8914_v8 = vld [vmem:[#allocation4 + $0x210] sm:$0xff]  }
 0x405   : > { %5348 = vmatmul.mubr.bf16.gmra.mrb[172].mxu1 %v11112_v27  ;;  %v11199_v24 = vsel %vm11500_vm9, %v4644_v35, %v4648_v33  ;;  %v11216_v56 = vsel %vm11502_vm11, %v11108_v44, %v4662_v39  ;;  %v8915_v44 = vld [vmem:[#allocation4 + $0x218] sm:$0xff]   ;;  %v8937_v39 = vld [vmem:[%s9332_s26 + $0x30] sm:$0xff]  }
 0x406   : > { %4945 = vmatmul.mubr.bf16.gmra.mrb[168].mxu0 %v11094_v17  ;;  %5355 = vmatprep.mubr.bf16.mxu1 %v11090_v41  ;;  %v4655_v6 = vrot.slane %v4653_v16, 1 }
 0x407   : > { %4952 = vmatprep.mubr.bf16.mxu0 %v11072_v62 }
 0x408   : > { %v11205_v18 = vsel %vm11501_vm10, %v4651_v11, %v4655_v6 }
 0x40d   : > { %5356 = vmatmul.mubr.bf16.gmra.mrb[176].mxu1 %v11128_v13 }
 0x40e   : > { %4953 = vmatmul.mubr.bf16.gmra.mrb[172].mxu0 %v11112_v27  ;;  %5363 = vmatprep.mubr.bf16.mxu1 %v11116_v53 }
 0x40f   : > { %4960 = vmatprep.mubr.bf16.mxu0 %v11090_v41 }
 0x415   : > { %5364 = vmatmul.mubr.bf16.gmra.mrb[180].mxu1 %v11141_v60 }
 0x416   : > { %4961 = vmatmul.mubr.bf16.gmra.mrb[176].mxu0 %v11128_v13  ;;  %5371 = vmatprep.mubr.bf16.mxu1 %v11096_v59 }
 0x417   : > { %4968 = vmatprep.mubr.bf16.mxu0 %v11116_v53 }
 0x41d   : > { %5372 = vmatmul.mubr.bf16.gmra.mrb[184].mxu1 %v11153_v32 }
 0x41e   : > { %4969 = vmatmul.mubr.bf16.gmra.mrb[180].mxu0 %v11141_v60 }
 0x41f   : > { %8032 = vmatprep.mubr.bf16.mxu0 %v4607_v22  ;;  %v8899_v22 = vld [vmem:[#allocation4 + $0x1d0] sm:$0xff]  }
 0x426   : > { %8033 = vmatmul.mubr.bf16.vlgmr.msra.gmra.mrb[184].mxu0 %v4614_v4 }
 0x427   : > { %8036 = vmatprep.mubr.bf16.mxu0 %v11169_v57  ;;  %8049 = vmatpush3.bf16.msra.mxu0 %v8881_v51  ;;  %v4639_v51 = vshll.u32 %v8888_v34, 16  ;;  %v8912_v34 = vld [vmem:[#allocation4 + $0x200] sm:$0xff]  }
 0x428   : > { %8050 = vmatprep.subr.bf16.mxu0 %v8883_v7 }
 0x429   : > { %v4641_v46 = vrot.slane %v4639_v51, 1  ;;  %v8928_v51 = vld [vmem:[#allocation7 + $0x30] sm:$0xff]  }
 0x42b   : > { %8051 = vmatpush3.bf16.msra.mxu0 %v8883_v7  ;;  %v11195_v49 = vsel %vm11499_vm8, %v4637_v43, %v4641_v46  ;;  %v8905_v7 = vld [vmem:[#allocation4 + $0x1e8] sm:$0xff]   ;;  %v11245_v46 = vld [vmem:[%s11434_s6] ss:$0 sm:$0xff] }
 0x42c   : > { %8052 = vmatprep.subr.bf16.mxu0 %v8885_v0 }
 0x42e   : > { %8037 = vmatmul.mubr.bf16.gmra.mrb[188].mxu0 %v11179_v50 }
 0x42f   : > { %8040 = vmatprep.mubr.bf16.mxu0 %v11185_v47  ;;  %8053 = vmatpush3.bf16.msra.mxu0 %v8885_v0  ;;  %v8910_v0 = vld [vmem:[#allocation4 + $0x1f8] sm:$0xff]  }
 0x430   : > { %8054 = vmatprep.subr.bf16.mxu0 %v8887_v36 }
 0x433   : > { %8055 = vmatpush3.bf16.msra.mxu0 %v8887_v36 }
 0x434   : > { %8056 = vmatprep.subr.bf16.mxu0 %v8889_v14 }
 0x436   : > { %8041 = vmatmul.mubr.bf16.gmra.mrb[192].mxu0 %v11195_v49 }
 0x437   : > { %8044 = vmatprep.mubr.bf16.mxu0 %v11199_v24  ;;  %8057 = vmatpush3.bf16.msra.mxu0 %v8889_v14 }
 0x438   : > { %8058 = vmatprep.subr.bf16.mxu0 %v8891_v5 }
 0x43b   : > { %8059 = vmatpush3.bf16.msra.mxu0 %v8891_v5 }
 0x43c   : > { %8060 = vmatprep.subr.bf16.mxu0 %v8893_v45 }
 0x43e   : > { %8045 = vmatmul.mubr.bf16.gmra.mrb[196].mxu0 %v11205_v18 }
 0x43f   : > { %8061 = vmatpush3.bf16.msra.mxu0 %v8893_v45  ;;  %8064 = vmatprep.mubr.bf16.mxu0 %v4614_v4  ;;  %v8906_v4 = vld [vmem:[#allocation4 + $0x1a8] sm:$0xff]  }
 0x440   : > { %8062 = vmatprep.subr.bf16.mxu0 %v8894_v42 }
 0x443   : > { %8063 = vmatpush3.bf16.msra.mxu0 %v8894_v42 }
 0x444   : > { %7692 = vmatprep.subr.bf16.mxu0 %v8895_v3 }
 0x446   : > { %8065 = vmatmul.mubr.bf16.vlgmr.msra.gmra.mrb[184].mxu0 %v11169_v57 }
 0x447   : > { %8068 = vmatprep.mubr.bf16.mxu0 %v11179_v50  ;;  %7693 = vmatpush3.bf16.msra.mxu0 %v8896_v63 }
 0x448   : > { %7694 = vmatprep.subr.bf16.mxu0 %v8897_v38 }
 0x44b   : > { %7695 = vmatpush3.bf16.msra.mxu0 %v8898_v52 }
 0x44c   : > { %7696 = vmatprep.subr.bf16.mxu0 %v8899_v22 }
 0x44e   : > { %8069 = vmatmul.mubr.bf16.gmra.mrb[188].mxu0 %v11185_v47 }
 0x44f   : > { %8072 = vmatprep.mubr.bf16.mxu0 %v11195_v49  ;;  %7697 = vmatpush3.bf16.msra.mxu0 %v8900_v48 }
 0x450   : > { %7698 = vmatprep.subr.bf16.mxu0 %v8901_v55 }
 0x453   : > { %7699 = vmatpush3.bf16.msra.mxu0 %v8902_v61 }
 0x454   : > { %7700 = vmatprep.subr.bf16.mxu0 %v8903_v28 }
 0x456   : > { %8073 = vmatmul.mubr.bf16.gmra.mrb[192].mxu0 %v11199_v24 }
 0x457   : > { %8076 = vmatprep.mubr.bf16.mxu0 %v11205_v18  ;;  %7701 = vmatpush3.bf16.msra.mxu0 %v8904_v29 }
 0x458   : > { %7702 = vmatprep.subr.bf16.mxu0 %v8905_v7 }
 0x45b   : > { %7703 = vmatpush3.bf16.msra.mxu0 %v8906_v4 }
 0x45c   : > { %7704 = vmatprep.subr.bf16.mxu0 %v8908_v1 }
 0x45e   : > { %8077 = vmatmul.mubr.bf16.gmra.mrb[196].mxu0 %v11216_v56 }
 0x45f   : > { %7705 = vmatpush3.bf16.msra.mxu0 %v8909_v58  ;;  %5718 = vmatprep.mubr.bf16.mxu0 %v11019_v31  ;;  %v8916_v31 = vld [vmem:[#allocation4 + $0x220] sm:$0xff]  }
 0x460   : > { %7706 = vmatprep.subr.bf16.mxu0 %v8910_v0 }
 0x463   : > { %7707 = vmatpush3.bf16.msra.mxu0 %v8911_v15 }
 0x464   : > { %8080 = vmatprep.subr.bf16.mxu0 %v8912_v34 }
 0x466   : > { %5719 = vmatmul.mubr.bf16.vlgmr.msra.gmra.mrb[200].mxu0 %v11057_v20  ;;  %v8920_v20 = vld [vmem:[#allocation4 + $0x238] sm:$0xff]  }
 0x467   : > { %5726 = vmatprep.mubr.bf16.mxu0 %v11014_v12  ;;  %8081 = vmatpush3.bf16.msra.mxu0 %v8912_v34  ;;  %v8918_v12 = vld [vmem:[#allocation4 + $0x230] sm:$0xff]  }
 0x468   : > { %8082 = vmatprep.subr.bf16.mxu0 %v8913_v9 }
 0x46b   : > { %8083 = vmatpush3.bf16.msra.mxu0 %v8913_v9 }
 0x46c   : > { %8084 = vmatprep.subr.bf16.mxu0 %v8914_v8 }
 0x46e   : > { %5727 = vmatmul.mubr.bf16.gmra.mrb[204].mxu0 %v11076_v2 }
 0x46f   : > { %5734 = vmatprep.mubr.bf16.mxu0 %v11059_v40  ;;  %8085 = vmatpush3.bf16.msra.mxu0 %v8914_v8  ;;  %v8921_v40 = vld [vmem:[#allocation7] sm:$0xff]  }
 0x470   : > { %8086 = vmatprep.subr.bf16.mxu0 %v8915_v44 }
 0x473   : > { %8087 = vmatpush3.bf16.msra.mxu0 %v8915_v44 }
 0x474   : > { %8088 = vmatprep.subr.bf16.mxu0 %v8916_v31 }
 0x476   : > { %5735 = vmatmul.mubr.bf16.gmra.mrb[208].mxu0 %v11094_v17 }
 0x477   : > { %5742 = vmatprep.mubr.bf16.mxu0 %v11072_v62  ;;  %8089 = vmatpush3.bf16.msra.mxu0 %v8916_v31  ;;  %v8919_v62 = vld [vmem:[#allocation3 + $0x6c] sm:$0xff]  }
 0x478   : > { %8090 = vmatprep.subr.bf16.mxu0 %v8917_v23  ;;  %v4535_v2 = vshrl.u32 %v8919_v62, 16 }
 0x47a   : > { %v4537_v17 = vrot.slane %v4535_v2, 7 }
 0x47b   : > { %8091 = vmatpush3.bf16.msra.mxu0 %v8917_v23 }
 0x47c   : > { %8092 = vmatprep.subr.bf16.mxu0 %v8918_v12 }
 0x47e   : > { %5743 = vmatmul.mubr.bf16.gmra.mrb[212].mxu0 %v11112_v27 }
 0x47f   : > { %5750 = vmatprep.mubr.bf16.mxu0 %v11090_v41  ;;  %8093 = vmatpush3.bf16.msra.mxu0 %v8918_v12  ;;  %v4538_v41 = vshll.u32 %v8919_v62, 16 }
 0x480   : > { %8094 = vmatprep.subr.bf16.mxu0 %v8920_v20 }
 0x481   : > { %v4540_v27 = vor.u32 %v4538_v41, %v4537_v17 }
 0x483   : > { %8095 = vmatpush3.bf16.msra.mxu0 %v8920_v20  ;;  %v4560_v36 = vsel %vm9367_vm2, 0, %v4540_v27  ;;  %vm11503_vm2 = vmmov %vm11497_vm3  ;;  %v8939_v27 = vld [vmem:[%s9332_s26 + $0x48] sm:$0xff]  }
 0x484   : > { %8112 = vmatprep.subr.bf16.mxu0 %v8921_v40 }
 0x486   : > { %5751 = vmatmul.mubr.bf16.gmra.mrb[216].mxu0 %v11128_v13  ;;  %v8922_v13 = vld [vmem:[#allocation7 + $0x8] sm:$0xff]  }
 0x487   : > { %5758 = vmatprep.mubr.bf16.mxu0 %v11116_v53  ;;  %v8924_v53 = vld [vmem:[#allocation7 + $0x18] sm:$0xff]  }
 0x48e   : > { %5759 = vmatmul.mubr.bf16.gmra.mrb[220].mxu0 %v11141_v60  ;;  %v8927_v60 = vld [vmem:[#allocation3 + $0x74] ss:$0 sps:$4 sm:$0x11]  }
 0x48f   : > { %5766 = vmatprep.mubr.bf16.mxu0 %v11096_v59  ;;  %v8923_v59 = vld [vmem:[#allocation7 + $0x10] sm:$0xff]   ;;  %v4667_v54 = vshll.u32 %v8927_v60, 16 }
 0x491   : > { %v4669_v14 = vrot.slane %v4667_v54, 1 }
 0x496   : > { %5767 = vmatmul.mubr.bf16.gmra.mrb[224].mxu0 %v11153_v32  ;;  %v8926_v32 = vld [vmem:[#allocation7 + $0x28] sm:$0xff]  }
 0x497   : > { %5774 = vmatprep.mubr.bf16.mxu0 %v8919_v62 }
 0x49e   : > { %5775 = vmatmul.mubr.bf16.gmra.mrb[228].mxu0 %v4560_v36 }
 0x49f   : > { %8096 = vmatprep.mubr.bf16.mxu0 %v11169_v57  ;;  %v4664_v57 = vrot.slane %v4538_v41, 1 }
 0x4a1   : > { %v4665_v30 = vor.u32 %v4664_v57, %v4535_v2 }
 0x4a3   : > { %v4670_v6 = vsel %vm11503_vm2, %v4665_v30, %v4669_v14 }
 0x4a6   : > { %8097 = vmatmul.mubr.bf16.vlgmr.msra.gmra.mrb[184].mxu0 %v11179_v50 }
 0x4a7   : > { %8100 = vmatprep.mubr.bf16.mxu0 %v11185_v47  ;;  %8113 = vmatpush3.bf16.msra.mxu0 %v8921_v40 }
 0x4a8   : > { %8114 = vmatprep.subr.bf16.mxu0 %v8922_v13 }
 0x4ab   : > { %8115 = vmatpush3.bf16.msra.mxu0 %v8922_v13 }
 0x4ac   : > { %8116 = vmatprep.subr.bf16.mxu0 %v8923_v59 }
 0x4ae   : > { %8101 = vmatmul.mubr.bf16.gmra.mrb[188].mxu0 %v11195_v49 }
 0x4af   : > { %8104 = vmatprep.mubr.bf16.mxu0 %v11199_v24  ;;  %8117 = vmatpush3.bf16.msra.mxu0 %v8923_v59  ;;  %v8929_v24 = vld [vmem:[#allocation7 + $0x38] sm:$0xff]   ;;  %v8940_v59 = vld [vmem:[%s9332_s26 + $0x54] sm:$0xff]  }
 0x4b0   : > { %8118 = vmatprep.subr.bf16.mxu0 %v8924_v53 }
 0x4b3   : > { %8119 = vmatpush3.bf16.msra.mxu0 %v8924_v53 }
 0x4b4   : > { %8120 = vmatprep.subr.bf16.mxu0 %v8925_v25 }
 0x4b6   : > { %8105 = vmatmul.mubr.bf16.gmra.mrb[192].mxu0 %v11205_v18  ;;  %v8936_v18 = vld [vmem:[%s9332_s26 + $0x24] sm:$0xff]  }
 0x4b7   : > { %8108 = vmatprep.mubr.bf16.mxu0 %v11216_v56  ;;  %8121 = vmatpush3.bf16.msra.mxu0 %v8925_v25  ;;  %v7628_v50 = vpop.f32.mrb[156].mxu1  ;;  %v8938_v56 = vld [vmem:[%s9332_s26 + $0x3c] sm:$0xff]  }
 0x4b8   : > { %8122 = vmatprep.subr.bf16.mxu0 %v8926_v32  ;;  %v7629_v47 = vpop.f32.mrb[157].mxu1 }
 0x4b9   : > { %v7548_v19 = vpop.f32.mrb[152].mxu0  ;;  %v7630_v43 = vadd.f32 %v7629_v47, %v7628_v50  ;;  %v7631_v35 = vpop.f32.mrb[158].mxu1 }
 0x4ba   : > { %v7549_v37 = vpop.f32.mrb[153].mxu0  ;;  %v7632_v10 = vpop.f32.mrb[159].mxu1 }
 0x4bb   : > { %v7550_v33 = vadd.f32 %v7549_v37, %v7548_v19  ;;  %v7551_v5 = vpop.f32.mrb[154].mxu0  ;;  %8123 = vmatpush3.bf16.msra.mxu0 %v8926_v32  ;;  %v7633_v49 = vadd.f32 %v7632_v10, %v7631_v35  ;;  %v8941_v35 = vld [vmem:[%s9332_s26 + $0x60] sm:$0xff]   ;;  %v8942_v10 = vld [vmem:[%s9332_s26 + $0x6c] sm:$0xff]  }
 0x4bc   : > { %v7552_v16 = vpop.f32.mrb[155].mxu0  ;;  %8124 = vmatprep.subr.bf16.mxu0 %v8928_v51 }
 0x4bd   : > { %v8340_v45 = vadd.f32 %v7550_v33, %v11245_v46  ;;  %v7553_v11 = vadd.f32 %v7552_v16, %v7551_v5 }
 0x4be   : > { %8109 = vmatmul.mubr.bf16.gmra.mrb[196].mxu0 %v4670_v6 }
 0x4bf   : > { %v8348_v42 = vadd.f32 %v7553_v11, %v11245_v46  ;;  %8125 = vmatpush3.bf16.msra.mxu0 %v8928_v51  ;;  %8128 = vmatprep.mubr.bf16.mxu0 %v8936_v18  ;;  %v11251_v3 = vadd.f32 %v8340_v45, %v7630_v43 }
 0x4c0   : > { %v7634_v63 = vpop.f32.mrb[160].mxu1  ;;  %8126 = vmatprep.subr.bf16.mxu0 %v8929_v24 }
 0x4c1   : > { %v7554_v38 = vpop.f32.mrb[156].mxu0  ;;  %v7635_v52 = vpop.f32.mrb[161].mxu1  ;;  %v11253_v22 = vadd.f32 %v8348_v42, %v7633_v49 }
 0x4c2   : > { %v7555_v48 = vpop.f32.mrb[157].mxu0  ;;  %v7636_v55 = vadd.f32 %v7635_v52, %v7634_v63  ;;  %v7637_v61 = vpop.f32.mrb[162].mxu1 }
 0x4c3   : > { %v7556_v28 = vadd.f32 %v7555_v48, %v7554_v38  ;;  %v7557_v26 = vpop.f32.mrb[158].mxu0  ;;  %8127 = vmatpush3.bf16.msra.mxu0 %v8929_v24  ;;  %v7638_v29 = vpop.f32.mrb[163].mxu1 }
 0x4c4   : > { %v7558_v7 = vpop.f32.mrb[159].mxu0  ;;  %v7639_v21 = vadd.f32 %v7638_v29, %v7637_v61 }
 0x4c5   : > { %v8336_v4 = vadd.f32 %v7556_v28, %v11245_v46  ;;  %v7559_v1 = vadd.f32 %v7558_v7, %v7557_v26  ;;  %v8943_v28 = vld [vmem:[%s9332_s26 + $0x78] sm:$0xff]   ;;  %s352_s26 = sand.u32 1, %s9078_s28  }
 0x4c6   : > { %8129 = vmatmul.mubr.bf16.vlgmr.msra.gmra.mrb[184].mxu0 %v8937_v39  ;;  %s6231_s22 = sshll.u32 %s352_s26, 7  ;;  %s11376_s21 = scalar_lea.sflag [#allocation6], %s352_s26 }
 0x4c7   : > { %v11257_v58 = vadd.f32 %v8336_v4, %v7636_v55  ;;  %v8344_v0 = vadd.f32 %v7559_v1, %v11245_v46  ;;  %8132 = vmatprep.mubr.bf16.mxu0 %v8938_v56  ;;  %s11341_s9 = scalar_lea.vmem [#allocation9], %s6231_s22 }
 0x4c8   : > { %v7640_v15 = vpop.f32.mrb[164].mxu1  ;;  %s6121_s23 = sshll.u32 %s11341_s9, 4  ;;  %s11369_s23 = int_to_ptr.vmem [resolvable:$true] %s6121_s23 }
 0x4c9   : > { %v11261_v34 = vadd.f32 %v8344_v0, %v7639_v21  ;;  %v7560_v9 = vpop.f32.mrb[160].mxu0  ;;  %v7641_v8 = vpop.f32.mrb[165].mxu1  ;;  %s9000_s17 = scalar_lea.vmem %s11369_s23, 2048  ;;  %p9007_p3 = scmp.lt.s32.totalorder %s11369_s23, %s9005_s16 }
 0x4ca   : > { %v7561_v44 = vpop.f32.mrb[161].mxu0  ;;  %v7642_v31 = vadd.f32 %v7641_v8, %v7640_v15  ;;  %v7643_v23 = vpop.f32.mrb[166].mxu1  ;;  %p9001_p2 = scmp.ne.s32.totalorder %s11369_s23, %s9000_s17  ;;  %p9008_p4 = scmp.lt.s32.totalorder %s9006_s29, %s9000_s17 }
 0x4cb   : > { %v7562_v12 = vadd.f32 %v7561_v44, %v7560_v9  ;;  %v7563_v20 = vpop.f32.mrb[162].mxu0  ;;  %v7644_v40 = vpop.f32.mrb[167].mxu1 }
 0x4cc   : > { %v7564_v62 = vpop.f32.mrb[163].mxu0  ;;  %v7645_v2 = vadd.f32 %v7644_v40, %v7643_v23  ;;  %p9002_p12 = pnand %p9001_p2, %p11504_p10  ;;  %p9009_p6 = por %p9008_p4, %p9007_p3 }
 0x4cd   : > { %v8356_v17 = vadd.f32 %v7562_v12, %v11245_v46  ;;  %v7565_v41 = vadd.f32 %v7564_v62, %v7563_v20 }
 0x4ce   : > { %8133 = vmatmul.mubr.bf16.gmra.mrb[188].mxu0 %v8939_v27  ;;  %p9003_p1 = pneg %p9002_p12 }
 0x4cf   : > { %v11265_v36 = vadd.f32 %v8356_v17, %v7642_v31  ;;  %v8364_v13 = vadd.f32 %v7565_v41, %v11245_v46  ;;  %8136 = vmatprep.mubr.bf16.mxu0 %v8940_v59 }
 0x4d0   : > { %v7646_v53 = vpop.f32.mrb[168].mxu1  ;;  %p9010_p8 = pnand %p9009_p6, %p9003_p1 }
 0x4d1   : > { %v11269_v25 = vadd.f32 %v8364_v13, %v7645_v2  ;;  %v7566_v60 = vpop.f32.mrb[164].mxu0  ;;  %v7647_v32 = vpop.f32.mrb[169].mxu1 }
 0x4d2   : > { %v7567_v57 = vpop.f32.mrb[165].mxu0  ;;  %v7648_v54 = vadd.f32 %v7647_v32, %v7646_v53  ;;  %v7649_v50 = vpop.f32.mrb[170].mxu1 }
 0x4d3   : > { %v7568_v51 = vadd.f32 %v7567_v57, %v7566_v60  ;;  %v7569_v19 = vpop.f32.mrb[166].mxu0  ;;  %v7650_v47 = vpop.f32.mrb[171].mxu1 }
 0x4d4   : > { %v7570_v30 = vpop.f32.mrb[167].mxu0  ;;  %v7651_v14 = vadd.f32 %v7650_v47, %v7649_v50 }
 0x4d5   : > { %v8352_v43 = vadd.f32 %v7568_v51, %v11245_v46  ;;  %v7571_v37 = vadd.f32 %v7570_v30, %v7569_v19 }
 0x4d6   : > { %8137 = vmatmul.mubr.bf16.gmra.mrb[192].mxu0 %v8941_v35 }
 0x4d7   : > { %v11273_v33 = vadd.f32 %v8352_v43, %v7648_v54  ;;  %v8360_v5 = vadd.f32 %v7571_v37, %v11245_v46  ;;  %8140 = vmatprep.mubr.bf16.mxu0 %v8942_v10 }
 0x4d8   : > { %v7652_v49 = vpop.f32.mrb[172].mxu1 }
 0x4d9   : > { %v11277_v16 = vadd.f32 %v8360_v5, %v7651_v14  ;;  %v7572_v24 = vpop.f32.mrb[168].mxu0  ;;  %v7653_v45 = vpop.f32.mrb[173].mxu1 }
 0x4da   : > { %v7573_v11 = vpop.f32.mrb[169].mxu0  ;;  %v7654_v6 = vadd.f32 %v7653_v45, %v7652_v49  ;;  %v7655_v42 = vpop.f32.mrb[174].mxu1 }
 0x4db   : > { %v7574_v18 = vadd.f32 %v7573_v11, %v7572_v24  ;;  %v7575_v63 = vpop.f32.mrb[170].mxu0  ;;  %v7656_v38 = vpop.f32.mrb[175].mxu1 }
 0x4dc   : > { %v7576_v52 = vpop.f32.mrb[171].mxu0  ;;  %v7657_v48 = vadd.f32 %v7656_v38, %v7655_v42 }
 0x4dd   : > { %v8372_v55 = vadd.f32 %v7574_v18, %v11245_v46  ;;  %v7577_v61 = vadd.f32 %v7576_v52, %v7575_v63 }
 0x4de   : > { %8141 = vmatmul.mubr.bf16.gmra.mrb[196].mxu0 %v8943_v28 }
 0x4df   : > { %v11281_v26 = vadd.f32 %v8372_v55, %v7654_v6  ;;  %v8380_v29 = vadd.f32 %v7577_v61, %v11245_v46 }
 0x4e0   : > { %v7658_v7 = vpop.f32.mrb[176].mxu1 }
 0x4e1   : > { %v11284_v21 = vadd.f32 %v8380_v29, %v7657_v48  ;;  %v7578_v4 = vpop.f32.mrb[172].mxu0  ;;  %v7659_v1 = vpop.f32.mrb[177].mxu1 }
 0x4e2   : > { %v7579_v39 = vpop.f32.mrb[173].mxu0  ;;  %v7660_v0 = vadd.f32 %v7659_v1, %v7658_v7  ;;  %v7661_v56 = vpop.f32.mrb[178].mxu1 }
 0x4e3   : > { %v7580_v15 = vadd.f32 %v7579_v39, %v7578_v4  ;;  %v7581_v9 = vpop.f32.mrb[174].mxu0  ;;  %v7662_v8 = vpop.f32.mrb[179].mxu1 }
 0x4e4   : > { %v7582_v44 = vpop.f32.mrb[175].mxu0  ;;  %v7663_v31 = vadd.f32 %v7662_v8, %v7661_v56 }
 0x4e5   : > { %v8368_v23 = vadd.f32 %v7580_v15, %v11245_v46  ;;  %v7583_v12 = vadd.f32 %v7582_v44, %v7581_v9 }
 0x4e7   : > { %v11287_v20 = vadd.f32 %v8368_v23, %v7660_v0  ;;  %v8376_v40 = vadd.f32 %v7583_v12, %v11245_v46 }
 0x4e8   : > { %v7664_v62 = vpop.f32.mrb[180].mxu1 }
 0x4e9   : > { %v11290_v2 = vadd.f32 %v8376_v40, %v7663_v31  ;;  %v7584_v17 = vpop.f32.mrb[176].mxu0  ;;  %v7665_v41 = vpop.f32.mrb[181].mxu1 }
 0x4ea   : > { %v7585_v27 = vpop.f32.mrb[177].mxu0  ;;  %v7666_v13 = vadd.f32 %v7665_v41, %v7664_v62  ;;  %v7667_v59 = vpop.f32.mrb[182].mxu1 }
 0x4eb   : > { %v7586_v53 = vadd.f32 %v7585_v27, %v7584_v17  ;;  %v7587_v60 = vpop.f32.mrb[178].mxu0  ;;  %v7668_v32 = vpop.f32.mrb[183].mxu1 }
 0x4ec   : > { %v7588_v57 = vpop.f32.mrb[179].mxu0  ;;  %v7669_v54 = vadd.f32 %v7668_v32, %v7667_v59 }
 0x4ed   : > { %v8388_v50 = vadd.f32 %v7586_v53, %v11245_v46  ;;  %v7589_v51 = vadd.f32 %v7588_v57, %v7587_v60 }
 0x4ef   : > { %v11293_v19 = vadd.f32 %v8388_v50, %v7666_v13  ;;  %v8396_v47 = vadd.f32 %v7589_v51, %v11245_v46 }
 0x4f0   : > { %v7670_v30 = vpop.f32.mrb[184].mxu1 }
 0x4f1   : > { %v11296_v14 = vadd.f32 %v8396_v47, %v7669_v54  ;;  %v7590_v43 = vpop.f32.mrb[180].mxu0  ;;  %v7671_v37 = vpop.f32.mrb[185].mxu1 }
 0x4f2   : > { %v7591_v35 = vpop.f32.mrb[181].mxu0  ;;  %v7672_v5 = vadd.f32 %v7671_v37, %v7670_v30  ;;  %v7673_v10 = vpop.f32.mrb[186].mxu1 }
 0x4f3   : > { %v7592_v49 = vadd.f32 %v7591_v35, %v7590_v43  ;;  %v7593_v24 = vpop.f32.mrb[182].mxu0  ;;  %v7674_v45 = vpop.f32.mrb[187].mxu1 }
 0x4f4   : > { %v7594_v11 = vpop.f32.mrb[183].mxu0  ;;  %v7675_v6 = vadd.f32 %v7674_v45, %v7673_v10 }
 0x4f5   : > { %v8384_v42 = vadd.f32 %v7592_v49, %v11245_v46  ;;  %v7595_v18 = vadd.f32 %v7594_v11, %v7593_v24 }
 0x4f7   : > { %v11299_v63 = vadd.f32 %v8384_v42, %v7672_v5  ;;  %v8392_v38 = vadd.f32 %v7595_v18, %v11245_v46 }
 0x4f9   : > { %v11302_v52 = vadd.f32 %v8392_v38, %v7675_v6 }
 0x539   : > { %v7708_v48 = vpop.f32.mrb[200].mxu0 }
 0x53a   : > { %v7709_v55 = vpop.f32.mrb[201].mxu0 }
 0x53b   : > { %v7710_v61 = vadd.f32 %v7709_v55, %v7708_v48  ;;  %v7711_v28 = vpop.f32.mrb[202].mxu0 }
 0x53c   : > { %v7712_v29 = vpop.f32.mrb[203].mxu0 }
 0x53d   : > { %v7713_v7 = vadd.f32 %v7712_v29, %v7711_v28  ;;  %v11305_v4 = vadd.f32 %v11251_v3, %v7710_v61 }
 0x53f   : > { %v11308_v1 = vadd.f32 %v11253_v22, %v7713_v7 }
 0x541   : > { %v7714_v39 = vpop.f32.mrb[204].mxu0 }
 0x542   : > { %v7715_v0 = vpop.f32.mrb[205].mxu0 }
 0x543   : > { %v7716_v56 = vadd.f32 %v7715_v0, %v7714_v39  ;;  %v7717_v15 = vpop.f32.mrb[206].mxu0 }
 0x544   : > { %v7718_v9 = vpop.f32.mrb[207].mxu0 }
 0x545   : > { %v7719_v46 = vadd.f32 %v7718_v9, %v7717_v15  ;;  %v8338_v8 = vadd.f32 %v11257_v58, %v7716_v56 }
 0x547   : > { %v8346_v44 = vadd.f32 %v11261_v34, %v7719_v46 }
 0x549   : > { %v7720_v31 = vpop.f32.mrb[208].mxu0 }
 0x54a   : > { %v7721_v23 = vpop.f32.mrb[209].mxu0 }
 0x54b   : > { %v7722_v12 = vadd.f32 %v7721_v23, %v7720_v31  ;;  %v7723_v40 = vpop.f32.mrb[210].mxu0 }
 0x54c   : > { %v7724_v62 = vpop.f32.mrb[211].mxu0 }
 0x54d   : > { %v7725_v3 = vadd.f32 %v7724_v62, %v7723_v40  ;;  %v11313_v17 = vadd.f32 %v11265_v36, %v7722_v12 }
 0x54f   : > { %v11316_v22 = vadd.f32 %v11269_v25, %v7725_v3 }
 0x551   : > { %v7726_v41 = vpop.f32.mrb[212].mxu0 }
 0x552   : > { %v7727_v27 = vpop.f32.mrb[213].mxu0 }
 0x553   : > { %v7728_v13 = vadd.f32 %v7727_v27, %v7726_v41  ;;  %v7729_v59 = vpop.f32.mrb[214].mxu0 }
 0x554   : > { %v7730_v53 = vpop.f32.mrb[215].mxu0 }
 0x555   : > { %v7731_v58 = vadd.f32 %v7730_v53, %v7729_v59  ;;  %v8354_v34 = vadd.f32 %v11273_v33, %v7728_v13 }
 0x557   : > { %v8362_v60 = vadd.f32 %v11277_v16, %v7731_v58 }
 0x559   : > { %v7732_v32 = vpop.f32.mrb[216].mxu0 }
 0x55a   : > { %v7733_v57 = vpop.f32.mrb[217].mxu0 }
 0x55b   : > { %v7734_v54 = vadd.f32 %v7733_v57, %v7732_v32  ;;  %v7735_v50 = vpop.f32.mrb[218].mxu0 }
 0x55c   : > { %v7736_v51 = vpop.f32.mrb[219].mxu0 }
 0x55d   : > { %v7737_v36 = vadd.f32 %v7736_v51, %v7735_v50  ;;  %v11321_v47 = vadd.f32 %v11281_v26, %v7734_v54 }
 0x55f   : > { %v11324_v25 = vadd.f32 %v11284_v21, %v7737_v36 }
 0x561   : > { %v7738_v30 = vpop.f32.mrb[220].mxu0 }
 0x562   : > { %v7739_v43 = vpop.f32.mrb[221].mxu0 }
 0x563   : > { %v7740_v37 = vadd.f32 %v7739_v43, %v7738_v30  ;;  %v7741_v35 = vpop.f32.mrb[222].mxu0 }
 0x564   : > { %v7742_v5 = vpop.f32.mrb[223].mxu0 }
 0x565   : > { %v7743_v33 = vadd.f32 %v7742_v5, %v7741_v35  ;;  %v8370_v16 = vadd.f32 %v11287_v20, %v7740_v37 }
 0x567   : > { %v8378_v10 = vadd.f32 %v11290_v2, %v7743_v33 }
 0x569   : > { %v7744_v49 = vpop.f32.mrb[224].mxu0 }
 0x56a   : > { %v7745_v24 = vpop.f32.mrb[225].mxu0 }
 0x56b   : > { %v7746_v45 = vadd.f32 %v7745_v24, %v7744_v49  ;;  %v7747_v26 = vpop.f32.mrb[226].mxu0 }
 0x56c   : > { %v7748_v11 = vpop.f32.mrb[227].mxu0 }
 0x56d   : > { %v7749_v6 = vadd.f32 %v7748_v11, %v7747_v26  ;;  %v11329_v21 = vadd.f32 %v11293_v19, %v7746_v45 }
 0x56f   : > { %v11332_v42 = vadd.f32 %v11296_v14, %v7749_v6 }
 0x571   : > { %v7750_v18 = vpop.f32.mrb[228].mxu0 }
 0x572   : > { %v7751_v38 = vpop.f32.mrb[229].mxu0 }
 0x573   : > { %v7752_v48 = vadd.f32 %v7751_v38, %v7750_v18  ;;  %v7753_v20 = vpop.f32.mrb[230].mxu0 }
 0x574   : > { %v7754_v55 = vpop.f32.mrb[231].mxu0 }
 0x575   : > { %v7755_v2 = vadd.f32 %v7754_v55, %v7753_v20  ;;  %v8386_v61 = vadd.f32 %v11299_v63, %v7752_v48 }
 0x577   : > { %v8394_v28 = vadd.f32 %v11302_v52, %v7755_v2 }
 0x599   : > { %v8130_v29 = vpop.f32.mrb[184].mxu0 }
 0x59a   : > { %v8339_v7 = vadd.f32 %v8338_v8, %v8130_v29  ;;  %v5994_v19 = vpop.f32.mrb[185].mxu0 }
 0x59b   : > { %v8343_v39 = vadd.f32 %v11305_v4, %v5994_v19  ;;  %v8131_v14 = vpop.f32.mrb[186].mxu0 }
 0x59c   : > { %v6075_v0 = vmax.f32 %v8339_v7, 0.0  ;;  %v8347_v56 = vadd.f32 %v8346_v44, %v8131_v14  ;;  %v5997_v15 = vpop.f32.mrb[187].mxu0 }
 0x59d   : > { %v6073_v9 = vmax.f32 %v8343_v39, 0.0  ;;  %v8351_v46 = vadd.f32 %v11308_v1, %v5997_v15 }
 0x59e   : > { %6091 = vst [vmem:[%s11341_s9 + $0x10] sm:$0xff] %v6075_v0  ;;  %v6076_v63 = vmax.f32 %v8347_v56, 0.0 }
 0x59f   : > { %6089 = vst [vmem:[%s11341_s9] sm:$0xff] %v6073_v9  ;;  %v6074_v52 = vmax.f32 %v8351_v46, 0.0 }
 0x5a0   : > { %6092 = vst [vmem:[%s11341_s9 + $0x18] sm:$0xff] %v6076_v63 }
 0x5a1   : > { %6090 = vst [vmem:[%s11341_s9 + $0x8] sm:$0xff] %v6074_v52  ;;  %v8134_v4 = vpop.f32.mrb[188].mxu0 }
 0x5a2   : > { %v8355_v8 = vadd.f32 %v8354_v34, %v8134_v4  ;;  %v6010_v44 = vpop.f32.mrb[189].mxu0 }
 0x5a3   : > { %v8359_v1 = vadd.f32 %v11313_v17, %v6010_v44  ;;  %v8135_v31 = vpop.f32.mrb[190].mxu0 }
 0x5a4   : > { %v6079_v23 = vmax.f32 %v8355_v8, 0.0  ;;  %v8363_v12 = vadd.f32 %v8362_v60, %v8135_v31  ;;  %v6013_v40 = vpop.f32.mrb[191].mxu0 }
 0x5a5   : > { %v6077_v62 = vmax.f32 %v8359_v1, 0.0  ;;  %v8367_v3 = vadd.f32 %v11316_v22, %v6013_v40 }
 0x5a6   : > { %6095 = vst [vmem:[%s11341_s9 + $0x30] sm:$0xff] %v6079_v23  ;;  %v6080_v41 = vmax.f32 %v8363_v12, 0.0 }
 0x5a7   : > { %6093 = vst [vmem:[%s11341_s9 + $0x20] sm:$0xff] %v6077_v62  ;;  %v6078_v27 = vmax.f32 %v8367_v3, 0.0 }
 0x5a8   : > { %6096 = vst [vmem:[%s11341_s9 + $0x38] sm:$0xff] %v6080_v41 }
 0x5a9   : > { %6094 = vst [vmem:[%s11341_s9 + $0x28] sm:$0xff] %v6078_v27  ;;  %v8138_v13 = vpop.f32.mrb[192].mxu0 }
 0x5aa   : > { %v8371_v59 = vadd.f32 %v8370_v16, %v8138_v13  ;;  %v6026_v17 = vpop.f32.mrb[193].mxu0 }
 0x5ab   : > { %v8375_v53 = vadd.f32 %v11321_v47, %v6026_v17  ;;  %v8139_v58 = vpop.f32.mrb[194].mxu0 }
 0x5ac   : > { %v6083_v34 = vmax.f32 %v8371_v59, 0.0  ;;  %v8379_v60 = vadd.f32 %v8378_v10, %v8139_v58  ;;  %v6029_v22 = vpop.f32.mrb[195].mxu0 }
 0x5ad   : > { %v6081_v32 = vmax.f32 %v8375_v53, 0.0  ;;  %v8383_v57 = vadd.f32 %v11324_v25, %v6029_v22 }
 0x5ae   : > { %6099 = vst [vmem:[%s11341_s9 + $0x50] sm:$0xff] %v6083_v34  ;;  %v6084_v54 = vmax.f32 %v8379_v60, 0.0 }
 0x5af   : > { %6097 = vst [vmem:[%s11341_s9 + $0x40] sm:$0xff] %v6081_v32  ;;  %v6082_v50 = vmax.f32 %v8383_v57, 0.0 }
 0x5b0   : > { %6100 = vst [vmem:[%s11341_s9 + $0x58] sm:$0xff] %v6084_v54 }
 0x5b1   : > { %6098 = vst [vmem:[%s11341_s9 + $0x48] sm:$0xff] %v6082_v50  ;;  %v8142_v51 = vpop.f32.mrb[196].mxu0 }
 0x5b2   : > { %v8387_v36 = vadd.f32 %v8386_v61, %v8142_v51  ;;  %v6042_v47 = vpop.f32.mrb[197].mxu0 }
 0x5b3   : > { %v8391_v30 = vadd.f32 %v11329_v21, %v6042_v47  ;;  %v8143_v43 = vpop.f32.mrb[198].mxu0 }
 0x5b4   : > { %v6087_v25 = vmax.f32 %v8387_v36, 0.0  ;;  %v8395_v37 = vadd.f32 %v8394_v28, %v8143_v43  ;;  %v6045_v35 = vpop.f32.mrb[199].mxu0 }
 0x5b5   : > { %v6085_v5 = vmax.f32 %v8391_v30, 0.0  ;;  %v8399_v33 = vadd.f32 %v11332_v42, %v6045_v35 }
 0x5b6   : > { %6103 = vst [vmem:[%s11341_s9 + $0x70] sm:$0xff] %v6087_v25  ;;  %v6088_v16 = vmax.f32 %v8395_v37, 0.0 }
 0x5b7   : > { %6101 = vst [vmem:[%s11341_s9 + $0x60] sm:$0xff] %v6085_v5  ;;  %v6086_v10 = vmax.f32 %v8399_v33, 0.0 }
 0x5b8   : > { %6104 = vst [vmem:[%s11341_s9 + $0x78] sm:$0xff] %v6088_v16 }
 0x5b9   : > { %6102 = vst [vmem:[%s11341_s9 + $0x68] sm:$0xff] %v6086_v10 }
 0x5ba   : > { %9013 = shalt.err (!%p9010_p8)
}
 0x5bb   : > { %s9014_s10 = scalar_lea.hbm %s11367_s30, 2048  ;;  %s9018_s25 = scalar_lea.hbm %s11436_s8, 8192 }
 0x5bc   : > { %p9015_p9 = scmp.ne.s32.totalorder %s11367_s30, %s9014_s10  ;;  %p9019_p5 = scmp.lt.u32.totalorder %s11367_s30, %s11436_s8 }
 0x5bd   : > { %p9020_p7 = scmp.lt.u32.totalorder %s9018_s25, %s9014_s10  ;;  %p9022_p2 = scmp.lt.u32.totalorder %s9014_s10, %s11367_s30 }
 0x5be   : > { %p9016_p11 = pnand %p9015_p9, %p11504_p10 }
 0x5bf   : > { %p9021_p0 = por %p9020_p7, %p9019_p5 }
 0x5c0   : > { %p9017_p13 = pneg %p9016_p11 }
 0x5c1   : > { %p9023_p12 = por %p9022_p2, %p9021_p0 }
 0x5c3   : > { %p9024_p1 = pnand %p9023_p12, %p9017_p13 }
 0x5c5   : > { %9027 = shalt.err (!%p9024_p1)
}
 0x5c6   : > { %s9110_s26 = smov 128   ;;  %s9111_s22 = smov 8  }
 0x5c7   : > { %8545 = dma.vmem_to_hbm [thread:$0]  (%p11504_p10), %s11369_s23, 2048, %s11367_s30, %s11376_s21, %s9110_s26, %s9110_s26, %s9111_s22  }
 0x5c8 PF: > { %s11505_s9 = sld [smem:[#allocation13_spill]]  ;;  %s11506_s13 = sld [smem:[#allocation19_spill]] }
 0x5c9   : > { %p8562_p3 = scmp.ge.s32.totalorder %s9102_s12, 2 }
 0x5ce   : > { %s6136_s24 = sand.u32 1, %s11505_s9   ;;  %p11507_p4 = scmp.ne.s32.totalorder %s11506_s13, 0 }
 0x5cf   : > { %s6137_s19 = scalar_lea.sflag [#allocation6], %s6136_s24 }
 0x5d0   : > { %p8555_p6 = pnand %p8562_p3, %p11507_p4 }
 0x5d2   : > { %9069 = dma.done.wait (!%p8555_p6), %s6137_s19, 2048  }
 0x5d3   : > { %9071 = vsyncadd (!%p8555_p6), %s6137_s19, 4294965248  ;;  %s23_s12 = sadd.s32 1, %s9102_s12   ;;  %s11508_s17 = sld [smem:[#allocation14_spill]] }
 0x5d4   : > { %p20_p8 = scmp.ge.s32.totalorder %s23_s12, 6   ;;  %s11509_s29 = sld [smem:[#allocation20_spill]] }
 0x5d5   : > { %s11510_s30 = sld [smem:[#allocation15_spill]]  ;;  %s11511_s9 = sld [smem:[#allocation16_spill]] }
 0x5d6   : > { %s11512_s10 = sld [smem:[#allocation17_spill]]  ;;  %s11513_s11 = sld [smem:[#allocation18_spill]] }
 0x5d7   : > { %s11514_s27 = smov %s9078_s28  ;;  %22 = sbr.rel (!%p20_p8) target bundleno = 7 (0x7), region = 102 }
 0x5d9   : > { %s11515_s28 = smov %s11508_s17 }
 0x5de   :  { %6142 = vsyncpa [#allocation5], 1 }
 0x5df   :  { %6144 = vsyncpa [#allocation5 + $0x1], 1 }
 0x5e0   :  { %6145 = vsyncpa [#allocation8], 1 }
 0x5e1   :  { %6146 = vsyncpa [#allocation6], 1 }
 0x5e2   :  { %6148 = vsyncpa [#allocation6 + $0x1], 1 }

</bundles_post_ra>
